<compile_context>
chip_gen: v6e
topology: v6e:2x2x1
jax: 0.10.0
libtpu: 0.0.40
codegen_flags: <defaults>
</compile_context>

<pallas_src>
import functools

import jax
import jax.numpy as jnp
from jax import lax
from jax.experimental import pallas as pl
from jax.experimental.pallas import tpu as pltpu


def make_embnet_kernel(scale: float, eps: float):
    """One batch-tile of the fused forward pass."""

    def kernel(x_ref, s1_ref, t1_ref, w1_ref, b1_ref, w2_ref, b2_ref, o_ref):
        # BN1 (folded affine) + ReLU in f32.  Upcast after load so both f32
        # and bf16 x streams work (v5e's VPU has no bf16 ALUs).      -- VPU
        x = x_ref[...].astype(jnp.float32)
        h = jnp.maximum(x * s1_ref[...] + t1_ref[...], 0.0)

        # fc1 (BN2 pre-folded into w1/b1) + ReLU        -- MXU bf16, f32 acc
        h = jnp.dot(h.astype(jnp.bfloat16), w1_ref[...],
                    preferred_element_type=jnp.float32)
        h = jnp.maximum(h + b1_ref[...], 0.0)

        # fc2                                           -- MXU bf16, f32 acc
        y = jnp.dot(h.astype(jnp.bfloat16), w2_ref[...],
                    preferred_element_type=jnp.float32)
        y = y + b2_ref[...]

        # Row-wise L2 normalize * scale: fold scale into the (TB,1) rsqrt
        # (EUP slot) instead of an extra full-width multiply.
        # eps=0.0 matches the PyTorch `.norm().div()` exactly; pass eps=1e-12
        # at the wrapper to guard degenerate (all-zero) rows if desired.
        sumsq = jnp.sum(y * y, axis=-1, keepdims=True) + eps
        o_ref[...] = (y * (scale * lax.rsqrt(sumsq))).astype(o_ref.dtype)

    return kernel


def _pick_tb(B: int, cap: int) -> int:
    """Batch-tile selection (perf review):
      * multiple of 8 (f32 sublane), as large as possible up to `cap`
        (big contiguous DMA slabs; ~0.35us/step pipeline overhead amortized),
      * >= 256 when the batch allows it, so the matmul M dim fills the
        256-wide MXU on v6e/v7x (v5e's 128-wide MXU is full either way),
      * divides B whenever possible, so no padded HBM copy of x is needed,
      * prefer >= 4 grid steps so the per-core pipeline actually overlaps.
    """
    cap = max(8, (cap // 8) * 8)
    if B <= cap:
        return max(8, -(-B // 8) * 8)            # single tile; pad <= 7 rows
    divisors = [tb for tb in range(cap, 7, -8) if B % tb == 0]  # descending
    if divisors:
        for tb in divisors:
            if tb >= 256 and B // tb >= 4:       # MXU-full AND pipelined
                return tb
        return divisors[0]                       # largest exact divisor
    return cap                                   # no divisor: tail gets padded


@functools.partial(jax.jit, static_argnames=("scale", "tb_cap", "out_dtype", "eps"))
def embnetx_forward(x, params, *, scale=3.0, tb_cap=512,
                    out_dtype=jnp.float32, eps=0.0):
    """params: bn1_scale, bn1_shift, w1 (bf16, BN2-folded), b1, w2 (bf16), b2.

    w1: (F, H), w2: (H, E)  (already transposed from PyTorch (out, in) layout,
    BN2 folded into w1/b1). bn vectors / biases shaped (1, feat), f32.
    x may be f32 or bf16 (bf16 halves the only per-step HBM stream).
    """
    B, F = x.shape
    H = params["w1"].shape[1]
    E = params["w2"].shape[1]

    TB = _pick_tb(B, tb_cap)
    Bp = pl.cdiv(B, TB) * TB
    if Bp != B:
        # Only reached when no tile <= tb_cap divides B (rare).
        # TODO(synk): handle the tail tile with a masked partial write instead
        # of materializing a padded copy of x in HBM.
        x = jnp.pad(x, ((0, Bp - B), (0, 0)))

    kernel = make_embnet_kernel(scale, eps)

    # Constant index_map -> weights / BN vectors stay resident in VMEM across
    # all grid steps (their DMA is amortized over the whole batch).
    # NOTE: these could additionally be single-buffered (pipeline_mode=
    # pl.Buffered(1)) to save ~0.7 MB VMEM; skipped since at TB<=512 the whole
    # working set is far below the 32 MiB scoped budget on every chip.
    resident = lambda shape: pl.BlockSpec(shape, lambda i: (0, 0))

    out = pl.pallas_call(
        kernel,
        out_shape=jax.ShapeDtypeStruct((Bp, E), out_dtype),
        grid=(Bp // TB,),
        in_specs=[
            pl.BlockSpec((TB, F), lambda i: (i, 0)),   # x tile (double-buffered)
            resident((1, F)),                          # bn1 scale
            resident((1, F)),                          # bn1 shift
            resident((F, H)),                          # w1 (bf16, BN2 folded)
            resident((1, H)),                          # b1 (BN2 folded)
            resident((H, E)),                          # w2 (bf16)
            resident((1, E)),                          # b2
        ],
        out_specs=pl.BlockSpec((TB, E), lambda i: (i, 0)),
        compiler_params=pltpu.CompilerParams(
            # Batch axis is independent -> shard across TCs where available.
            dimension_semantics=("parallel",),
            # Explicit scoped-VMEM budget: v5e defaults to only 16 MiB (would
            # choke the larger double-buffered x tile); 32 MiB is the default
            # and a safe ceiling on v6e (128 MiB) and v7x (64 MiB/TC).
            vmem_limit_bytes=32 * 1024 * 1024,
        ),
    )(
        x,
        params["bn1_scale"], params["bn1_shift"],
        params["w1"], params["b1"],
        params["w2"], params["b2"],
    )
    return out[:B] if Bp != B else out


def init_params(key, in_size, hidden, emb):
    """Deterministic synthetic parameters (no checkpoint), with BN2 folded
    into fc1 and weights stored in bf16."""
    ks = jax.random.split(key, 10)
    eps = 1e-5  # PyTorch BatchNorm1d default

    def bn_affine(kg, kb, km, kv, feat):
        gamma = 1.0 + 0.1 * jax.random.normal(kg, (feat,), jnp.float32)
        beta = 0.1 * jax.random.normal(kb, (feat,), jnp.float32)
        running_mean = 0.1 * jax.random.normal(km, (feat,), jnp.float32)
        running_var = jnp.abs(jax.random.normal(kv, (feat,), jnp.float32)) + 0.5
        s = gamma / jnp.sqrt(running_var + eps)
        t = beta - running_mean * s
        return s, t

    bn1_s, bn1_t = bn_affine(ks[0], ks[1], ks[2], ks[3], in_size)
    bn2_s, bn2_t = bn_affine(ks[4], ks[5], ks[6], ks[7], hidden)

    # PyTorch Linear weights are (out, in); transpose so kernel does (B,in)@(in,out).
    w1_pt = jax.random.normal(ks[8], (hidden, in_size), jnp.float32) * (1.0 / jnp.sqrt(in_size))
    b1 = jax.random.normal(jax.random.fold_in(ks[8], 1), (hidden,), jnp.float32) * 0.01
    w2_pt = jax.random.normal(ks[9], (emb, hidden), jnp.float32) * (1.0 / jnp.sqrt(hidden))
    b2 = jax.random.normal(jax.random.fold_in(ks[9], 1), (emb,), jnp.float32) * 0.01

    # Fold BN2 (post-fc1, pre-ReLU) into fc1: W1' = W1 * s2 (per output col),
    # b1' = b1 * s2 + t2.  One-time constant fold.
    w1 = w1_pt.T * bn2_s[None, :]            # (in_size, hidden)
    b1_f = b1 * bn2_s + bn2_t                # (hidden,)
    w2 = w2_pt.T                             # (hidden, emb)

    return {
        "bn1_scale": bn1_s.reshape(1, in_size),
        "bn1_shift": bn1_t.reshape(1, in_size),
        "w1": w1.astype(jnp.bfloat16),
        "b1": b1_f.reshape(1, hidden),
        "w2": w2.astype(jnp.bfloat16),
        "b2": b2.reshape(1, emb),
    }


def reference_forward(x, p, scale=3.0):
    """Pure-JAX reference mirroring the PyTorch forward, using the same
    bf16 weights / bf16 activation casts (f32 accumulation) as the kernel."""
    h = jnp.maximum(x.astype(jnp.float32) * p["bn1_scale"] + p["bn1_shift"], 0.0)
    h = jnp.dot(h.astype(jnp.bfloat16).astype(jnp.float32),
                p["w1"].astype(jnp.float32))
    h = jnp.maximum(h + p["b1"], 0.0)
    y = jnp.dot(h.astype(jnp.bfloat16).astype(jnp.float32),
                p["w2"].astype(jnp.float32))
    y = y + p["b2"]
    norm = jnp.linalg.norm(y, axis=1, keepdims=True)
    return scale * y / norm


if __name__ == "__main__":
    # opt.tile_size = 32 -> inSize = 512 * (32 // 32)**2 = 512
    # opt.embedding_dim = 128, opt.scale = 3, opt.no_l2_norm = False
    # B=1024 with tb_cap=512 -> TB=256 (MXU-full, 4 pipelined grid steps,
    # divides B so no padded HBM copy of x).
    B, IN_SIZE, HIDDEN, EMB = 1024, 512, 512, 128
    SCALE = 3.0

    key = jax.random.PRNGKey(0)
    kx, kp = jax.random.split(key)
    x = jax.random.normal(kx, (B, IN_SIZE), jnp.float32)
    params = init_params(kp, IN_SIZE, HIDDEN, EMB)

    out = embnetx_forward(x, params, scale=SCALE, tb_cap=512)
    out = jax.block_until_ready(out)

    ref = reference_forward(x, params, scale=SCALE)
    assert out.shape == (B, EMB)
    # bf16 matmul inputs + rsqrt -> slightly looser tolerance than pure f32.
    assert jnp.allclose(out, ref, atol=2e-3, rtol=2e-3), "mismatch vs reference"

    print("KERNEL_OK")
</pallas_src>

<mosaic_0001>
module attributes {stable_mosaic.version = 11 : i64} {
  func.func @kernel(%arg0: i32, %arg1: memref<256x512xf32, #tpu.memory_space<vmem>>, %arg2: memref<1x512xf32, #tpu.memory_space<vmem>>, %arg3: memref<1x512xf32, #tpu.memory_space<vmem>>, %arg4: memref<512x512xbf16, #tpu.memory_space<vmem>>, %arg5: memref<1x512xf32, #tpu.memory_space<vmem>>, %arg6: memref<512x128xbf16, #tpu.memory_space<vmem>>, %arg7: memref<1x128xf32, #tpu.memory_space<vmem>>, %arg8: memref<256x128xf32, #tpu.memory_space<vmem>>) attributes {dimension_semantics = [#tpu.dimension_semantics<parallel>], iteration_bounds = array<i64: 4>, scalar_prefetch = 0 : i64, scratch_operands = 0 : i64, tpu.core_type = #tpu.core_type<tc>, window_params = [{transform_indices = @transform_0, window_bounds = array<i64: 256, 512>}, {pipeline_mode = #tpu.pipeline_mode<synchronous>, transform_indices = @transform_1, window_bounds = array<i64: 1, 512>}, {pipeline_mode = #tpu.pipeline_mode<synchronous>, transform_indices = @transform_2, window_bounds = array<i64: 1, 512>}, {pipeline_mode = #tpu.pipeline_mode<synchronous>, transform_indices = @transform_3, window_bounds = array<i64: 512, 512>}, {pipeline_mode = #tpu.pipeline_mode<synchronous>, transform_indices = @transform_4, window_bounds = array<i64: 1, 512>}, {pipeline_mode = #tpu.pipeline_mode<synchronous>, transform_indices = @transform_5, window_bounds = array<i64: 512, 128>}, {pipeline_mode = #tpu.pipeline_mode<synchronous>, transform_indices = @transform_6, window_bounds = array<i64: 1, 128>}, {transform_indices = @transform_7, window_bounds = array<i64: 256, 128>}]} {
    %c0 = arith.constant 0 : index
    %c0_0 = arith.constant 0 : index
    %0 = vector.load %arg1[%c0, %c0_0] : memref<256x512xf32, #tpu.memory_space<vmem>>, vector<256x512xf32>
    %c0_1 = arith.constant 0 : index
    %c0_2 = arith.constant 0 : index
    %1 = vector.load %arg2[%c0_1, %c0_2] : memref<1x512xf32, #tpu.memory_space<vmem>>, vector<1x512xf32>
    %2 = vector.broadcast %1 : vector<1x512xf32> to vector<256x512xf32>
    %3 = arith.mulf %0, %2 : vector<256x512xf32>
    %c0_3 = arith.constant 0 : index
    %c0_4 = arith.constant 0 : index
    %4 = vector.load %arg3[%c0_3, %c0_4] : memref<1x512xf32, #tpu.memory_space<vmem>>, vector<1x512xf32>
    %5 = vector.broadcast %4 : vector<1x512xf32> to vector<256x512xf32>
    %6 = arith.addf %3, %5 : vector<256x512xf32>
    %cst = arith.constant 0.000000e+00 : f32
    %7 = vector.broadcast %cst : f32 to vector<256x512xf32>
    %8 = arith.maximumf %6, %7 : vector<256x512xf32>
    %9 = arith.truncf %8 : vector<256x512xf32> to vector<256x512xbf16>
    %c0_5 = arith.constant 0 : index
    %c0_6 = arith.constant 0 : index
    %10 = vector.load %arg4[%c0_5, %c0_6] : memref<512x512xbf16, #tpu.memory_space<vmem>>, vector<512x512xbf16>
    %cst_7 = arith.constant dense<0.000000e+00> : vector<256x512xf32>
    %11 = tpu.matmul %9, %10, %cst_7 {dimension_numbers = #tpu.dot_dimension_numbers<[1], [0], [0], [1], [0, 0, 1, 1], [], []>} : vector<256x512xbf16>, vector<512x512xbf16>, vector<256x512xf32> -> vector<256x512xf32>
    %c0_8 = arith.constant 0 : index
    %c0_9 = arith.constant 0 : index
    %12 = vector.load %arg5[%c0_8, %c0_9] : memref<1x512xf32, #tpu.memory_space<vmem>>, vector<1x512xf32>
    %13 = vector.broadcast %12 : vector<1x512xf32> to vector<256x512xf32>
    %14 = arith.addf %11, %13 : vector<256x512xf32>
    %cst_10 = arith.constant 0.000000e+00 : f32
    %15 = vector.broadcast %cst_10 : f32 to vector<256x512xf32>
    %16 = arith.maximumf %14, %15 : vector<256x512xf32>
    %17 = arith.truncf %16 : vector<256x512xf32> to vector<256x512xbf16>
    %c0_11 = arith.constant 0 : index
    %c0_12 = arith.constant 0 : index
    %18 = vector.load %arg6[%c0_11, %c0_12] : memref<512x128xbf16, #tpu.memory_space<vmem>>, vector<512x128xbf16>
    %cst_13 = arith.constant dense<0.000000e+00> : vector<256x128xf32>
    %19 = tpu.matmul %17, %18, %cst_13 {dimension_numbers = #tpu.dot_dimension_numbers<[1], [0], [0], [1], [0, 0, 1, 1], [], []>} : vector<256x512xbf16>, vector<512x128xbf16>, vector<256x128xf32> -> vector<256x128xf32>
    %c0_14 = arith.constant 0 : index
    %c0_15 = arith.constant 0 : index
    %20 = vector.load %arg7[%c0_14, %c0_15] : memref<1x128xf32, #tpu.memory_space<vmem>>, vector<1x128xf32>
    %21 = vector.broadcast %20 : vector<1x128xf32> to vector<256x128xf32>
    %22 = arith.addf %19, %21 : vector<256x128xf32>
    %23 = arith.mulf %22, %22 : vector<256x128xf32>
    %cst_16 = arith.constant dense<0.000000e+00> : vector<256xf32>
    %24 = vector.multi_reduction <add>, %23, %cst_16 [1] : vector<256x128xf32> to vector<256xf32>
    %25 = vector.shape_cast %24 : vector<256xf32> to vector<256x1xf32>
    %cst_17 = arith.constant 0.000000e+00 : f32
    %26 = vector.broadcast %cst_17 : f32 to vector<256x1xf32>
    %27 = arith.addf %25, %26 : vector<256x1xf32>
    %28 = math.rsqrt %27 : vector<256x1xf32>
    %cst_18 = arith.constant 3.000000e+00 : f32
    %29 = vector.broadcast %cst_18 : f32 to vector<256x1xf32>
    %30 = arith.mulf %29, %28 : vector<256x1xf32>
    %31 = vector.broadcast %30 : vector<256x1xf32> to vector<256x128xf32>
    %32 = arith.mulf %22, %31 : vector<256x128xf32>
    %c0_19 = arith.constant 0 : index
    %c0_20 = arith.constant 0 : index
    %33 = vector.load %arg8[%c0_19, %c0_20] : memref<256x128xf32, #tpu.memory_space<vmem>>, vector<256x128xf32>
    tpu.vector_store %arg8[%c0_19, %c0_20], %32 {strides = array<i32>} : memref<256x128xf32, #tpu.memory_space<vmem>>, vector<256x128xf32>,
    return
  }
  func.func @transform_0(%arg0: i32) -> (i32, i32) {
    %c0_i32 = arith.constant 0 : i32
    %c0_i32_0 = arith.constant 0 : i32
    return %arg0, %c0_i32 : i32, i32
  }
  func.func @transform_1(%arg0: i32) -> (i32, i32) {
    %c0_i32 = arith.constant 0 : i32
    %c0_i32_0 = arith.constant 0 : i32
    %c0_i32_1 = arith.constant 0 : i32
    return %c0_i32, %c0_i32_0 : i32, i32
  }
  func.func @transform_2(%arg0: i32) -> (i32, i32) {
    %c0_i32 = arith.constant 0 : i32
    %c0_i32_0 = arith.constant 0 : i32
    %c0_i32_1 = arith.constant 0 : i32
    return %c0_i32, %c0_i32_0 : i32, i32
  }
  func.func @transform_3(%arg0: i32) -> (i32, i32) {
    %c0_i32 = arith.constant 0 : i32
    %c0_i32_0 = arith.constant 0 : i32
    %c0_i32_1 = arith.constant 0 : i32
    return %c0_i32, %c0_i32_0 : i32, i32
  }
  func.func @transform_4(%arg0: i32) -> (i32, i32) {
    %c0_i32 = arith.constant 0 : i32
    %c0_i32_0 = arith.constant 0 : i32
    %c0_i32_1 = arith.constant 0 : i32
    return %c0_i32, %c0_i32_0 : i32, i32
  }
  func.func @transform_5(%arg0: i32) -> (i32, i32) {
    %c0_i32 = arith.constant 0 : i32
    %c0_i32_0 = arith.constant 0 : i32
    %c0_i32_1 = arith.constant 0 : i32
    return %c0_i32, %c0_i32_0 : i32, i32
  }
  func.func @transform_6(%arg0: i32) -> (i32, i32) {
    %c0_i32 = arith.constant 0 : i32
    %c0_i32_0 = arith.constant 0 : i32
    %c0_i32_1 = arith.constant 0 : i32
    return %c0_i32, %c0_i32_0 : i32, i32
  }
  func.func @transform_7(%arg0: i32) -> (i32, i32) {
    %c0_i32 = arith.constant 0 : i32
    %c0_i32_0 = arith.constant 0 : i32
    return %arg0, %c0_i32 : i32, i32
  }
}

</mosaic_0001>

<bundles_post_ra>
// kernel: embnetx_forward.1
= control target key start
LH: loop header
LB: loop body
LE: loop exit
PB: predicated region body
PF: predicated region fallthrough
CT: control target
= control target key end

     0   :  { %s6716_s0 = inlined_call_operand.hbm [shape: f32[1024,512], index: 0, kind: input, shape index: {}]   ;;  %s6717_s1 = inlined_call_operand.hbm [shape: f32[1,512], index: 1, kind: input, shape index: {}]   ;;  %s6718_s2 = inlined_call_operand.hbm [shape: f32[1,512], index: 2, kind: input, shape index: {}]   ;;  %s6719_s3 = inlined_call_operand.hbm [shape: bf16[512,512], index: 3, kind: input, shape index: {}]   ;;  %s6720_s4 = inlined_call_operand.hbm [shape: f32[1,512], index: 4, kind: input, shape index: {}]   ;;  %s6721_s5 = inlined_call_operand.hbm [shape: bf16[512,128], index: 5, kind: input, shape index: {}]   ;;  %s6722_s6 = inlined_call_operand.hbm [shape: f32[1,128], index: 6, kind: input, shape index: {}]   ;;  %s6723_s7 = inlined_call_operand.hbm [shape: f32[1024,128], index: 7, kind: output, shape index: {}]  }
   0x1   :  { %6761 = sst [smem:[#allocation51_spill]] %s6717_s1 }
   0x2   :  { %12 = vsyncpa [#allocation3], 0 }
   0x3   :  { %14 = vsyncpa [#allocation3 + $0x1], 0 }
   0x4   :  { %15 = vsyncpa [#allocation6], 0 }
   0x5   :  { %16 = vsyncpa [#allocation9], 0 }
   0x6   :  { %17 = vsyncpa [#allocation12], 0 }
   0x7   :  { %18 = vsyncpa [#allocation4], 0 }
   0x8   :  { %20 = vsyncpa [#allocation4 + $0x1], 0  ;;  %s4875_s24 = smov 0   ;;  %s4877_s25 = smov 0  }
   0x9   :  { %s4879_s26 = smov 0   ;;  %s4881_s27 = smov 0  }
   0xa LB: > { %s4819_s28 = smov [#allocation5]   ;;  %s4896_s30 = sadd.s32 4294967295, %s4817_s27   ;;  %s4817_s27 = sphi %s4881_s27, %s6873_s27   ;;  %s4813_s26 = sphi %s4879_s26, %s6872_s26   ;;  %s4809_s25 = sphi %s4877_s25, %s6871_s25   ;;  %s4805_s24 = sphi %s4875_s24, %s6870_s24  }
   0xb   : > { %s222_s29 = sshll.u32 %s4819_s28, 4  ;;  %p3740_p0 = scmp.ge.s32.totalorder %s4817_s27, 1  ;;  %s223_s29 = int_to_ptr.vmem [resolvable:$true] %s222_s29 }
   0xc   : > { %p6724_p1 = scmp.eq.s32.totalorder %s4896_s30, 0  ;;  %p209_p2 = scmp.lt.s32.totalorder %s4817_s27, 5 }
   0xd   : > { %s4820_s9 = smov [#allocation8]   ;;  %s4821_s12 = smov [#allocation11]  }
   0xe   : > { %p4901_p3 = pnand %p3740_p0, %p209_p2  ;;  %s243_s10 = sshll.u32 %s4820_s9, 4  ;;  %s4907_s10 = int_to_ptr.vmem [resolvable:$true] %s243_s10 }
   0xf   : > { %s267_s13 = sshll.u32 %s4821_s12, 4  ;;  %s4568_s15 = scalar_lea.vmem %s223_s29, 64  ;;  %s4915_s13 = int_to_ptr.vmem [resolvable:$true] %s267_s13 }
  0x10   : > { %s6762_s8 = scalar_select %p4901_p3, 1, 0 }
  0x11   : > { %p4182_p4 = pneg %p4901_p3  ;;  %p4569_p7 = scmp.ne.s32.totalorder %s223_s29, %s4568_s15 }
  0x12   : > { %p4576_p10 = scmp.lt.s32.totalorder %s223_s29, %s223_s29  ;;  %p4577_p11 = scmp.lt.s32.totalorder %s4568_s15, %s4568_s15 }
  0x13   : > { %p4911_p5 = pnand %p4182_p4, %p6724_p1 }
  0x14   : > { %p4578_p12 = por %p4577_p11, %p4576_p10 }
  0x15   : > { %p4919_p6 = pneg %p4911_p5 }
  0x17   : > { %p4571_p8 = pnand %p4569_p7, %p4919_p6 }
  0x19   : > { %p4572_p9 = pneg %p4571_p8 }
  0x1b   : > { %p4579_p13 = pnand %p4578_p12, %p4572_p9 }
  0x1d   : > { %4582 = shalt.err (!%p4579_p13)
}
  0x1e   : > { %s6765_s1 = sld [smem:[#allocation51_spill]]  ;;  %s4594_s18 = scalar_lea.vmem %s4907_s10, 16384 }
  0x1f   : > { %p4595_p0 = scmp.ne.s32.totalorder %s4907_s10, %s4594_s18  ;;  %p4602_p7 = scmp.lt.s32.totalorder %s4907_s10, %s4907_s10 }
  0x20   : > { %p4603_p8 = scmp.lt.s32.totalorder %s4594_s18, %s4594_s18 }
  0x21   : > { %p4597_p2 = pnand %p4595_p0, %p4919_p6 }
  0x22   : > { %p4604_p9 = por %p4603_p8, %p4602_p7 }
  0x23   : > { %p4598_p4 = pneg %p4597_p2 }
  0x24   : > { %4185 = dma.hbm_to_vmem [thread:$0]  (!%p4911_p5), %s6765_s1, 64, %s223_s29, [#allocation6]  }
  0x25   : > { %p4605_p10 = pnand %p4604_p9, %p4598_p4 }
  0x27   : > { %4608 = shalt.err (!%p4605_p10)
}
  0x28   : > { %s4822_s19 = smov 256   ;;  %s4823_s20 = smov 16  }
  0x29   : > { %4191 = dma.hbm_to_vmem [thread:$0]  (!%p4911_p5), %s6719_s3, 16384, %s4907_s10, [#allocation9], %s4822_s19, %s4822_s19, %s4823_s20  }
  0x2a   : > { %s4620_s23 = scalar_lea.vmem %s4915_s13, 4096  ;;  %p4628_p0 = scmp.lt.s32.totalorder %s4915_s13, %s4915_s13 }
  0x2b   : > { %p4621_p11 = scmp.ne.s32.totalorder %s4915_s13, %s4620_s23  ;;  %p4629_p2 = scmp.lt.s32.totalorder %s4620_s23, %s4620_s23 }
  0x2d   : > { %p4623_p12 = pnand %p4621_p11, %p4919_p6  ;;  %p4630_p4 = por %p4629_p2, %p4628_p0 }
  0x2f   : > { %p4624_p13 = pneg %p4623_p12 }
  0x31   : > { %p4631_p7 = pnand %p4630_p4, %p4624_p13 }
  0x33   : > { %4634 = shalt.err (!%p4631_p7)
}
  0x34   : > { %s4824_s28 = smov 64   ;;  %s4825_s29 = smov 4  }
  0x35   : > { %4197 = dma.hbm_to_vmem [thread:$0]  (!%p4911_p5), %s6721_s5, 4096, %s4915_s13, [#allocation12], %s4824_s28, %s4824_s28, %s4825_s29  }
  0x36   : > { %s4826_s10 = smov [#allocation7]   ;;  %s4827_s16 = smov [#allocation10]  }
  0x37   : > { %s233_s15 = sshll.u32 %s4826_s10, 4  ;;  %s257_s17 = sshll.u32 %s4827_s16, 4  ;;  %s234_s15 = int_to_ptr.vmem [resolvable:$true] %s233_s15  ;;  %s258_s17 = int_to_ptr.vmem [resolvable:$true] %s257_s17 }
  0x38   : > { %s4646_s18 = scalar_lea.vmem %s234_s15, 64  ;;  %p4654_p11 = scmp.lt.s32.totalorder %s234_s15, %s234_s15 }
  0x39   : > { %p4647_p8 = scmp.ne.s32.totalorder %s234_s15, %s4646_s18  ;;  %p4655_p12 = scmp.lt.s32.totalorder %s4646_s18, %s4646_s18 }
  0x3b   : > { %p4649_p9 = pnand %p4647_p8, %p4919_p6  ;;  %p4656_p13 = por %p4655_p12, %p4654_p11 }
  0x3d   : > { %p4650_p10 = pneg %p4649_p9 }
  0x3f   : > { %p4657_p0 = pnand %p4656_p13, %p4650_p10 }
  0x41   : > { %4660 = shalt.err (!%p4657_p0)
}
  0x42   : > { %4188 = dma.hbm_to_vmem [thread:$0]  (!%p4911_p5), %s6718_s2, 64, %s234_s15, [#allocation6]  }
  0x43   : > { %s4672_s13 = scalar_lea.vmem %s258_s17, 64  ;;  %p4680_p8 = scmp.lt.s32.totalorder %s258_s17, %s258_s17 }
  0x44   : > { %p4673_p2 = scmp.ne.s32.totalorder %s258_s17, %s4672_s13  ;;  %p4681_p9 = scmp.lt.s32.totalorder %s4672_s13, %s4672_s13 }
  0x46   : > { %p4675_p4 = pnand %p4673_p2, %p4919_p6  ;;  %p4682_p1 = por %p4681_p9, %p4680_p8 }
  0x48   : > { %p4676_p7 = pneg %p4675_p4 }
  0x4a   : > { %p4683_p3 = pnand %p4682_p1, %p4676_p7 }
  0x4c   : > { %4686 = shalt.err (!%p4683_p3)
}
  0x4d   : > { %4194 = dma.hbm_to_vmem [thread:$0]  (!%p4911_p5), %s6720_s4, 64, %s258_s17, [#allocation9]  }
  0x4e   : > { %s4828_s23 = smov [#allocation13]  }
  0x4f   : > { %s281_s28 = sshll.u32 %s4828_s23, 4  ;;  %s282_s28 = int_to_ptr.vmem [resolvable:$true] %s281_s28 }
  0x50   : > { %s4698_s29 = scalar_lea.vmem %s282_s28, 16  ;;  %s4705_s9 = scalar_lea.vmem %s282_s28, 32 }
  0x51   : > { %p4699_p10 = scmp.ne.s32.totalorder %s282_s28, %s4698_s29  ;;  %p4706_p13 = scmp.lt.s32.totalorder %s282_s28, %s282_s28 }
  0x52   : > { %p4707_p0 = scmp.lt.s32.totalorder %s4705_s9, %s4698_s29 }
  0x53   : > { %p4701_p11 = pnand %p4699_p10, %p4919_p6 }
  0x54   : > { %p4708_p1 = por %p4707_p0, %p4706_p13 }
  0x55   : > { %p4702_p12 = pneg %p4701_p11 }
  0x57   : > { %p4709_p3 = pnand %p4708_p1, %p4702_p12 }
  0x59   : > { %4712 = shalt.err (!%p4709_p3)
}
  0x5a   : > { %4200 = dma.hbm_to_vmem [thread:$0]  (!%p4911_p5), %s6722_s6, 16, %s282_s28, [#allocation12]  }
  0x5b   : > { %s3739_s14 = sadd.s32 4294967294, %s4817_s27   ;;  %s4977_s11 = sadd.s32 1, %s4817_s27  }
  0x5c   : > { %s30_s15 = ssub.s32 %s4817_s27, %s4977_s11  ;;  %s33_s16 = sadd.s32 1, %s4813_s26 }
  0x5d   : > { %p31_p6 = scmp.eq.s32.totalorder %s30_s15, 0  ;;  %p40_p2 = scmp.ne.s32.totalorder %s4813_s26, %s4809_s25 }
  0x5e   : > { %p41_p4 = scmp.eq.s32.totalorder %s4817_s27, 0  ;;  %p46_p7 = scmp.ne.s32.totalorder %s4809_s25, %s4805_s24 }
  0x5f   : > { %s4988_s17 = scalar_select %p31_p6, %s4813_s26, %s33_s16  }
  0x60   : > { %p4990_p8 = por %p41_p4, %p40_p2  ;;  %p6767_p9 = scmp.eq.s32.totalorder %s4896_s30, 0 }
  0x61   : > { %p196_p10 = scmp.eq.s32.totalorder %s4896_s30, 3  ;;  %p202_p11 = scmp.eq.s32.totalorder %s3739_s14, 3 }
  0x62   : > { %p4996_p5 = por %p6767_p9, %p46_p7  ;;  %p4215_p12 = scmp.lt.s32.totalorder %s4817_s27, 4 }
  0x63   : > { %s292_s20 = sand.u32 1, %s4813_s26   ;;  %p5003_p13 = por %p196_p10, %p40_p2 }
  0x64   : > { %s6768_s19 = scalar_select %p4996_p5, 1, 0 }
  0x65   : > { %s6769_s13 = scalar_select %p5003_p13, 1, 0 }
  0x66   : > { %p5007_p0 = por %p202_p11, %p46_p7  ;;  %s3748_s22 = sshll.u32 %s292_s20, 10 }
  0x67   : > { %s3928_s23 = sshll.u32 %s4817_s27, 14  ;;  %s296_s12 = scalar_lea.vmem [#allocation2], %s3748_s22 }
  0x68   : > { %s6770_s21 = scalar_select %p5007_p0, 1, 0 }
  0x69   : > { %s5015_s9 = scalar_lea.hbm %s6716_s0, %s3928_s23  ;;  %s304_s10 = sshll.u32 %s296_s12, 4  ;;  %s5017_s10 = int_to_ptr.vmem [resolvable:$true] %s304_s10 }
  0x6a   : > { %p5021_p1 = pnand %p4215_p12, %p4990_p8  ;;  %s5025_s15 = scalar_lea.sflag [#allocation3], %s292_s20 }
  0x6b   : > { %s4713_s16 = scalar_lea.hbm %s5015_s9, 16384  ;;  %s4718_s22 = scalar_lea.hbm %s6716_s0, 65536 }
  0x6c   : > { %p4714_p3 = scmp.ne.s32.totalorder %s5015_s9, %s4713_s16  ;;  %p4715_p6 = pneg %p5021_p1 }
  0x6d   : > { %p4719_p7 = scmp.lt.s32.totalorder %s5015_s9, %s6716_s0  ;;  %p4720_p8 = scmp.lt.s32.totalorder %s4718_s22, %s4713_s16 }
  0x6e   : > { %p4716_p2 = pnand %p4715_p6, %p4714_p3 }
  0x6f   : > { %p4721_p9 = por %p4720_p8, %p4719_p7 }
  0x70   : > { %p4717_p4 = pneg %p4716_p2 }
  0x72   : > { %p4722_p10 = pnand %p4721_p9, %p4717_p4 }
  0x74   : > { %4725 = shalt.err (!%p4722_p10)
}
  0x75   : > { %s4726_s18 = scalar_lea.vmem %s5017_s10, 16384  ;;  %s4829_s20 = smov [#allocation2]  }
  0x76   : > { %p4727_p11 = scmp.ne.s32.totalorder %s5017_s10, %s4726_s18  ;;  %s4731_s1 = sshll.u32 %s4829_s20, 4  ;;  %s4732_s1 = int_to_ptr.vmem [resolvable:$false] %s4731_s1 }
  0x77   : > { %s4733_s23 = scalar_lea.vmem %s4732_s1, 32768  ;;  %p4734_p2 = scmp.lt.s32.totalorder %s5017_s10, %s4732_s1 }
  0x78   : > { %p4729_p12 = pnand %p4727_p11, %p4715_p6  ;;  %p4735_p0 = scmp.lt.s32.totalorder %s4733_s23, %s4726_s18 }
  0x7a   : > { %p4730_p3 = pneg %p4729_p12  ;;  %p4736_p13 = por %p4735_p0, %p4734_p2 }
  0x7c   : > { %p4737_p5 = pnand %p4736_p13, %p4730_p3 }
  0x7e   : > { %4740 = shalt.err (!%p4737_p5)
}
  0x7f   : > { %s4830_s16 = smov 512   ;;  %s4831_s28 = smov 32  }
  0x80   : > { %4204 = dma.hbm_to_vmem [thread:$0]  (!%p5021_p1), %s5015_s9, 16384, %s5017_s10, %s5025_s15, %s4830_s16, %s4830_s16, %s4831_s28  }
  0x81   : > { %p6772_p6 = scmp.ne.s32.totalorder %s6762_s8, 0 }
  0x83   : > { %316 = sbr.rel (%p6772_p6) target bundleno = 1046 (0x416), region = 48 }
  0x88   : > { %s5049_s22 = sand.u32 1, %s4809_s25   ;;  %p6773_p5 = scmp.ne.s32.totalorder %s6768_s19, 0 }
  0x89   : > { %s3753_s1 = sshll.u32 %s5049_s22, 10  ;;  %s319_s29 = scalar_lea.sflag [#allocation3], %s5049_s22 }
  0x8a   : > { %s5053_s12 = scalar_lea.vmem [#allocation2], %s3753_s1 }
  0x8b   : > { %4784 = dma.done.wait (%p6773_p5), %s319_s29, 16384  }
  0x8c   : > { %4786 = vsyncadd (%p6773_p5), %s319_s29, 4294950912  ;;  %p6774_p13 = scmp.eq.s32.totalorder %s4896_s30, 0 }
  0x8e   : > { %4788 = dma.done.wait (%p6774_p13), [#allocation6], 128   ;;  %p6775_p0 = pmov %p6774_p13 }
  0x90   : > { %4790 = vsyncadd (%p6775_p0), [#allocation6], 4294967168  ;;  %p6776_p1 = pmov %p6775_p0 }
  0x91   : > { %p6777_p4 = pmov %p6775_p0 }
  0x92   : > { %4792 = dma.done.wait (%p6776_p1), [#allocation9], 16448  }
  0x93   : > { %4794 = vsyncadd (%p6777_p4), [#allocation9], 4294950848  ;;  %p6778_p7 = pmov %p6775_p0 }
  0x94   : > { %p6779_p8 = pmov %p6775_p0 }
  0x95   : > { %4796 = dma.done.wait (%p6778_p7), [#allocation12], 4112  }
  0x96   : > { %4798 = vsyncadd (%p6779_p8), [#allocation12], 4294963184  ;;  %v4269_v0 = vld [vmem:[#allocation8 + $0xe4] ss:$16 sps:$4 sm:$0xff]   ;;  %v4273_v2 = vld [vmem:[#allocation8 + $0xe0] ss:$16 sps:$4 sm:$0xff]   ;;  %v510_v37 = vlaneseq }
  0x97   : > { %v4271_v1 = vld [vmem:[#allocation8 + $0x2e4] ss:$16 sps:$4 sm:$0xff]   ;;  %1790 = vmatprep.subr.bf16.mxu0 %v4269_v0  ;;  %v4274_v3 = vld [vmem:[#allocation8 + $0x2e0] ss:$16 sps:$4 sm:$0xff]   ;;  %v508_v55 = vld [vmem:[#allocation5] sm:$0xf] }
  0x98   : > { %1983 = vmatprep.subr.bf16.mxu1 %v4271_v1  ;;  %v4275_v4 = vld [vmem:[#allocation8 + $0xc4] ss:$16 sps:$4 sm:$0xff]   ;;  %1791 = vmatpush1.bf16.msra.mxu0 %v4273_v2  ;;  %v4279_v6 = vld [vmem:[#allocation8 + $0xc0] ss:$16 sps:$4 sm:$0xff]   ;;  %v511_v42 = vshrl.u32 %v510_v37, 7  ;;  %v380_v63 = vld [vmem:[%s5053_s12] sm:$0xff] }
  0x99   : > { %1984 = vmatpush1.bf16.msra.mxu1 %v4274_v3  ;;  %v4277_v5 = vld [vmem:[#allocation8 + $0x2c4] ss:$16 sps:$4 sm:$0xff]   ;;  %1792 = vmatprep.subr.bf16.mxu0 %v4275_v4  ;;  %v4280_v7 = vld [vmem:[#allocation8 + $0x2c0] ss:$16 sps:$4 sm:$0xff]   ;;  %v658_v56 = vld [vmem:[#allocation7] sm:$0xf] }
  0x9a   : > { %1985 = vmatprep.subr.bf16.mxu1 %v4277_v5  ;;  %v4281_v8 = vld [vmem:[#allocation8 + $0xa4] ss:$16 sps:$4 sm:$0xff]   ;;  %v4285_v10 = vld [vmem:[#allocation8 + $0xa0] ss:$16 sps:$4 sm:$0xff]   ;;  %v5071_v47 = vsub.s32 1, %v511_v42  ;;  %v5073_v48 = vsub.s32 3, %v511_v42 }
  0x9b   : > { %v4283_v9 = vld [vmem:[#allocation8 + $0x2a4] ss:$16 sps:$4 sm:$0xff]   ;;  %v4286_v11 = vld [vmem:[#allocation8 + $0x2a0] ss:$16 sps:$4 sm:$0xff]   ;;  %v5075_v50 = vsub.s32 0, %v511_v42  ;;  %v5079_v57 = vsub.s32 2, %v511_v42 }
  0x9c   : > { %1793 = vmatpush1.bf16.msra.mxu0 %v4279_v6  ;;  %v4287_v12 = vld [vmem:[#allocation8 + $0x84] ss:$16 sps:$4 sm:$0xff]   ;;  %v4291_v14 = vld [vmem:[#allocation8 + $0x80] ss:$16 sps:$4 sm:$0xff]   ;;  %6780 = vst [vmem:[#allocation20_spill] sm:$0xff] %v5071_v47  ;;  %6781 = vst [vmem:[#allocation21_spill] sm:$0xff] %v5073_v48  ;;  %v5082_v58 = vrot.slane %v508_v55, %v5071_v47  ;;  %v5085_v59 = vrot.slane %v658_v56, %v5071_v47  ;;  %v5090_v62 = vrot.slane %v508_v55, %v5073_v48 }
  0x9d   : > { %1986 = vmatpush1.bf16.msra.mxu1 %v4280_v7  ;;  %1794 = vmatprep.subr.bf16.mxu0 %v4281_v8  ;;  %v4289_v13 = vld [vmem:[#allocation8 + $0x284] ss:$16 sps:$4 sm:$0xff]   ;;  %v4292_v15 = vld [vmem:[#allocation8 + $0x280] ss:$16 sps:$4 sm:$0xff]   ;;  %6782 = vst [vmem:[#allocation22_spill] sm:$0xff] %v5075_v50  ;;  %6783 = vst [vmem:[#allocation23_spill] sm:$0xff] %v5079_v57  ;;  %v5094_v2 = vrot.slane %v658_v56, %v5073_v48  ;;  %v5097_v3 = vrot.slane %v508_v55, %v5075_v50 }
  0x9e   : > { %1987 = vmatprep.subr.bf16.mxu1 %v4283_v9  ;;  %v4293_v16 = vld [vmem:[#allocation8 + $0x64] ss:$16 sps:$4 sm:$0xff]   ;;  %v4297_v18 = vld [vmem:[#allocation8 + $0x60] ss:$16 sps:$4 sm:$0xff]   ;;  %v384_v8 = vld [vmem:[%s5053_s12 + $0x20] sm:$0xff]  ;;  %s3760_s8 = sshll.u32 %s5049_s22, 8 }
  0x9f   : > { %v4295_v17 = vld [vmem:[#allocation8 + $0x264] ss:$16 sps:$4 sm:$0xff]   ;;  %v4298_v19 = vld [vmem:[#allocation8 + $0x260] ss:$16 sps:$4 sm:$0xff]   ;;  %v530_v9 = vmul.f32 %v5097_v3, %v380_v63  ;;  %v394_v63 = vld [vmem:[%s5053_s12 + $0x70] sm:$0xff]  ;;  %s6602_s19 = scalar_lea.vmem [#allocation14], %s3760_s8 }
  0xa0   : > { %1795 = vmatpush1.bf16.msra.mxu0 %v4285_v10  ;;  %v4299_v20 = vld [vmem:[#allocation8 + $0x44] ss:$16 sps:$4 sm:$0xff]   ;;  %v4303_v22 = vld [vmem:[#allocation8 + $0x40] ss:$16 sps:$4 sm:$0xff]   ;;  %v5106_v10 = vrot.slane %v658_v56, %v5075_v50  ;;  %s3929_s9 = sshll.u32 %s4896_s30, 12  ;;  %s3609_s10 = sshll.u32 %s6602_s19, 4  ;;  %s6672_s10 = int_to_ptr.vmem [resolvable:$true] %s3609_s10 }
  0xa1   : > { %1988 = vmatpush1.bf16.msra.mxu1 %v4286_v11  ;;  %1796 = vmatprep.subr.bf16.mxu0 %v4287_v12  ;;  %v4301_v21 = vld [vmem:[#allocation8 + $0x244] ss:$16 sps:$4 sm:$0xff]   ;;  %v4304_v23 = vld [vmem:[#allocation8 + $0x240] ss:$16 sps:$4 sm:$0xff]   ;;  %v382_v11 = vld [vmem:[%s5053_s12 + $0x10] sm:$0xff]  ;;  %v5110_v12 = vrot.slane %v508_v55, %v5079_v57  ;;  %s6670_s18 = scalar_lea.hbm %s6723_s7, %s3929_s9  ;;  %s3596_s20 = scalar_lea.sflag [#allocation4], %s5049_s22 }
  0xa2   : > { %1989 = vmatprep.subr.bf16.mxu1 %v4289_v13  ;;  %v4305_v24 = vld [vmem:[#allocation8 + $0x24] ss:$16 sps:$4 sm:$0xff]   ;;  %v4309_v26 = vld [vmem:[#allocation8 + $0x20] ss:$16 sps:$4 sm:$0xff]   ;;  %s4741_s23 = scalar_lea.vmem %s6672_s10, 4096  ;;  %p6868_p10 = scmp.ne.s32.totalorder %s6769_s13, 0 }
  0xa3   : > { %v4307_v25 = vld [vmem:[#allocation8 + $0x224] ss:$16 sps:$4 sm:$0xff]   ;;  %v4310_v27 = vld [vmem:[#allocation8 + $0x220] ss:$16 sps:$4 sm:$0xff]   ;;  %p4742_p9 = scmp.ne.s32.totalorder %s6672_s10, %s4741_s23  ;;  %s4832_s30 = smov [#allocation14]  }
  0xa4   : > { %1797 = vmatpush1.bf16.msra.mxu0 %v4291_v14  ;;  %v4311_v28 = vld [vmem:[#allocation8 + $0x4] ss:$16 sps:$4 sm:$0xff]   ;;  %v4315_v30 = vld [vmem:[#allocation8] ss:$16 sps:$4 sm:$0xff]   ;;  %s4745_s16 = sshll.u32 %s4832_s30, 4  ;;  %s4746_s16 = int_to_ptr.vmem [resolvable:$false] %s4745_s16 }
  0xa5   : > { %1990 = vmatpush1.bf16.msra.mxu1 %v4292_v15  ;;  %1798 = vmatprep.subr.bf16.mxu0 %v4293_v16  ;;  %v4313_v29 = vld [vmem:[#allocation8 + $0x204] ss:$16 sps:$4 sm:$0xff]   ;;  %v4316_v31 = vld [vmem:[#allocation8 + $0x200] ss:$16 sps:$4 sm:$0xff]   ;;  %p4743_p11 = pnand %p4742_p9, %p6868_p10  ;;  %s4747_s28 = scalar_lea.vmem %s4746_s16, 8192 }
  0xa6   : > { %1991 = vmatprep.subr.bf16.mxu1 %v4295_v17  ;;  %v4317_v32 = vld [vmem:[#allocation8 + $0x1e4] ss:$16 sps:$4 sm:$0xff]   ;;  %v4321_v34 = vld [vmem:[#allocation8 + $0x1e0] ss:$16 sps:$4 sm:$0xff]   ;;  %p4748_p3 = scmp.lt.s32.totalorder %s6672_s10, %s4746_s16  ;;  %p4749_p2 = scmp.lt.s32.totalorder %s4747_s28, %s4741_s23 }
  0xa7   : > { %v4319_v33 = vld [vmem:[#allocation8 + $0x3e4] ss:$16 sps:$4 sm:$0xff]   ;;  %v4322_v35 = vld [vmem:[#allocation8 + $0x3e0] ss:$16 sps:$4 sm:$0xff]   ;;  %p4744_p12 = pneg %p4743_p11 }
  0xa8   : > { %1799 = vmatpush1.bf16.msra.mxu0 %v4297_v18  ;;  %v4323_v36 = vld [vmem:[#allocation8 + $0x1c4] ss:$16 sps:$4 sm:$0xff]   ;;  %v4327_v39 = vld [vmem:[#allocation8 + $0x1c0] ss:$16 sps:$4 sm:$0xff]   ;;  %v386_v18 = vld [vmem:[%s5053_s12 + $0x30] sm:$0xff]  ;;  %p4750_p6 = por %p4749_p2, %p4748_p3 }
  0xa9   : > { %1992 = vmatpush1.bf16.msra.mxu1 %v4298_v19  ;;  %1800 = vmatprep.subr.bf16.mxu0 %v4299_v20  ;;  %v4325_v38 = vld [vmem:[#allocation8 + $0x3c4] ss:$16 sps:$4 sm:$0xff]   ;;  %v4328_v40 = vld [vmem:[#allocation8 + $0x3c0] ss:$16 sps:$4 sm:$0xff]  }
  0xaa   : > { %1993 = vmatprep.subr.bf16.mxu1 %v4301_v21  ;;  %v4329_v41 = vld [vmem:[#allocation8 + $0x1a4] ss:$16 sps:$4 sm:$0xff]   ;;  %v4333_v44 = vld [vmem:[#allocation8 + $0x1a0] ss:$16 sps:$4 sm:$0xff]   ;;  %p4751_p5 = pnand %p4750_p6, %p4744_p12 }
  0xab   : > { %v4331_v43 = vld [vmem:[#allocation8 + $0x3a4] ss:$16 sps:$4 sm:$0xff]   ;;  %v4334_v45 = vld [vmem:[#allocation8 + $0x3a0] ss:$16 sps:$4 sm:$0xff]  }
  0xac   : > { %1801 = vmatpush1.bf16.msra.mxu0 %v4303_v22  ;;  %v4335_v46 = vld [vmem:[#allocation8 + $0x184] ss:$16 sps:$4 sm:$0xff]   ;;  %v4339_v51 = vld [vmem:[#allocation8 + $0x180] ss:$16 sps:$4 sm:$0xff]   ;;  %v534_v22 = vmul.f32 %v5097_v3, %v384_v8 }
  0xad   : > { %1994 = vmatpush1.bf16.msra.mxu1 %v4304_v23  ;;  %1802 = vmatprep.subr.bf16.mxu0 %v4305_v24  ;;  %v4337_v49 = vld [vmem:[#allocation8 + $0x384] ss:$16 sps:$4 sm:$0xff]   ;;  %v4340_v52 = vld [vmem:[#allocation8 + $0x380] ss:$16 sps:$4 sm:$0xff]   ;;  %v5119_v23 = vrot.slane %v658_v56, %v5079_v57 }
  0xae   : > { %1995 = vmatprep.subr.bf16.mxu1 %v4307_v25  ;;  %v381_v53 = vld [vmem:[%s5053_s12 + $0x8] sm:$0xff]  ;;  %v383_v60 = vld [vmem:[%s5053_s12 + $0x18] sm:$0xff] }
  0xaf   : > { %v385_v54 = vld [vmem:[%s5053_s12 + $0x28] sm:$0xff]  ;;  %v387_v61 = vld [vmem:[%s5053_s12 + $0x38] sm:$0xff]  ;;  %v531_v4 = vmul.f32 %v5082_v58, %v381_v53  ;;  %v533_v6 = vmul.f32 %v5090_v62, %v383_v60 }
  0xb0   : > { %1803 = vmatpush1.bf16.msra.mxu0 %v4309_v26  ;;  %v4341_v0 = vld [vmem:[#allocation8 + $0x164] ss:$16 sps:$4 sm:$0xff]   ;;  %v535_v5 = vmul.f32 %v5082_v58, %v385_v54  ;;  %v537_v7 = vmul.f32 %v5090_v62, %v387_v61  ;;  %v4345_v13 = vld [vmem:[#allocation8 + $0x160] ss:$16 sps:$4 sm:$0xff]  }
  0xb1   : > { %1996 = vmatpush1.bf16.msra.mxu1 %v4310_v27  ;;  %1804 = vmatprep.subr.bf16.mxu0 %v4311_v28  ;;  %v4343_v1 = vld [vmem:[#allocation8 + $0x364] ss:$16 sps:$4 sm:$0xff]   ;;  %v4346_v14 = vld [vmem:[#allocation8 + $0x360] ss:$16 sps:$4 sm:$0xff]   ;;  %v681_v15 = vadd.f32 %v5085_v59, %v531_v4  ;;  %v683_v17 = vadd.f32 %v5094_v2, %v533_v6 }
  0xb2   : > { %1997 = vmatprep.subr.bf16.mxu1 %v4313_v29  ;;  %v685_v16 = vadd.f32 %v5085_v59, %v535_v5  ;;  %v4347_v19 = vld [vmem:[#allocation8 + $0x144] ss:$16 sps:$4 sm:$0xff]   ;;  %v687_v21 = vadd.f32 %v5094_v2, %v537_v7  ;;  %v4351_v25 = vld [vmem:[#allocation8 + $0x140] ss:$16 sps:$4 sm:$0xff]  }
  0xb3   : > { %v4349_v20 = vld [vmem:[#allocation8 + $0x344] ss:$16 sps:$4 sm:$0xff]   ;;  %v4352_v26 = vld [vmem:[#allocation8 + $0x340] ss:$16 sps:$4 sm:$0xff]   ;;  %v809_v27 = vmax.f32 %v681_v15, 0.0  ;;  %v811_v29 = vmax.f32 %v683_v17, 0.0  ;;  %v544_v17 = vmul.f32 %v5110_v12, %v394_v63 }
  0xb4   : > { %1805 = vmatpush1.bf16.msra.mxu0 %v4315_v30  ;;  %v389_v24 = vld [vmem:[%s5053_s12 + $0x48] sm:$0xff]  ;;  %v813_v28 = vmax.f32 %v685_v16, 0.0  ;;  %v532_v30 = vmul.f32 %v5110_v12, %v382_v11  ;;  %v439_v50 = vld [vmem:[%s5053_s12 + $0x1d8] sm:$0xff] }
  0xb5   : > { %1998 = vmatpush1.bf16.msra.mxu1 %v4316_v31  ;;  %1806 = vmatprep.subr.bf16.mxu0 %v4317_v32  ;;  %v393_v31 = vld [vmem:[%s5053_s12 + $0x68] sm:$0xff]  ;;  %v391_v32 = vld [vmem:[%s5053_s12 + $0x58] sm:$0xff] }
  0xb6   : > { %1999 = vmatprep.subr.bf16.mxu1 %v4319_v33  ;;  %v4353_v33 = vld [vmem:[#allocation8 + $0x124] ss:$16 sps:$4 sm:$0xff]   ;;  %v5127_v37 = vpack.c.bf16 %v813_v28, %v809_v27  ;;  %v541_v53 = vmul.f32 %v5090_v62, %v391_v32  ;;  %v4357_v54 = vld [vmem:[#allocation8 + $0x120] ss:$16 sps:$4 sm:$0xff]   ;;  %v4367_v27 = vld [vmem:[#allocation8 + $0xec] ss:$16 sps:$4 sm:$0xff]  }
  0xb7   : > { %v4355_v42 = vld [vmem:[#allocation8 + $0x324] ss:$16 sps:$4 sm:$0xff]   ;;  %v4358_v55 = vld [vmem:[#allocation8 + $0x320] ss:$16 sps:$4 sm:$0xff]   ;;  %v4370_v28 = vld [vmem:[#allocation8 + $0x2ec] ss:$16 sps:$4 sm:$0xff]  }
  0xb8   : > { %1807 = vmatpush2.bf16.msra.mxu0 %v4321_v34  ;;  %v815_v34 = vmax.f32 %v687_v21, 0.0  ;;  %1822 = vmatprep.mubr.bf16.mxu0 %v5127_v37  ;;  %v397_v5 = vld [vmem:[%s5053_s12 + $0x88] sm:$0xff] }
  0xb9   : > { %2000 = vmatpush2.bf16.msra.mxu1 %v4322_v35  ;;  %1808 = vmatprep.subr.bf16.mxu0 %v4323_v36  ;;  %v536_v35 = vmul.f32 %v5110_v12, %v386_v18  ;;  %v395_v36 = vld [vmem:[%s5053_s12 + $0x78] sm:$0xff]  ;;  %v441_v57 = vld [vmem:[%s5053_s12 + $0x1e8] sm:$0xff] }
  0xba   : > { %2001 = vmatprep.subr.bf16.mxu1 %v4325_v38  ;;  %v5130_v38 = vadd.f32 %v5106_v10, %v530_v9  ;;  %v545_v56 = vmul.f32 %v5090_v62, %v395_v36  ;;  %v4361_v6 = vld [vmem:[#allocation8 + $0x304] ss:$16 sps:$4 sm:$0xff]   ;;  %v691_v9 = vadd.f32 %v5094_v2, %v541_v53  ;;  %v396_v36 = vld [vmem:[%s5053_s12 + $0x80] sm:$0xff] }
  0xbb   : > { %v399_v18 = vld [vmem:[%s5053_s12 + $0x98] sm:$0xff]  ;;  %v546_v63 = vmul.f32 %v5097_v3, %v396_v36 }
  0xbc   : > { %1809 = vmatpush2.bf16.msra.mxu0 %v4327_v39  ;;  %v539_v39 = vmul.f32 %v5082_v58, %v389_v24  ;;  %v808_v7 = vmax.f32 %v5130_v38, 0.0  ;;  %v695_v11 = vadd.f32 %v5094_v2, %v545_v56  ;;  %v547_v24 = vmul.f32 %v5082_v58, %v397_v5  ;;  %v400_v38 = vld [vmem:[%s5053_s12 + $0xa0] sm:$0xff] }
  0xbd   : > { %2002 = vmatpush2.bf16.msra.mxu1 %v4328_v40  ;;  %1810 = vmatprep.subr.bf16.mxu0 %v4329_v41  ;;  %v388_v40 = vld [vmem:[%s5053_s12 + $0x40] sm:$0xff]  ;;  %v819_v32 = vmax.f32 %v691_v9, 0.0 }
  0xbe   : > { %2003 = vmatprep.subr.bf16.mxu1 %v4331_v43  ;;  %v392_v41 = vld [vmem:[%s5053_s12 + $0x60] sm:$0xff]  ;;  %v5135_v43 = vpack.c.bf16 %v815_v34, %v811_v29  ;;  %v538_v60 = vmul.f32 %v5097_v3, %v388_v40  ;;  %v697_v34 = vadd.f32 %v5085_v59, %v547_v24 }
  0xbf   : > { %v542_v61 = vmul.f32 %v5097_v3, %v392_v41  ;;  %v4371_v9 = vld [vmem:[#allocation8 + $0xc8] ss:$16 sps:$4 sm:$0xff]  }
  0xc0   : > { %1811 = vmatpush2.bf16.msra.mxu0 %v4333_v44  ;;  %v684_v44 = vadd.f32 %v5106_v10, %v534_v22  ;;  %2015 = vmatprep.mubr.bf16.mxu1 %v5135_v43  ;;  %v688_v21 = vadd.f32 %v5106_v10, %v538_v60  ;;  %v825_v5 = vmax.f32 %v697_v34, 0.0 }
  0xc1   : > { %2004 = vmatpush2.bf16.msra.mxu1 %v4334_v45  ;;  %1812 = vmatprep.subr.bf16.mxu0 %v4335_v46  ;;  %v682_v45 = vadd.f32 %v5119_v23, %v532_v30  ;;  %v390_v46 = vld [vmem:[%s5053_s12 + $0x50] sm:$0xff]  ;;  %v692_v22 = vadd.f32 %v5106_v10, %v542_v61  ;;  %v694_v30 = vadd.f32 %v5119_v23, %v544_v17  ;;  %v411_v17 = vld [vmem:[%s5053_s12 + $0xf8] sm:$0xff] }
  0xc2   : > { %2005 = vmatprep.subr.bf16.mxu1 %v4337_v49  ;;  %v686_v49 = vadd.f32 %v5119_v23, %v536_v35  ;;  %v540_v4 = vmul.f32 %v5110_v12, %v390_v46  ;;  %v812_v8 = vmax.f32 %v684_v44, 0.0  ;;  %v549_v35 = vmul.f32 %v5090_v62, %v399_v18  ;;  %v402_v46 = vld [vmem:[%s5053_s12 + $0xb0] sm:$0xff] }
  0xc3   : > { %v822_v60 = vmax.f32 %v694_v30, 0.0 }
  0xc4   : > { %1813 = vmatpush2.bf16.msra.mxu0 %v4339_v51  ;;  %v543_v51 = vmul.f32 %v5082_v58, %v393_v31  ;;  %v814_v15 = vmax.f32 %v686_v49, 0.0  ;;  %v690_v29 = vadd.f32 %v5119_v23, %v540_v4  ;;  %v5171_v40 = vpack.c.bf16 %v812_v8, %v808_v7  ;;  %v4373_v4 = vld [vmem:[#allocation8 + $0xcc] ss:$16 sps:$4 sm:$0xff]   ;;  %v407_v8 = vld [vmem:[%s5053_s12 + $0xd8] sm:$0xff] }
  0xc5   : > { %2006 = vmatpush2.bf16.msra.mxu1 %v4340_v52  ;;  %1814 = vmatprep.subr.bf16.mxu0 %v4341_v0  ;;  %v689_v52 = vadd.f32 %v5085_v59, %v539_v39  ;;  %v4359_v0 = vld [vmem:[#allocation8 + $0x104] ss:$16 sps:$4 sm:$0xff]   ;;  %v398_v39 = vld [vmem:[%s5053_s12 + $0x90] sm:$0xff]  ;;  %v699_v53 = vadd.f32 %v5094_v2, %v549_v35  ;;  %v550_v7 = vmul.f32 %v5097_v3, %v400_v38 }
  0xc6   : > { %2007 = vmatprep.subr.bf16.mxu1 %v4343_v1  ;;  %v693_v1 = vadd.f32 %v5085_v59, %v543_v51  ;;  %v816_v51 = vmax.f32 %v688_v21, 0.0  ;;  %v818_v56 = vmax.f32 %v690_v29, 0.0  ;;  %v4379_v21 = vld [vmem:[#allocation8 + $0xac] ss:$16 sps:$4 sm:$0xff]  }
  0xc7   : > { %v817_v16 = vmax.f32 %v689_v52, 0.0  ;;  %v820_v52 = vmax.f32 %v692_v22, 0.0  ;;  %v5210_v30 = vadd.f32 %v5106_v10, %v550_v7  ;;  %v410_v38 = vld [vmem:[%s5053_s12 + $0xf0] sm:$0xff]  ;;  %v419_v7 = vld [vmem:[%s5053_s12 + $0x138] sm:$0xff] }
  0xc8   : > { %1815 = vmatpush2.bf16.msra.mxu0 %v4345_v13  ;;  %v401_v13 = vld [vmem:[%s5053_s12 + $0xa8] sm:$0xff]  ;;  %v5198_v24 = vpack.c.bf16 %v822_v60, %v818_v56  ;;  %v4385_v60 = vld [vmem:[#allocation8 + $0x8c] ss:$16 sps:$4 sm:$0xff]  }
  0xc9   : > { %2008 = vmatpush2.bf16.msra.mxu1 %v4346_v14  ;;  %1816 = vmatprep.subr.bf16.mxu0 %v4347_v19  ;;  %v810_v14 = vmax.f32 %v682_v45, 0.0  ;;  %v4363_v19 = vld [vmem:[#allocation8 + $0x100] ss:$16 sps:$4 sm:$0xff]   ;;  %v551_v31 = vmul.f32 %v5082_v58, %v401_v13  ;;  %v4376_v13 = vld [vmem:[#allocation8 + $0x2cc] ss:$16 sps:$4 sm:$0xff]   ;;  %v5195_v18 = vpack.c.bf16 %v820_v52, %v816_v51 }
  0xca   : > { %2009 = vmatprep.subr.bf16.mxu1 %v4349_v20  ;;  %v821_v20 = vmax.f32 %v693_v1, 0.0 }
  0xcb   : > { %v5173_v41 = vpack.c.bf16 %v814_v15, %v810_v14  ;;  %v701_v44 = vadd.f32 %v5085_v59, %v551_v31  ;;  %v548_v14 = vmul.f32 %v5110_v12, %v398_v39  ;;  %v552_v15 = vmul.f32 %v5110_v12, %v402_v46  ;;  %v413_v39 = vld [vmem:[%s5053_s12 + $0x108] sm:$0xff] }
  0xcc   : > { %1817 = vmatpush2.bf16.msra.mxu0 %v4351_v25  ;;  %v403_v25 = vld [vmem:[%s5053_s12 + $0xb8] sm:$0xff]  ;;  %v5178_v49 = vpack.c.bf16 %v821_v20, %v817_v16  ;;  %v561_v31 = vmul.f32 %v5090_v62, %v411_v17 }
  0xcd   : > { %2010 = vmatpush2.bf16.msra.mxu1 %v4352_v26  ;;  %1818 = vmatprep.subr.bf16.mxu0 %v4353_v33  ;;  %v4364_v26 = vld [vmem:[#allocation8 + $0x300] ss:$16 sps:$4 sm:$0xff]   ;;  %v823_v33 = vmax.f32 %v695_v11, 0.0  ;;  %v553_v45 = vmul.f32 %v5090_v62, %v403_v25  ;;  %v4374_v11 = vld [vmem:[#allocation8 + $0x2c8] ss:$16 sps:$4 sm:$0xff]   ;;  %v5201_v25 = vadd.f32 %v5106_v10, %v546_v63  ;;  %v698_v34 = vadd.f32 %v5119_v23, %v548_v14 }
  0xce   : > { %2011 = vmatprep.subr.bf16.mxu1 %v4355_v42  ;;  %v4365_v42 = vld [vmem:[#allocation8 + $0xe8] ss:$16 sps:$4 sm:$0xff]   ;;  %v702_v35 = vadd.f32 %v5119_v23, %v552_v15 }
  0xcf   : > { %v703_v61 = vadd.f32 %v5094_v2, %v553_v45  ;;  %v5185_v1 = vpack.c.bf16 %v823_v33, %v819_v32  ;;  %v408_v32 = vld [vmem:[%s5053_s12 + $0xe0] sm:$0xff]  ;;  %v406_v33 = vld [vmem:[%s5053_s12 + $0xd0] sm:$0xff]  ;;  %v824_v63 = vmax.f32 %v5201_v25, 0.0 }
  0xd0   : > { %1819 = vmatpush2.bf16.msra.mxu0 %v4357_v54  ;;  %v405_v54 = vld [vmem:[%s5053_s12 + $0xc8] sm:$0xff]  ;;  %v4380_v45 = vld [vmem:[#allocation8 + $0x2a8] ss:$16 sps:$4 sm:$0xff]   ;;  %v556_v56 = vmul.f32 %v5110_v12, %v406_v33 }
  0xd1   : > { %2012 = vmatpush2.bf16.msra.mxu1 %v4358_v55  ;;  %1820 = vmatprep.subr.bf16.mxu0 %v4359_v0  ;;  %v4368_v55 = vld [vmem:[#allocation8 + $0x2e8] ss:$16 sps:$4 sm:$0xff]   ;;  %v409_v0 = vld [vmem:[%s5053_s12 + $0xe8] sm:$0xff]  ;;  %v555_v16 = vmul.f32 %v5082_v58, %v405_v54  ;;  %v831_v20 = vmax.f32 %v703_v61, 0.0  ;;  %v711_v54 = vadd.f32 %v5094_v2, %v561_v31  ;;  %v415_v61 = vld [vmem:[%s5053_s12 + $0x118] sm:$0xff] }
  0xd2   : > { %2013 = vmatprep.subr.bf16.mxu1 %v4361_v6  ;;  %v829_v6 = vmax.f32 %v701_v44, 0.0  ;;  %v559_v22 = vmul.f32 %v5082_v58, %v409_v0  ;;  %v4377_v44 = vld [vmem:[#allocation8 + $0xa8] ss:$16 sps:$4 sm:$0xff]   ;;  %v828_v0 = vmax.f32 %v5210_v30, 0.0  ;;  %v565_v17 = vmul.f32 %v5090_v62, %v415_v61  ;;  %v425_v61 = vld [vmem:[%s5053_s12 + $0x168] sm:$0xff] }
  0xd3   : > { %v705_v36 = vadd.f32 %v5085_v59, %v555_v16  ;;  %v4383_v25 = vld [vmem:[#allocation8 + $0x88] ss:$16 sps:$4 sm:$0xff]  }
  0xd4   : > { %1821 = vmatpush2.bf16.msra.mxu0 %v4363_v19  ;;  %v827_v19 = vmax.f32 %v699_v53, 0.0  ;;  %v5207_v29 = vpack.c.bf16 %v829_v6, %v825_v5  ;;  %v709_v46 = vadd.f32 %v5085_v59, %v559_v22  ;;  %v417_v53 = vld [vmem:[%s5053_s12 + $0x128] sm:$0xff]  ;;  %v4388_v5 = vld [vmem:[#allocation8 + $0x28c] ss:$16 sps:$4 sm:$0xff]   ;;  %v563_v6 = vmul.f32 %v5082_v58, %v413_v39 }
  0xd5   : > { %2014 = vmatpush2.bf16.msra.mxu1 %v4364_v26  ;;  %2176 = vmatprep.subr.bf16.mxu0 %v4367_v27  ;;  %v4382_v26 = vld [vmem:[#allocation8 + $0x2ac] ss:$16 sps:$4 sm:$0xff]   ;;  %v557_v27 = vmul.f32 %v5090_v62, %v407_v8  ;;  %v826_v8 = vmax.f32 %v698_v34, 0.0  ;;  %v706_v22 = vadd.f32 %v5119_v23, %v556_v56 }
  0xd6   : > { %2369 = vmatprep.subr.bf16.mxu1 %v4370_v28  ;;  %v404_v28 = vld [vmem:[%s5053_s12 + $0xc0] sm:$0xff]  ;;  %v837_v14 = vmax.f32 %v709_v46, 0.0  ;;  %v713_v31 = vadd.f32 %v5085_v59, %v563_v6  ;;  %v414_v33 = vld [vmem:[%s5053_s12 + $0x110] sm:$0xff] }
  0xd7   : > { %1823 = vmatmul.mubr.bf16.vlgmr.msra.gmra.mxu0 %v5171_v40  ;;  %v707_v51 = vadd.f32 %v5094_v2, %v557_v27  ;;  %v554_v52 = vmul.f32 %v5097_v3, %v404_v28  ;;  %v569_v27 = vmul.f32 %v5090_v62, %v419_v7  ;;  %v416_v28 = vld [vmem:[%s5053_s12 + $0x120] sm:$0xff]  ;;  %v418_v34 = vld [vmem:[%s5053_s12 + $0x130] sm:$0xff]  ;;  %v834_v56 = vmax.f32 %v706_v22, 0.0 }
  0xd8   : > { %2016 = vmatmul.mubr.bf16.vlgmr.msra.gmra.mxu1 %v5173_v41  ;;  %2177 = vmatpush1.bf16.msra.mxu0 %v4365_v42  ;;  %v5220_v42 = vpack.c.bf16 %v831_v20, %v827_v19  ;;  %v412_v19 = vld [vmem:[%s5053_s12 + $0x100] sm:$0xff]  ;;  %v839_v20 = vmax.f32 %v711_v54, 0.0  ;;  %v566_v6 = vmul.f32 %v5097_v3, %v416_v28  ;;  %v426_v28 = vld [vmem:[%s5053_s12 + $0x170] sm:$0xff] }
  0xd9   : > { %2370 = vmatpush1.bf16.msra.mxu1 %v4368_v55  ;;  %1832 = vmatprep.mubr.bf16.mxu0 %v5178_v49  ;;  %v558_v55 = vmul.f32 %v5097_v3, %v408_v32  ;;  %v835_v15 = vmax.f32 %v707_v51, 0.0  ;;  %v5239_v16 = vadd.f32 %v5106_v10, %v554_v52  ;;  %v4394_v39 = vld [vmem:[#allocation8 + $0x26c] ss:$16 sps:$4 sm:$0xff]   ;;  %v719_v51 = vadd.f32 %v5094_v2, %v569_v27  ;;  %v4389_v52 = vld [vmem:[#allocation8 + $0x68] ss:$16 sps:$4 sm:$0xff]  }
  0xda   : > { %2025 = vmatprep.mubr.bf16.mxu1 %v5185_v1  ;;  %2178 = vmatprep.subr.bf16.mxu0 %v4373_v4  ;;  %v560_v4 = vmul.f32 %v5110_v12, %v410_v38  ;;  %v562_v38 = vmul.f32 %v5097_v3, %v412_v19  ;;  %v4392_v7 = vld [vmem:[#allocation8 + $0x268] ss:$16 sps:$4 sm:$0xff]  }
  0xdb   : > { %2371 = vmatprep.subr.bf16.mxu1 %v4376_v13  ;;  %v567_v13 = vmul.f32 %v5082_v58, %v417_v53  ;;  %v5263_v53 = vpack.c.bf16 %v839_v20, %v835_v15  ;;  %v832_v54 = vmax.f32 %v5239_v16, 0.0  ;;  %v4397_v15 = vld [vmem:[#allocation8 + $0x4c] ss:$16 sps:$4 sm:$0xff]   ;;  %v575_v20 = vmul.f32 %v5082_v58, %v425_v61 }
  0xdc   : > { %2179 = vmatpush1.bf16.msra.mxu0 %v4371_v9  ;;  %v830_v9 = vmax.f32 %v702_v35, 0.0  ;;  %v710_v30 = vadd.f32 %v5119_v23, %v560_v4  ;;  %v4391_v35 = vld [vmem:[#allocation8 + $0x6c] ss:$16 sps:$4 sm:$0xff]   ;;  %v423_v4 = vld [vmem:[%s5053_s12 + $0x158] sm:$0xff] }
  0xdd   : > { %2372 = vmatpush1.bf16.msra.mxu1 %v4374_v11  ;;  %2180 = vmatprep.subr.bf16.mxu0 %v4379_v21  ;;  %v833_v11 = vmax.f32 %v705_v36, 0.0  ;;  %v708_v21 = vadd.f32 %v5106_v10, %v558_v55  ;;  %v717_v32 = vadd.f32 %v5085_v59, %v567_v13  ;;  %v715_v36 = vadd.f32 %v5094_v2, %v565_v17  ;;  %v4400_v16 = vld [vmem:[#allocation8 + $0x24c] ss:$16 sps:$4 sm:$0xff]  }
  0xde   : > { %2373 = vmatprep.subr.bf16.mxu1 %v4382_v26  ;;  %v4386_v26 = vld [vmem:[#allocation8 + $0x288] ss:$16 sps:$4 sm:$0xff]   ;;  %v564_v13 = vmul.f32 %v5110_v12, %v414_v33  ;;  %v847_v17 = vmax.f32 %v719_v51, 0.0  ;;  %v5293_v33 = vadd.f32 %v5106_v10, %v566_v6  ;;  %v725_v61 = vadd.f32 %v5085_v59, %v575_v20 }
  0xdf   : > { %1833 = vmatmul.mubr.bf16.gmra.mxu0 %v5195_v18  ;;  %v5260_v46 = vpack.c.bf16 %v837_v14, %v833_v11  ;;  %v836_v55 = vmax.f32 %v708_v21, 0.0  ;;  %v5272_v11 = vadd.f32 %v5106_v10, %v562_v38  ;;  %v568_v14 = vmul.f32 %v5110_v12, %v418_v34  ;;  %v420_v22 = vld [vmem:[%s5053_s12 + $0x140] sm:$0xff] }
  0xe0   : > { %2026 = vmatmul.mubr.bf16.gmra.mxu1 %v5198_v24  ;;  %1842 = vmatprep.mubr.bf16.mxu0 %v5207_v29  ;;  %v573_v21 = vmul.f32 %v5090_v62, %v423_v4  ;;  %v4398_v34 = vld [vmem:[#allocation8 + $0x248] ss:$16 sps:$4 sm:$0xff]  }
  0xe1   : > { %2035 = vmatprep.mubr.bf16.mxu1 %v5220_v42  ;;  %2181 = vmatpush1.bf16.msra.mxu0 %v4377_v44  ;;  %v5256_v44 = vpack.c.bf16 %v828_v0, %v824_v63  ;;  %v841_v63 = vmax.f32 %v713_v31, 0.0  ;;  %v845_v0 = vmax.f32 %v717_v32, 0.0  ;;  %v5288_v31 = vpack.c.bf16 %v836_v55, %v832_v54  ;;  %v433_v54 = vld [vmem:[%s5053_s12 + $0x1a8] sm:$0xff]  ;;  %v4403_v55 = vld [vmem:[#allocation8 + $0x2c] ss:$16 sps:$4 sm:$0xff]  }
  0xe2   : > { %2374 = vmatpush1.bf16.msra.mxu1 %v4380_v45  ;;  %2182 = vmatprep.subr.bf16.mxu0 %v4385_v60  ;;  %v5258_v45 = vpack.c.bf16 %v830_v9, %v826_v8  ;;  %v421_v60 = vld [vmem:[%s5053_s12 + $0x148] sm:$0xff]  ;;  %v427_v8 = vld [vmem:[%s5053_s12 + $0x178] sm:$0xff]  ;;  %v843_v9 = vmax.f32 %v715_v36, 0.0  ;;  %v840_v38 = vmax.f32 %v5272_v11, 0.0  ;;  %v5303_v51 = vadd.f32 %v5119_v23, %v568_v14  ;;  %v4401_v11 = vld [vmem:[#allocation8 + $0x28] ss:$16 sps:$4 sm:$0xff]  }
  0xe3   : > { %2375 = vmatprep.subr.bf16.mxu1 %v4388_v5  ;;  %v838_v5 = vmax.f32 %v710_v30, 0.0  ;;  %v571_v19 = vmul.f32 %v5082_v58, %v421_v60  ;;  %v577_v27 = vmul.f32 %v5090_v62, %v427_v8  ;;  %v4395_v30 = vld [vmem:[#allocation8 + $0x48] ss:$16 sps:$4 sm:$0xff]   ;;  %v5296_v36 = vpack.c.bf16 %v845_v0, %v841_v63  ;;  %v435_v8 = vld [vmem:[%s5053_s12 + $0x1b8] sm:$0xff] }
  0xe4   : > { %v723_v4 = vadd.f32 %v5094_v2, %v573_v21  ;;  %v570_v0 = vmul.f32 %v5097_v3, %v420_v22  ;;  %v846_v20 = vmax.f32 %v5303_v51, 0.0  ;;  %v4412_v22 = vld [vmem:[#allocation8 + $0x20c] ss:$16 sps:$4 sm:$0xff]  }
  0xe5   : > { %2183 = vmatpush1.bf16.msra.mxu0 %v4383_v25  ;;  %v424_v25 = vld [vmem:[%s5053_s12 + $0x160] sm:$0xff]  ;;  %v5290_v32 = vpack.c.bf16 %v838_v5, %v834_v56  ;;  %v5306_v56 = vpack.c.bf16 %v847_v17, %v843_v9  ;;  %v721_v60 = vadd.f32 %v5085_v59, %v571_v19  ;;  %v431_v5 = vld [vmem:[%s5053_s12 + $0x198] sm:$0xff]  ;;  %v727_v63 = vadd.f32 %v5094_v2, %v577_v27 }
  0xe6   : > { %2376 = vmatpush1.bf16.msra.mxu1 %v4386_v26  ;;  %2184 = vmatprep.subr.bf16.mxu0 %v4391_v35  ;;  %v422_v26 = vld [vmem:[%s5053_s12 + $0x150] sm:$0xff]  ;;  %v429_v35 = vld [vmem:[%s5053_s12 + $0x188] sm:$0xff]  ;;  %v574_v6 = vmul.f32 %v5097_v3, %v424_v25  ;;  %v844_v9 = vmax.f32 %v5293_v33, 0.0  ;;  %v581_v21 = vmul.f32 %v5090_v62, %v431_v5  ;;  %v851_v27 = vmax.f32 %v723_v4, 0.0  ;;  %v432_v51 = vld [vmem:[%s5053_s12 + $0x1a0] sm:$0xff] }
  0xe7   : > { %2377 = vmatprep.subr.bf16.mxu1 %v4394_v39  ;;  %1843 = vmatmul.mubr.bf16.gmra.mxu0 %v5256_v44  ;;  %v5300_v39 = vadd.f32 %v5119_v23, %v564_v13  ;;  %v576_v13 = vmul.f32 %v5110_v12, %v426_v28  ;;  %v579_v14 = vmul.f32 %v5082_v58, %v429_v35  ;;  %v4409_v17 = vld [vmem:[#allocation8 + $0xc] ss:$16 sps:$4 sm:$0xff]   ;;  %v849_v25 = vmax.f32 %v721_v60, 0.0  ;;  %v437_v4 = vld [vmem:[%s5053_s12 + $0x1c8] sm:$0xff]  ;;  %v4407_v5 = vld [vmem:[#allocation8 + $0x8] ss:$16 sps:$4 sm:$0xff]  }
  0xe8   : > { %2036 = vmatmul.mubr.bf16.gmra.mxu1 %v5258_v45  ;;  %1852 = vmatprep.mubr.bf16.mxu0 %v5260_v46  ;;  %v585_v28 = vmul.f32 %v5090_v62, %v435_v8  ;;  %v855_v33 = vmax.f32 %v727_v63, 0.0  ;;  %v724_v35 = vadd.f32 %v5106_v10, %v574_v6  ;;  %v4410_v63 = vld [vmem:[#allocation8 + $0x208] ss:$16 sps:$4 sm:$0xff]   ;;  %v5342_v6 = vpack.c.bf16 %v844_v9, %v840_v38 }
  0xe9   : > { %2045 = vmatprep.mubr.bf16.mxu1 %v5263_v53  ;;  %2185 = vmatpush1.bf16.msra.mxu0 %v4389_v52  ;;  %v4406_v52 = vld [vmem:[#allocation8 + $0x22c] ss:$16 sps:$4 sm:$0xff]   ;;  %v842_v19 = vmax.f32 %v5300_v39, 0.0 }
  0xea   : > { %2378 = vmatpush1.bf16.msra.mxu1 %v4392_v7  ;;  %2186 = vmatprep.subr.bf16.mxu0 %v4397_v15  ;;  %v572_v7 = vmul.f32 %v5110_v12, %v422_v26  ;;  %v583_v15 = vmul.f32 %v5082_v58, %v433_v54  ;;  %v853_v26 = vmax.f32 %v725_v61, 0.0  ;;  %v430_v54 = vld [vmem:[%s5053_s12 + $0x190] sm:$0xff]  ;;  %v5353_v48 = vpack.c.bf16 %v855_v33, %v851_v27 }
  0xeb   : > { %2379 = vmatprep.subr.bf16.mxu1 %v4400_v16  ;;  %v4404_v16 = vld [vmem:[#allocation8 + $0x228] ss:$16 sps:$4 sm:$0xff]   ;;  %v852_v9 = vmax.f32 %v724_v35, 0.0  ;;  %v587_v33 = vmul.f32 %v5082_v58, %v437_v4  ;;  %v4424_v35 = vld [vmem:[#allocation8 + $0x3cc] ss:$16 sps:$4 sm:$0xff]  }
  0xec   : > { %v722_v39 = vadd.f32 %v5119_v23, %v572_v7  ;;  %v733_v60 = vadd.f32 %v5085_v59, %v583_v15  ;;  %v434_v61 = vld [vmem:[%s5053_s12 + $0x1b0] sm:$0xff]  ;;  %v731_v7 = vadd.f32 %v5094_v2, %v581_v21  ;;  %v735_v15 = vadd.f32 %v5094_v2, %v585_v28  ;;  %6786 = vst [vmem:[#allocation26_spill] sm:$0xff] %v5353_v48 }
  0xed   : > { %2187 = vmatpush1.bf16.msra.mxu0 %v4395_v30  ;;  %v428_v30 = vld [vmem:[%s5053_s12 + $0x180] sm:$0xff]  ;;  %v584_v28 = vmul.f32 %v5110_v12, %v434_v61  ;;  %v438_v4 = vld [vmem:[%s5053_s12 + $0x1d0] sm:$0xff] }
  0xee   : > { %2380 = vmatpush1.bf16.msra.mxu1 %v4398_v34  ;;  %2188 = vmatprep.subr.bf16.mxu0 %v4403_v55  ;;  %v720_v34 = vadd.f32 %v5106_v10, %v570_v0  ;;  %v726_v55 = vadd.f32 %v5119_v23, %v576_v13  ;;  %v4415_v0 = vld [vmem:[#allocation8 + $0x1ec] ss:$16 sps:$4 sm:$0xff]   ;;  %v578_v8 = vmul.f32 %v5097_v3, %v428_v30  ;;  %v850_v21 = vmax.f32 %v722_v39, 0.0  ;;  %v4413_v30 = vld [vmem:[#allocation8 + $0x1e8] ss:$16 sps:$4 sm:$0xff]  }
  0xef   : > { %2381 = vmatprep.subr.bf16.mxu1 %v4406_v52  ;;  %1853 = vmatmul.mubr.bf16.gmra.mxu0 %v5288_v31  ;;  %v5337_v52 = vadd.f32 %v5085_v59, %v579_v14  ;;  %v4418_v13 = vld [vmem:[#allocation8 + $0x3ec] ss:$16 sps:$4 sm:$0xff]   ;;  %v5346_v14 = vpack.c.bf16 %v846_v20, %v842_v19  ;;  %v861_v47 = vmax.f32 %v733_v60, 0.0  ;;  %v580_v19 = vmul.f32 %v5110_v12, %v430_v54  ;;  %v443_v20 = vld [vmem:[%s5053_s12 + $0x1f8] sm:$0xff] }
  0xf0   : > { %2046 = vmatmul.mubr.bf16.gmra.mxu1 %v5290_v32  ;;  %1862 = vmatprep.mubr.bf16.mxu0 %v5296_v36  ;;  %v848_v38 = vmax.f32 %v720_v34, 0.0  ;;  %v5360_v27 = vadd.f32 %v5106_v10, %v578_v8  ;;  %v4421_v34 = vld [vmem:[#allocation8 + $0x1cc] ss:$16 sps:$4 sm:$0xff]   ;;  %v863_v39 = vmax.f32 %v735_v15, 0.0  ;;  %v591_v54 = vmul.f32 %v5082_v58, %v441_v57  ;;  %v4422_v57 = vld [vmem:[#allocation8 + $0x3c8] ss:$16 sps:$4 sm:$0xff]  }
  0xf1   : > { %2055 = vmatprep.mubr.bf16.mxu1 %v5306_v56  ;;  %2189 = vmatpush1.bf16.msra.mxu0 %v4401_v11  ;;  %6784 = vst [vmem:[#allocation24_spill] sm:$0xff] %v5346_v14  ;;  %v5348_v11 = vpack.c.bf16 %v853_v26, %v849_v25  ;;  %v4416_v25 = vld [vmem:[#allocation8 + $0x3e8] ss:$16 sps:$4 sm:$0xff]   ;;  %v859_v26 = vmax.f32 %v731_v7, 0.0  ;;  %v593_v61 = vmul.f32 %v5090_v62, %v443_v20 }
  0xf2   : > { %2382 = vmatpush1.bf16.msra.mxu1 %v4404_v16  ;;  %2190 = vmatprep.subr.bf16.mxu0 %v4409_v17  ;;  %v582_v16 = vmul.f32 %v5097_v3, %v432_v51  ;;  %v854_v17 = vmax.f32 %v726_v55, 0.0  ;;  %v589_v55 = vmul.f32 %v5090_v62, %v439_v50  ;;  %v440_v60 = vld [vmem:[%s5053_s12 + $0x1e0] sm:$0xff]  ;;  %v5383_v7 = vadd.f32 %v5119_v23, %v580_v19  ;;  %v449_v19 = vld [vmem:[%s5053_s12 + $0x228] sm:$0xff] }
  0xf3   : > { %2383 = vmatprep.subr.bf16.mxu1 %v4412_v22  ;;  %6785 = vst [vmem:[#allocation25_spill] sm:$0xff] %v5348_v11  ;;  %v857_v22 = vmax.f32 %v5337_v52, 0.0  ;;  %v436_v52 = vld [vmem:[%s5053_s12 + $0x1c0] sm:$0xff]  ;;  %v734_v15 = vadd.f32 %v5119_v23, %v584_v28  ;;  %v743_v20 = vadd.f32 %v5094_v2, %v593_v61  ;;  %v588_v28 = vmul.f32 %v5110_v12, %v438_v4 }
  0xf4   : > { %v5367_v51 = vadd.f32 %v5106_v10, %v582_v16  ;;  %v4419_v50 = vld [vmem:[#allocation8 + $0x1c8] ss:$16 sps:$4 sm:$0xff]   ;;  %v5390_v16 = vadd.f32 %v5085_v59, %v587_v33  ;;  %v447_v33 = vld [vmem:[%s5053_s12 + $0x218] sm:$0xff]  ;;  %v4433_v61 = vld [vmem:[#allocation8 + $0x18c] ss:$16 sps:$4 sm:$0xff]  }
  0xf5   : > { %2191 = vmatpush1.bf16.msra.mxu0 %v4407_v5  ;;  %v442_v5 = vld [vmem:[%s5053_s12 + $0x1f0] sm:$0xff]  ;;  %v5385_v8 = vpack.c.bf16 %v861_v47, %v857_v22  ;;  %v741_v47 = vadd.f32 %v5085_v59, %v591_v54  ;;  %v739_v22 = vadd.f32 %v5094_v2, %v589_v55  ;;  %v862_v55 = vmax.f32 %v734_v15, 0.0 }
  0xf6   : > { %2384 = vmatpush1.bf16.msra.mxu1 %v4410_v63  ;;  %2192 = vmatprep.subr.bf16.mxu0 %v4415_v0  ;;  %v5378_v63 = vpack.c.bf16 %v852_v9, %v848_v38  ;;  %v5380_v0 = vpack.c.bf16 %v854_v17, %v850_v21  ;;  %v445_v38 = vld [vmem:[%s5053_s12 + $0x208] sm:$0xff]  ;;  %v4427_v9 = vld [vmem:[#allocation8 + $0x1ac] ss:$16 sps:$4 sm:$0xff]   ;;  %v860_v17 = vmax.f32 %v5367_v51, 0.0  ;;  %v4425_v51 = vld [vmem:[#allocation8 + $0x1a8] ss:$16 sps:$4 sm:$0xff]  }
  0xf7   : > { %2385 = vmatprep.subr.bf16.mxu1 %v4418_v13  ;;  %1863 = vmatmul.mubr.bf16.gmra.mxu0 %v5342_v6  ;;  %6789 = vst [vmem:[#allocation29_spill] sm:$0xff] %v5385_v8  ;;  %v856_v13 = vmax.f32 %v5360_v27, 0.0  ;;  %v4430_v21 = vld [vmem:[#allocation8 + $0x3ac] ss:$16 sps:$4 sm:$0xff]   ;;  %v590_v27 = vmul.f32 %v5097_v3, %v440_v60  ;;  %v4428_v54 = vld [vmem:[#allocation8 + $0x3a8] ss:$16 sps:$4 sm:$0xff]   ;;  %v599_v60 = vmul.f32 %v5082_v58, %v449_v19 }
  0xf8   : > { %2056 = vmatmul.mubr.bf16.gmra.mxu1 %v5346_v14  ;;  %1872 = vmatprep.mubr.bf16.mxu0 %v5348_v11  ;;  %6787 = vst [vmem:[#allocation27_spill] sm:$0xff] %v5378_v63  ;;  %6788 = vst [vmem:[#allocation28_spill] sm:$0xff] %v5380_v0  ;;  %v869_v4 = vmax.f32 %v741_v47, 0.0  ;;  %v4436_v15 = vld [vmem:[#allocation8 + $0x38c] ss:$16 sps:$4 sm:$0xff]   ;;  %v459_v11 = vld [vmem:[%s5053_s12 + $0x278] sm:$0xff] }
  0xf9   : > { %2065 = vmatprep.mubr.bf16.mxu1 %v5353_v48  ;;  %2193 = vmatpush2.bf16.msra.mxu0 %v4413_v30  ;;  %v5393_v30 = vpack.c.bf16 %v863_v39, %v859_v26  ;;  %v858_v26 = vmax.f32 %v5383_v7, 0.0  ;;  %v595_v39 = vmul.f32 %v5082_v58, %v445_v38  ;;  %v597_v7 = vmul.f32 %v5090_v62, %v447_v33  ;;  %v448_v47 = vld [vmem:[%s5053_s12 + $0x220] sm:$0xff]  ;;  %v450_v19 = vld [vmem:[%s5053_s12 + $0x230] sm:$0xff]  ;;  %v455_v48 = vld [vmem:[%s5053_s12 + $0x258] sm:$0xff] }
  0xfa   : > { %2386 = vmatpush2.bf16.msra.mxu1 %v4416_v25  ;;  %2194 = vmatprep.subr.bf16.mxu0 %v4421_v34  ;;  %v586_v25 = vmul.f32 %v5097_v3, %v436_v52  ;;  %v451_v34 = vld [vmem:[%s5053_s12 + $0x238] sm:$0xff]  ;;  %v865_v52 = vmax.f32 %v5390_v16, 0.0  ;;  %v871_v16 = vmax.f32 %v743_v20, 0.0  ;;  %v5423_v33 = vpack.c.bf16 %v860_v17, %v856_v13  ;;  %v4431_v20 = vld [vmem:[#allocation8 + $0x188] ss:$16 sps:$4 sm:$0xff]  }
  0xfb   : > { %2387 = vmatprep.subr.bf16.mxu1 %v4424_v35  ;;  %6790 = vst [vmem:[#allocation30_spill] sm:$0xff] %v5393_v30  ;;  %v592_v35 = vmul.f32 %v5110_v12, %v442_v5  ;;  %v867_v5 = vmax.f32 %v739_v22, 0.0  ;;  %v446_v22 = vld [vmem:[%s5053_s12 + $0x210] sm:$0xff]  ;;  %v747_v17 = vadd.f32 %v5094_v2, %v597_v7 }
  0xfc   : > { %v736_v38 = vadd.f32 %v5106_v10, %v586_v25  ;;  %v4434_v25 = vld [vmem:[#allocation8 + $0x388] ss:$16 sps:$4 sm:$0xff]   ;;  %v5434_v13 = vpack.c.bf16 %v869_v4, %v865_v52  ;;  %v596_v52 = vmul.f32 %v5110_v12, %v446_v22  ;;  %v600_v4 = vmul.f32 %v5110_v12, %v450_v19 }
  0xfd   : > { %2195 = vmatpush2.bf16.msra.mxu0 %v4419_v50  ;;  %v601_v50 = vmul.f32 %v5090_v62, %v451_v34  ;;  %v742_v34 = vadd.f32 %v5119_v23, %v592_v35  ;;  %v4437_v7 = vld [vmem:[#allocation8 + $0x168] ss:$16 sps:$4 sm:$0xff]  }
  0xfe   : > { %2388 = vmatpush2.bf16.msra.mxu1 %v4422_v57  ;;  %2196 = vmatprep.subr.bf16.mxu0 %v4427_v9  ;;  %v444_v57 = vld [vmem:[%s5053_s12 + $0x200] sm:$0xff]  ;;  %v740_v9 = vadd.f32 %v5106_v10, %v590_v27  ;;  %v5429_v27 = vpack.c.bf16 %v862_v55, %v858_v26  ;;  %6791 = vst [vmem:[#allocation31_spill] sm:$0xff] %v5434_v13  ;;  %v864_v26 = vmax.f32 %v736_v38, 0.0  ;;  %v454_v19 = vld [vmem:[%s5053_s12 + $0x250] sm:$0xff] }
  0xff   : > { %2389 = vmatprep.subr.bf16.mxu1 %v4430_v21  ;;  %1873 = vmatmul.mubr.bf16.gmra.mxu0 %v5378_v63  ;;  %v738_v21 = vadd.f32 %v5119_v23, %v588_v28  ;;  %v457_v63 = vld [vmem:[%s5053_s12 + $0x268] sm:$0xff]  ;;  %v749_v28 = vadd.f32 %v5085_v59, %v599_v60  ;;  %v751_v35 = vadd.f32 %v5094_v2, %v601_v50  ;;  %v870_v14 = vmax.f32 %v742_v34, 0.0  ;;  %v4440_v50 = vld [vmem:[#allocation8 + $0x368] ss:$16 sps:$4 sm:$0xff]  }
 0x100   : > { %2066 = vmatmul.mubr.bf16.gmra.mxu1 %v5380_v0  ;;  %1882 = vmatprep.mubr.bf16.mxu0 %v5385_v8  ;;  %v745_v0 = vadd.f32 %v5085_v59, %v595_v39  ;;  %v453_v8 = vld [vmem:[%s5053_s12 + $0x248] sm:$0xff]  ;;  %v598_v39 = vmul.f32 %v5097_v3, %v448_v47  ;;  %v868_v55 = vmax.f32 %v740_v9, 0.0  ;;  %v607_v38 = vmul.f32 %v5082_v58, %v457_v63  ;;  %v456_v22 = vld [vmem:[%s5053_s12 + $0x260] sm:$0xff]  ;;  %v458_v34 = vld [vmem:[%s5053_s12 + $0x270] sm:$0xff] }
 0x101   : > { %2075 = vmatprep.mubr.bf16.mxu1 %v5393_v30  ;;  %2197 = vmatpush2.bf16.msra.mxu0 %v4425_v51  ;;  %v594_v30 = vmul.f32 %v5097_v3, %v444_v57  ;;  %v4439_v51 = vld [vmem:[#allocation8 + $0x16c] ss:$16 sps:$4 sm:$0xff]   ;;  %v866_v60 = vmax.f32 %v738_v21, 0.0  ;;  %v875_v9 = vmax.f32 %v747_v17, 0.0  ;;  %v879_v21 = vmax.f32 %v751_v35, 0.0 }
 0x102   : > { %2390 = vmatpush2.bf16.msra.mxu1 %v4428_v54  ;;  %2198 = vmatprep.subr.bf16.mxu0 %v4433_v61  ;;  %v5439_v54 = vpack.c.bf16 %v871_v16, %v867_v5  ;;  %v4442_v57 = vld [vmem:[#allocation8 + $0x36c] ss:$16 sps:$4 sm:$0xff]   ;;  %v873_v61 = vmax.f32 %v745_v0, 0.0  ;;  %v877_v5 = vmax.f32 %v749_v28, 0.0  ;;  %v603_v16 = vmul.f32 %v5082_v58, %v453_v8  ;;  %v4446_v35 = vld [vmem:[#allocation8 + $0x348] ss:$16 sps:$4 sm:$0xff]  }
 0x103   : > { %2391 = vmatprep.subr.bf16.mxu1 %v4436_v15  ;;  %v5445_v15 = vadd.f32 %v5106_v10, %v594_v30  ;;  %v452_v0 = vld [vmem:[%s5053_s12 + $0x240] sm:$0xff]  ;;  %v5453_v47 = vadd.f32 %v5106_v10, %v598_v39  ;;  %v605_v30 = vmul.f32 %v5090_v62, %v455_v48  ;;  %v5460_v63 = vpack.c.bf16 %v868_v55, %v864_v26  ;;  %v461_v55 = vld [vmem:[%s5053_s12 + $0x288] sm:$0xff] }
 0x104   : > { %6792 = vst [vmem:[#allocation32_spill] sm:$0xff] %v5439_v54  ;;  %v609_v8 = vmul.f32 %v5090_v62, %v459_v11  ;;  %v5464_v28 = vpack.c.bf16 %v870_v14, %v866_v60  ;;  %v746_v17 = vadd.f32 %v5119_v23, %v596_v52  ;;  %v750_v48 = vadd.f32 %v5119_v23, %v600_v4  ;;  %v465_v14 = vld [vmem:[%s5053_s12 + $0x2a8] sm:$0xff]  ;;  %v4448_v60 = vld [vmem:[#allocation8 + $0x34c] ss:$16 sps:$4 sm:$0xff]  }
 0x105   : > { %2199 = vmatpush2.bf16.msra.mxu0 %v4431_v20  ;;  %6793 = vst [vmem:[#allocation33_spill] sm:$0xff] %v5460_v63  ;;  %v4443_v20 = vld [vmem:[#allocation8 + $0x148] ss:$16 sps:$4 sm:$0xff]   ;;  %v5468_v39 = vpack.c.bf16 %v877_v5, %v873_v61  ;;  %v753_v11 = vadd.f32 %v5085_v59, %v603_v16  ;;  %v757_v26 = vadd.f32 %v5085_v59, %v607_v38  ;;  %v876_v52 = vmax.f32 %v5453_v47, 0.0  ;;  %v463_v16 = vld [vmem:[%s5053_s12 + $0x298] sm:$0xff] }
 0x106   : > { %2392 = vmatpush2.bf16.msra.mxu1 %v4434_v25  ;;  %2200 = vmatprep.subr.bf16.mxu0 %v4439_v51  ;;  %v4445_v25 = vld [vmem:[#allocation8 + $0x14c] ss:$16 sps:$4 sm:$0xff]   ;;  %6794 = vst [vmem:[#allocation34_spill] sm:$0xff] %v5464_v28  ;;  %v872_v51 = vmax.f32 %v5445_v15, 0.0  ;;  %v755_v4 = vadd.f32 %v5094_v2, %v605_v30  ;;  %v602_v61 = vmul.f32 %v5097_v3, %v452_v0  ;;  %v467_v38 = vld [vmem:[%s5053_s12 + $0x2b8] sm:$0xff] }
 0x107   : > { %2393 = vmatprep.subr.bf16.mxu1 %v4442_v57  ;;  %1883 = vmatmul.mubr.bf16.gmra.mxu0 %v5423_v33  ;;  %6795 = vst [vmem:[#allocation35_spill] sm:$0xff] %v5468_v39  ;;  %v5475_v57 = vpack.c.bf16 %v879_v21, %v875_v9  ;;  %v604_v5 = vmul.f32 %v5110_v12, %v454_v19  ;;  %v878_v9 = vmax.f32 %v750_v48, 0.0  ;;  %v4449_v0 = vld [vmem:[#allocation8 + $0x128] ss:$16 sps:$4 sm:$0xff]   ;;  %v881_v30 = vmax.f32 %v753_v11, 0.0 }
 0x108   : > { %2076 = vmatmul.mubr.bf16.gmra.mxu1 %v5429_v27  ;;  %1892 = vmatprep.mubr.bf16.mxu0 %v5434_v13  ;;  %v608_v15 = vmul.f32 %v5110_v12, %v458_v34  ;;  %v611_v21 = vmul.f32 %v5082_v58, %v461_v55  ;;  %v615_v47 = vmul.f32 %v5082_v58, %v465_v14  ;;  %v4454_v48 = vld [vmem:[#allocation8 + $0x32c] ss:$16 sps:$4 sm:$0xff]  }
 0x109   : > { %2085 = vmatprep.mubr.bf16.mxu1 %v5439_v54  ;;  %2201 = vmatpush2.bf16.msra.mxu0 %v4437_v7  ;;  %6796 = vst [vmem:[#allocation36_spill] sm:$0xff] %v5475_v57  ;;  %v759_v7 = vadd.f32 %v5094_v2, %v609_v8  ;;  %v885_v8 = vmax.f32 %v757_v26, 0.0  ;;  %v4451_v54 = vld [vmem:[#allocation8 + $0x12c] ss:$16 sps:$4 sm:$0xff]   ;;  %v752_v19 = vadd.f32 %v5106_v10, %v602_v61 }
 0x10a   : > { %2394 = vmatpush2.bf16.msra.mxu1 %v4440_v50  ;;  %2202 = vmatprep.subr.bf16.mxu0 %v4445_v25  ;;  %v606_v50 = vmul.f32 %v5097_v3, %v456_v22  ;;  %v874_v25 = vmax.f32 %v746_v17, 0.0  ;;  %v883_v22 = vmax.f32 %v755_v4, 0.0  ;;  %v613_v34 = vmul.f32 %v5090_v62, %v463_v16  ;;  %v460_v4 = vld [vmem:[%s5053_s12 + $0x280] sm:$0xff]  ;;  %v462_v16 = vld [vmem:[%s5053_s12 + $0x290] sm:$0xff] }
 0x10b   : > { %2395 = vmatprep.subr.bf16.mxu1 %v4448_v60  ;;  %v617_v17 = vmul.f32 %v5090_v62, %v467_v38  ;;  %v754_v26 = vadd.f32 %v5119_v23, %v604_v5  ;;  %v758_v55 = vadd.f32 %v5119_v23, %v608_v15  ;;  %v761_v14 = vadd.f32 %v5085_v59, %v611_v21  ;;  %v464_v61 = vld [vmem:[%s5053_s12 + $0x2a0] sm:$0xff] }
 0x10c   : > { %v756_v11 = vadd.f32 %v5106_v10, %v606_v50  ;;  %v765_v60 = vadd.f32 %v5085_v59, %v615_v47  ;;  %v5503_v38 = vpack.c.bf16 %v876_v52, %v872_v51  ;;  %v469_v50 = vld [vmem:[%s5053_s12 + $0x2c8] sm:$0xff]  ;;  %v5509_v5 = vpack.c.bf16 %v885_v8, %v881_v30 }
 0x10d   : > { %2203 = vmatpush2.bf16.msra.mxu0 %v4443_v20  ;;  %v4452_v20 = vld [vmem:[#allocation8 + $0x328] ss:$16 sps:$4 sm:$0xff]   ;;  %v880_v15 = vmax.f32 %v752_v19, 0.0  ;;  %v763_v21 = vadd.f32 %v5094_v2, %v613_v34  ;;  %v767_v47 = vadd.f32 %v5094_v2, %v617_v17  ;;  %v610_v30 = vmul.f32 %v5097_v3, %v460_v4  ;;  %v471_v19 = vld [vmem:[%s5053_s12 + $0x2d8] sm:$0xff]  ;;  %v4460_v17 = vld [vmem:[#allocation8 + $0x30c] ss:$16 sps:$4 sm:$0xff]  }
 0x10e   : > { %2396 = vmatpush2.bf16.msra.mxu1 %v4446_v35  ;;  %v887_v35 = vmax.f32 %v759_v7, 0.0  ;;  %2204 = vmatprep.subr.bf16.mxu0 %v4451_v54  ;;  %6797 = vst [vmem:[#allocation37_spill] sm:$0xff] %v5503_v38  ;;  %v466_v7 = vld [vmem:[%s5053_s12 + $0x2b0] sm:$0xff]  ;;  %6799 = vst [vmem:[#allocation39_spill] sm:$0xff] %v5509_v5  ;;  %v884_v52 = vmax.f32 %v756_v11, 0.0  ;;  %v614_v8 = vmul.f32 %v5097_v3, %v464_v61  ;;  %v475_v34 = vld [vmem:[%s5053_s12 + $0x2f8] sm:$0xff] }
 0x10f   : > { %1893 = vmatmul.mubr.bf16.gmra.mxu0 %v5460_v63  ;;  %2397 = vmatprep.subr.bf16.mxu1 %v4454_v48  ;;  %v4455_v54 = vld [vmem:[#allocation8 + $0x108] ss:$16 sps:$4 sm:$0xff]   ;;  %v4457_v48 = vld [vmem:[#allocation8 + $0x10c] ss:$16 sps:$4 sm:$0xff]  }
 0x110   : > { %2086 = vmatmul.mubr.bf16.gmra.mxu1 %v5464_v28  ;;  %1902 = vmatprep.mubr.bf16.mxu0 %v5468_v39  ;;  %v5513_v51 = vpack.c.bf16 %v887_v35, %v883_v22  ;;  %v473_v39 = vld [vmem:[%s5053_s12 + $0x2e8] sm:$0xff]  ;;  %v612_v28 = vmul.f32 %v5110_v12, %v462_v16  ;;  %v616_v22 = vmul.f32 %v5110_v12, %v466_v7  ;;  %v468_v35 = vld [vmem:[%s5053_s12 + $0x2c0] sm:$0xff]  ;;  %v470_v61 = vld [vmem:[%s5053_s12 + $0x2d0] sm:$0xff] }
 0x111   : > { %2095 = vmatprep.mubr.bf16.mxu1 %v5475_v57  ;;  %v5505_v57 = vpack.c.bf16 %v878_v9, %v874_v25  ;;  %2205 = vmatpush2.bf16.msra.mxu0 %v4449_v0  ;;  %v882_v25 = vmax.f32 %v754_v26, 0.0  ;;  %v886_v9 = vmax.f32 %v758_v55, 0.0  ;;  %v889_v0 = vmax.f32 %v761_v14, 0.0  ;;  %v4458_v11 = vld [vmem:[#allocation8 + $0x308] ss:$16 sps:$4 sm:$0xff]  }
 0x112   : > { %2398 = vmatpush2.bf16.msra.mxu1 %v4452_v20  ;;  %6800 = vst [vmem:[#allocation40_spill] sm:$0xff] %v5513_v51  ;;  %v893_v20 = vmax.f32 %v765_v60, 0.0  ;;  %2206 = vmatprep.subr.bf16.mxu0 %v4457_v48  ;;  %v891_v26 = vmax.f32 %v763_v21, 0.0  ;;  %v895_v55 = vmax.f32 %v767_v47, 0.0  ;;  %v619_v14 = vmul.f32 %v5082_v58, %v469_v50  ;;  %v472_v4 = vld [vmem:[%s5053_s12 + $0x2e0] sm:$0xff] }
 0x113   : > { %6798 = vst [vmem:[#allocation38_spill] sm:$0xff] %v5505_v57  ;;  %v623_v60 = vmul.f32 %v5082_v58, %v473_v39  ;;  %v621_v16 = vmul.f32 %v5090_v62, %v471_v19  ;;  %v625_v7 = vmul.f32 %v5090_v62, %v475_v34  ;;  %v5534_v48 = vpack.c.bf16 %v884_v52, %v880_v15  ;;  %v477_v39 = vld [vmem:[%s5053_s12 + $0x308] sm:$0xff] }
 0x114   : > { %v760_v21 = vadd.f32 %v5106_v10, %v610_v30  ;;  %v764_v50 = vadd.f32 %v5106_v10, %v614_v8  ;;  %2399 = vmatprep.subr.bf16.mxu1 %v4460_v17  ;;  %v5539_v47 = vpack.c.bf16 %v886_v9, %v882_v25  ;;  %v766_v19 = vadd.f32 %v5119_v23, %v616_v22  ;;  %v481_v34 = vld [vmem:[%s5053_s12 + $0x328] sm:$0xff]  ;;  %v479_v25 = vld [vmem:[%s5053_s12 + $0x318] sm:$0xff] }
 0x115   : > { %2207 = vmatpush2.bf16.msra.mxu0 %v4455_v54  ;;  %v474_v54 = vld [vmem:[%s5053_s12 + $0x2f0] sm:$0xff]  ;;  %6801 = vst [vmem:[#allocation41_spill] sm:$0xff] %v5534_v48  ;;  %v769_v15 = vadd.f32 %v5085_v59, %v619_v14  ;;  %v773_v52 = vadd.f32 %v5085_v59, %v623_v60  ;;  %v618_v30 = vmul.f32 %v5097_v3, %v468_v35  ;;  %v483_v8 = vld [vmem:[%s5053_s12 + $0x338] sm:$0xff] }
 0x116   : > { %6802 = vst [vmem:[#allocation42_spill] sm:$0xff] %v5539_v47  ;;  %2400 = vmatpush2.bf16.msra.mxu1 %v4458_v11  ;;  %v771_v9 = vadd.f32 %v5094_v2, %v621_v16  ;;  %v888_v17 = vmax.f32 %v760_v21, 0.0  ;;  %v892_v22 = vmax.f32 %v764_v50, 0.0  ;;  %v624_v11 = vmul.f32 %v5110_v12, %v474_v54  ;;  %v476_v16 = vld [vmem:[%s5053_s12 + $0x300] sm:$0xff] }
 0x117   : > { %1903 = vmatmul.mubr.bf16.gmra.mxu0 %v5503_v38  ;;  %v894_v14 = vmax.f32 %v766_v19, 0.0  ;;  %v631_v35 = vmul.f32 %v5082_v58, %v481_v34  ;;  %v629_v60 = vmul.f32 %v5090_v62, %v479_v25  ;;  %v768_v54 = vadd.f32 %v5106_v10, %v618_v30  ;;  %v478_v34 = vld [vmem:[%s5053_s12 + $0x310] sm:$0xff]  ;;  %v485_v25 = vld [vmem:[%s5053_s12 + $0x348] sm:$0xff] }
 0x118   : > { %2096 = vmatmul.mubr.bf16.gmra.mxu1 %v5505_v57  ;;  %1912 = vmatprep.mubr.bf16.mxu0 %v5509_v5  ;;  %v5541_v5 = vpack.c.bf16 %v893_v20, %v889_v0  ;;  %v5546_v57 = vpack.c.bf16 %v895_v55, %v891_v26  ;;  %v775_v0 = vadd.f32 %v5094_v2, %v625_v7  ;;  %v480_v7 = vld [vmem:[%s5053_s12 + $0x320] sm:$0xff]  ;;  %v899_v21 = vmax.f32 %v771_v9, 0.0 }
 0x119   : > { %2105 = vmatprep.mubr.bf16.mxu1 %v5513_v51  ;;  %v762_v51 = vadd.f32 %v5119_v23, %v612_v28  ;;  %v622_v28 = vmul.f32 %v5097_v3, %v472_v4  ;;  %v620_v20 = vmul.f32 %v5110_v12, %v470_v61  ;;  %v627_v26 = vmul.f32 %v5082_v58, %v477_v39 }
 0x11a   : > { %6803 = vst [vmem:[#allocation43_spill] sm:$0xff] %v5541_v5  ;;  %6804 = vst [vmem:[#allocation44_spill] sm:$0xff] %v5546_v57  ;;  %v897_v4 = vmax.f32 %v769_v15, 0.0  ;;  %v901_v61 = vmax.f32 %v773_v52, 0.0  ;;  %v903_v50 = vmax.f32 %v775_v0, 0.0  ;;  %v482_v15 = vld [vmem:[%s5053_s12 + $0x330] sm:$0xff]  ;;  %v774_v52 = vadd.f32 %v5119_v23, %v624_v11 }
 0x11b   : > { %v890_v55 = vmax.f32 %v762_v51, 0.0  ;;  %v633_v51 = vmul.f32 %v5090_v62, %v483_v8  ;;  %v772_v39 = vadd.f32 %v5106_v10, %v622_v28  ;;  %v770_v19 = vadd.f32 %v5119_v23, %v620_v20  ;;  %v489_v28 = vld [vmem:[%s5053_s12 + $0x368] sm:$0xff] }
 0x11c   : > { %v777_v30 = vadd.f32 %v5085_v59, %v627_v26  ;;  %v5576_v8 = vpack.c.bf16 %v892_v22, %v888_v17  ;;  %v781_v9 = vadd.f32 %v5085_v59, %v631_v35  ;;  %v779_v0 = vadd.f32 %v5094_v2, %v629_v60  ;;  %v487_v26 = vld [vmem:[%s5053_s12 + $0x358] sm:$0xff] }
 0x11d   : > { %v896_v20 = vmax.f32 %v768_v54, 0.0  ;;  %v630_v11 = vmul.f32 %v5097_v3, %v480_v7  ;;  %v5588_v17 = vpack.c.bf16 %v901_v61, %v897_v4  ;;  %v5590_v22 = vpack.c.bf16 %v903_v50, %v899_v21 }
 0x11e   : > { %v902_v35 = vmax.f32 %v774_v52, 0.0  ;;  %v905_v60 = vmax.f32 %v777_v30, 0.0  ;;  %v628_v38 = vmul.f32 %v5110_v12, %v478_v34  ;;  %v632_v54 = vmul.f32 %v5110_v12, %v482_v15  ;;  %v490_v15 = vld [vmem:[%s5053_s12 + $0x370] sm:$0xff] }
 0x11f   : > { %1913 = vmatmul.mubr.bf16.gmra.mxu0 %v5534_v48  ;;  %v491_v48 = vld [vmem:[%s5053_s12 + $0x378] sm:$0xff]  ;;  %6806 = vst [vmem:[#allocation46_spill] sm:$0xff] %v5588_v17  ;;  %6807 = vst [vmem:[#allocation47_spill] sm:$0xff] %v5590_v22  ;;  %v909_v63 = vmax.f32 %v781_v9, 0.0  ;;  %v907_v7 = vmax.f32 %v779_v0, 0.0  ;;  %v635_v13 = vmul.f32 %v5082_v58, %v485_v25  ;;  %v780_v21 = vadd.f32 %v5106_v10, %v630_v11  ;;  %v493_v25 = vld [vmem:[%s5053_s12 + $0x388] sm:$0xff] }
 0x120   : > { %2106 = vmatmul.mubr.bf16.gmra.mxu1 %v5539_v47  ;;  %1922 = vmatprep.mubr.bf16.mxu0 %v5541_v5  ;;  %v5578_v5 = vpack.c.bf16 %v894_v14, %v890_v55  ;;  %v626_v47 = vmul.f32 %v5097_v3, %v476_v16  ;;  %v900_v55 = vmax.f32 %v772_v39, 0.0  ;;  %v898_v14 = vmax.f32 %v770_v19, 0.0  ;;  %v488_v16 = vld [vmem:[%s5053_s12 + $0x360] sm:$0xff]  ;;  %v486_v39 = vld [vmem:[%s5053_s12 + $0x350] sm:$0xff] }
 0x121   : > { %2115 = vmatprep.mubr.bf16.mxu1 %v5546_v57  ;;  %v783_v57 = vadd.f32 %v5094_v2, %v633_v51  ;;  %v484_v51 = vld [vmem:[%s5053_s12 + $0x340] sm:$0xff]  ;;  %v639_v50 = vmul.f32 %v5082_v58, %v489_v28  ;;  %v637_v19 = vmul.f32 %v5090_v62, %v487_v26  ;;  %v641_v34 = vmul.f32 %v5090_v62, %v491_v48  ;;  %v497_v48 = vld [vmem:[%s5053_s12 + $0x3a8] sm:$0xff]  ;;  %v495_v26 = vld [vmem:[%s5053_s12 + $0x398] sm:$0xff] }
 0x122   : > { %6805 = vst [vmem:[#allocation45_spill] sm:$0xff] %v5578_v5  ;;  %v776_v61 = vadd.f32 %v5106_v10, %v626_v47  ;;  %v5608_v52 = vpack.c.bf16 %v900_v55, %v896_v20  ;;  %v778_v47 = vadd.f32 %v5119_v23, %v628_v38  ;;  %v782_v30 = vadd.f32 %v5119_v23, %v632_v54  ;;  %v4461_v20 = vld [vmem:[#allocation11 + $0x78] sm:$0xff]  }
 0x123   : > { %v911_v4 = vmax.f32 %v783_v57, 0.0  ;;  %v5610_v57 = vpack.c.bf16 %v902_v35, %v898_v14  ;;  %v5615_v9 = vpack.c.bf16 %v909_v63, %v905_v60  ;;  %v785_v0 = vadd.f32 %v5085_v59, %v635_v13  ;;  %3930 = vmatprep.subr.bf16.mxu0 %v4461_v20 }
 0x124   : > { %v634_v28 = vmul.f32 %v5097_v3, %v484_v51  ;;  %v638_v11 = vmul.f32 %v5097_v3, %v488_v16  ;;  %v904_v14 = vmax.f32 %v776_v61, 0.0  ;;  %v908_v35 = vmax.f32 %v780_v21, 0.0  ;;  %v499_v51 = vld [vmem:[%s5053_s12 + $0x3b8] sm:$0xff]  ;;  %v4463_v16 = vld [vmem:[#allocation11 + $0xf8] sm:$0xff]  }
 0x125   : > { %6808 = vst [vmem:[#allocation48_spill] sm:$0xff] %v5610_v57  ;;  %6809 = vst [vmem:[#allocation49_spill] sm:$0xff] %v5615_v9  ;;  %v5622_v55 = vpack.c.bf16 %v911_v4, %v907_v7  ;;  %v789_v38 = vadd.f32 %v5085_v59, %v639_v50  ;;  %v787_v54 = vadd.f32 %v5094_v2, %v637_v19  ;;  %4042 = vmatprep.subr.bf16.mxu1 %v4463_v16  ;;  %v505_v16 = vld [vmem:[%s5053_s12 + $0x3e8] sm:$0xff] }
 0x126   : > { %v791_v63 = vadd.f32 %v5094_v2, %v641_v34  ;;  %v636_v60 = vmul.f32 %v5110_v12, %v486_v39  ;;  %v640_v13 = vmul.f32 %v5110_v12, %v490_v15  ;;  %v784_v7 = vadd.f32 %v5106_v10, %v634_v28  ;;  %v494_v28 = vld [vmem:[%s5053_s12 + $0x390] sm:$0xff] }
 0x127   : > { %1923 = vmatmul.mubr.bf16.gmra.mxu0 %v5576_v8  ;;  %6810 = vst [vmem:[#allocation50_spill] sm:$0xff] %v5622_v55  ;;  %v788_v4 = vadd.f32 %v5106_v10, %v638_v11  ;;  %v643_v61 = vmul.f32 %v5082_v58, %v493_v25  ;;  %v917_v21 = vmax.f32 %v789_v38, 0.0  ;;  %v647_v50 = vmul.f32 %v5082_v58, %v497_v48  ;;  %v492_v25 = vld [vmem:[%s5053_s12 + $0x380] sm:$0xff]  ;;  %v498_v11 = vld [vmem:[%s5053_s12 + $0x3b0] sm:$0xff] }
 0x128   : > { %2116 = vmatmul.mubr.bf16.gmra.mxu1 %v5578_v5  ;;  %1932 = vmatprep.mubr.bf16.mxu0 %v5588_v17  ;;  %v910_v17 = vmax.f32 %v782_v30, 0.0  ;;  %v913_v5 = vmax.f32 %v785_v0, 0.0  ;;  %v645_v39 = vmul.f32 %v5090_v62, %v495_v26  ;;  %v649_v19 = vmul.f32 %v5090_v62, %v499_v51  ;;  %v496_v0 = vld [vmem:[%s5053_s12 + $0x3a0] sm:$0xff] }
 0x129   : > { %2125 = vmatprep.mubr.bf16.mxu1 %v5590_v22  ;;  %v906_v22 = vmax.f32 %v778_v47, 0.0  ;;  %v915_v34 = vmax.f32 %v787_v54, 0.0  ;;  %v919_v15 = vmax.f32 %v791_v63, 0.0  ;;  %v786_v47 = vadd.f32 %v5119_v23, %v636_v60  ;;  %v501_v54 = vld [vmem:[%s5053_s12 + $0x3c8] sm:$0xff] }
 0x12a   : > { %v790_v30 = vadd.f32 %v5119_v23, %v640_v13  ;;  %v5646_v48 = vpack.c.bf16 %v908_v35, %v904_v14  ;;  %v912_v20 = vmax.f32 %v784_v7, 0.0  ;;  %v793_v38 = vadd.f32 %v5085_v59, %v643_v61 }
 0x12b   : > { %v5648_v26 = vpack.c.bf16 %v910_v17, %v906_v22  ;;  %v916_v63 = vmax.f32 %v788_v4, 0.0  ;;  %v797_v51 = vadd.f32 %v5085_v59, %v647_v50  ;;  %v795_v60 = vadd.f32 %v5094_v2, %v645_v39 }
 0x12c   : > { %v799_v13 = vadd.f32 %v5094_v2, %v649_v19  ;;  %v5660_v14 = vpack.c.bf16 %v919_v15, %v915_v34  ;;  %v914_v17 = vmax.f32 %v786_v47, 0.0  ;;  %v918_v22 = vmax.f32 %v790_v30, 0.0 }
 0x12d   : > { %v642_v35 = vmul.f32 %v5097_v3, %v492_v25  ;;  %v921_v7 = vmax.f32 %v793_v38, 0.0  ;;  %v646_v4 = vmul.f32 %v5097_v3, %v496_v0  ;;  %v644_v61 = vmul.f32 %v5110_v12, %v494_v28 }
 0x12e   : > { %v648_v50 = vmul.f32 %v5110_v12, %v498_v11  ;;  %v925_v39 = vmax.f32 %v797_v51, 0.0  ;;  %v651_v19 = vmul.f32 %v5082_v58, %v501_v54  ;;  %v655_v34 = vmul.f32 %v5082_v58, %v505_v16  ;;  %v502_v16 = vld [vmem:[%s5053_s12 + $0x3d0] sm:$0xff] }
 0x12f   : > { %1933 = vmatmul.mubr.bf16.gmra.mxu0 %v5608_v52  ;;  %v792_v30 = vadd.f32 %v5106_v10, %v642_v35  ;;  %v796_v25 = vadd.f32 %v5106_v10, %v646_v4  ;;  %v794_v0 = vadd.f32 %v5119_v23, %v644_v61  ;;  %v5678_v11 = vpack.c.bf16 %v916_v63, %v912_v20  ;;  %v506_v35 = vld [vmem:[%s5053_s12 + $0x3f0] sm:$0xff] }
 0x130   : > { %2126 = vmatmul.mubr.bf16.gmra.mxu1 %v5610_v57  ;;  %1942 = vmatprep.mubr.bf16.mxu0 %v5615_v9  ;;  %v507_v9 = vld [vmem:[%s5053_s12 + $0x3f8] sm:$0xff]  ;;  %v5658_v57 = vpack.c.bf16 %v917_v21, %v913_v5  ;;  %v923_v5 = vmax.f32 %v795_v60, 0.0  ;;  %v927_v21 = vmax.f32 %v799_v13, 0.0  ;;  %v798_v28 = vadd.f32 %v5119_v23, %v648_v50  ;;  %v504_v13 = vld [vmem:[%s5053_s12 + $0x3e0] sm:$0xff] }
 0x131   : > { %2135 = vmatprep.mubr.bf16.mxu1 %v5622_v55  ;;  %v503_v55 = vld [vmem:[%s5053_s12 + $0x3d8] sm:$0xff]  ;;  %v657_v47 = vmul.f32 %v5090_v62, %v507_v9  ;;  %v5680_v38 = vpack.c.bf16 %v918_v22, %v914_v17  ;;  %v5682_v58 = vpack.c.bf16 %v925_v39, %v921_v7  ;;  %v805_v9 = vadd.f32 %v5085_v59, %v655_v34 }
 0x132   : > { %v653_v15 = vmul.f32 %v5090_v62, %v503_v55  ;;  %v5684_v54 = vpack.c.bf16 %v927_v21, %v923_v5  ;;  %v500_v55 = vld [vmem:[%s5053_s12 + $0x3c0] sm:$0xff]  ;;  %v801_v62 = vadd.f32 %v5085_v59, %v651_v19  ;;  %v920_v20 = vmax.f32 %v792_v30, 0.0 }
 0x133   : > { %v807_v60 = vadd.f32 %v5094_v2, %v657_v47  ;;  %v924_v63 = vmax.f32 %v796_v25, 0.0  ;;  %v922_v17 = vmax.f32 %v794_v0, 0.0  ;;  %v926_v22 = vmax.f32 %v798_v28, 0.0 }
 0x134   : > { %v803_v51 = vadd.f32 %v5094_v2, %v653_v15  ;;  %v650_v7 = vmul.f32 %v5097_v3, %v500_v55  ;;  %v654_v4 = vmul.f32 %v5097_v3, %v504_v13  ;;  %v652_v59 = vmul.f32 %v5110_v12, %v502_v16  ;;  %v4466_v13 = vld [vmem:[#allocation11 + $0x30] sm:$0xff]  }
 0x135   : > { %v656_v61 = vmul.f32 %v5110_v12, %v506_v35  ;;  %v929_v2 = vmax.f32 %v801_v62, 0.0  ;;  %v933_v50 = vmax.f32 %v805_v9, 0.0  ;;  %v935_v5 = vmax.f32 %v807_v60, 0.0  ;;  %v4464_v9 = vld [vmem:[#allocation11 + $0xb8] sm:$0xff]   ;;  %v4467_v60 = vld [vmem:[#allocation11 + $0xf0] sm:$0xff]   ;;  %v4470_v35 = vld [vmem:[#allocation11 + $0x28] sm:$0xff]  }
 0x136   : > { %v931_v39 = vmax.f32 %v803_v51, 0.0  ;;  %v5702_v21 = vpack.c.bf16 %v924_v63, %v920_v20  ;;  %v5704_v19 = vpack.c.bf16 %v926_v22, %v922_v17  ;;  %v800_v34 = vadd.f32 %v5106_v10, %v650_v7  ;;  %v4465_v51 = vld [vmem:[#allocation11 + $0x70] sm:$0xff]   ;;  %v4476_v20 = vld [vmem:[#allocation11 + $0xa8] sm:$0xff]   ;;  %v4473_v63 = vld [vmem:[#allocation11 + $0x58] sm:$0xff]  }
 0x137   : > { %1943 = vmatmul.mubr.bf16.gmra.mxu0 %v5646_v48  ;;  %v804_v3 = vadd.f32 %v5106_v10, %v654_v4  ;;  %v802_v15 = vadd.f32 %v5119_v23, %v652_v59  ;;  %v806_v12 = vadd.f32 %v5119_v23, %v656_v61  ;;  %v5710_v47 = vpack.c.bf16 %v933_v50, %v929_v2  ;;  %v4462_v23 = vld [vmem:[#allocation11 + $0x38] sm:$0xff]   ;;  %v4468_v16 = vld [vmem:[#allocation11 + $0xb0] sm:$0xff]   ;;  %v4481_v4 = vld [vmem:[#allocation11 + $0x40] sm:$0xff]  }
 0x138   : > { %2136 = vmatmul.mubr.bf16.gmra.mxu1 %v5648_v26  ;;  %1952 = vmatprep.mubr.bf16.mxu0 %v5658_v57  ;;  %v5712_v30 = vpack.c.bf16 %v935_v5, %v931_v39  ;;  %v928_v25 = vmax.f32 %v800_v34, 0.0  ;;  %v4475_v17 = vld [vmem:[#allocation11 + $0x18] sm:$0xff]   ;;  %v4477_v22 = vld [vmem:[#allocation11 + $0x50] sm:$0xff]   ;;  %v6819_v2 = vld [vmem:[#allocation32_spill] sm:$0xff] }
 0x139   : > { %2145 = vmatprep.mubr.bf16.mxu1 %v5660_v14  ;;  %v932_v0 = vmax.f32 %v804_v3, 0.0  ;;  %v930_v28 = vmax.f32 %v802_v15, 0.0  ;;  %v934_v55 = vmax.f32 %v806_v12, 0.0  ;;  %v4486_v7 = vld [vmem:[#allocation11 + $0x98] sm:$0xff]   ;;  %v4488_v59 = vld [vmem:[#allocation11 + $0x90] sm:$0xff]   ;;  %v4489_v50 = vld [vmem:[#allocation11 + $0xc8] sm:$0xff]  }
 0x13a   : > { %v6817_v61 = vld [vmem:[#allocation30_spill] sm:$0xff]  ;;  %v4490_v39 = vld [vmem:[#allocation11 + $0x88] sm:$0xff]   ;;  %v6822_v3 = vld [vmem:[#allocation35_spill] sm:$0xff] }
 0x13b   : > { %v5718_v10 = vpack.c.bf16 %v932_v0, %v928_v25  ;;  %v5720_v62 = vpack.c.bf16 %v934_v55, %v930_v28  ;;  %v6820_v5 = vld [vmem:[#allocation33_spill] sm:$0xff]  ;;  %v6821_v34 = vld [vmem:[#allocation34_spill] sm:$0xff]  ;;  %v6823_v15 = vld [vmem:[#allocation36_spill] sm:$0xff] }
 0x13c   : > { %v6825_v25 = vld [vmem:[#allocation38_spill] sm:$0xff]  ;;  %v6826_v0 = vld [vmem:[#allocation39_spill] sm:$0xff]  ;;  %v6827_v28 = vld [vmem:[#allocation40_spill] sm:$0xff] }
 0x13f   : > { %1953 = vmatmul.mubr.bf16.gmra.mxu0 %v5678_v11 }
 0x140   : > { %2146 = vmatmul.mubr.bf16.gmra.mxu1 %v5680_v38  ;;  %1962 = vmatprep.mubr.bf16.mxu0 %v5682_v58 }
 0x141   : > { %2155 = vmatprep.mubr.bf16.mxu1 %v5684_v54 }
 0x147   : > { %1963 = vmatmul.mubr.bf16.gmra.mxu0 %v5702_v21 }
 0x148   : > { %2156 = vmatmul.mubr.bf16.gmra.mxu1 %v5704_v19  ;;  %1972 = vmatprep.mubr.bf16.mxu0 %v5710_v47 }
 0x149   : > { %2165 = vmatprep.mubr.bf16.mxu1 %v5712_v30 }
 0x14f   : > { %1973 = vmatmul.mubr.bf16.gmra.mxu0 %v5718_v10 }
 0x150   : > { %2166 = vmatmul.mubr.bf16.gmra.mxu1 %v5720_v62  ;;  %2208 = vmatprep.mubr.bf16.mxu0 %v5127_v37  ;;  %v4469_v37 = vld [vmem:[#allocation11 + $0x68] sm:$0xff]  }
 0x151   : > { %2401 = vmatprep.mubr.bf16.mxu1 %v5135_v43  ;;  %v4474_v43 = vld [vmem:[#allocation11 + $0xe8] sm:$0xff]  }
 0x157   : > { %2209 = vmatmul.mubr.bf16.vlgmr.msra.gmra.mxu0 %v5171_v40  ;;  %v4471_v40 = vld [vmem:[#allocation11 + $0x60] sm:$0xff]  }
 0x158   : > { %2402 = vmatmul.mubr.bf16.vlgmr.msra.gmra.mxu1 %v5173_v41  ;;  %2218 = vmatprep.mubr.bf16.mxu0 %v5178_v49  ;;  %v4483_v41 = vld [vmem:[#allocation11 + $0xe0] sm:$0xff]  }
 0x159   : > { %2411 = vmatprep.mubr.bf16.mxu1 %v5185_v1  ;;  %3931 = vmatpush3.bf16.msra.mxu0 %v4462_v23  ;;  %v4472_v49 = vld [vmem:[#allocation11 + $0x20] sm:$0xff]  }
 0x15a   : > { %4043 = vmatpush3.bf16.msra.mxu1 %v4464_v9  ;;  %3932 = vmatprep.subr.bf16.mxu0 %v4465_v51  ;;  %v4484_v1 = vld [vmem:[#allocation11 + $0xa0] sm:$0xff]  }
 0x15b   : > { %4044 = vmatprep.subr.bf16.mxu1 %v4467_v60  ;;  %v4491_v60 = vld [vmem:[#allocation11 + $0xc0] sm:$0xff]  }
 0x15d   : > { %3933 = vmatpush3.bf16.msra.mxu0 %v4466_v13 }
 0x15e   : > { %4045 = vmatpush3.bf16.msra.mxu1 %v4468_v16  ;;  %3934 = vmatprep.subr.bf16.mxu0 %v4469_v37  ;;  %v4492_v37 = vld [vmem:[#allocation11 + $0x80] sm:$0xff]  }
 0x15f   : > { %4046 = vmatprep.subr.bf16.mxu1 %v4474_v43  ;;  %2219 = vmatmul.mubr.bf16.gmra.mxu0 %v5195_v18  ;;  %v4478_v18 = vld [vmem:[#allocation11 + $0x10] sm:$0xff]  }
 0x160   : > { %2412 = vmatmul.mubr.bf16.gmra.mxu1 %v5198_v24  ;;  %2228 = vmatprep.mubr.bf16.mxu0 %v5207_v29  ;;  %v4479_v24 = vld [vmem:[#allocation11 + $0x48] sm:$0xff]   ;;  %v4485_v29 = vld [vmem:[#allocation11 + $0xd8] sm:$0xff]  }
 0x161   : > { %2421 = vmatprep.mubr.bf16.mxu1 %v5220_v42  ;;  %3935 = vmatpush3.bf16.msra.mxu0 %v4470_v35  ;;  %v4480_v42 = vld [vmem:[#allocation11 + $0x8] sm:$0xff]  }
 0x162   : > { %4047 = vmatpush3.bf16.msra.mxu1 %v4476_v20  ;;  %3936 = vmatprep.subr.bf16.mxu0 %v4471_v40  ;;  %v6828_v20 = vld [vmem:[#allocation41_spill] sm:$0xff]  ;;  %v6829_v40 = vld [vmem:[#allocation42_spill] sm:$0xff] }
 0x163   : > { %4048 = vmatprep.subr.bf16.mxu1 %v4483_v41  ;;  %v6830_v41 = vld [vmem:[#allocation43_spill] sm:$0xff] }
 0x165   : > { %3937 = vmatpush3.bf16.msra.mxu0 %v4472_v49  ;;  %v6831_v49 = vld [vmem:[#allocation44_spill] sm:$0xff] }
 0x166   : > { %4049 = vmatpush3.bf16.msra.mxu1 %v4484_v1  ;;  %3938 = vmatprep.subr.bf16.mxu0 %v4473_v63 }
 0x167   : > { %2229 = vmatmul.mubr.bf16.gmra.mxu0 %v5256_v44  ;;  %4050 = vmatprep.subr.bf16.mxu1 %v4485_v29  ;;  %v4482_v44 = vld [vmem:[#allocation11] sm:$0xff]  }
 0x168   : > { %2422 = vmatmul.mubr.bf16.gmra.mxu1 %v5258_v45  ;;  %2238 = vmatprep.mubr.bf16.mxu0 %v5260_v46  ;;  %v6811_v45 = vld [vmem:[#allocation24_spill] sm:$0xff]  ;;  %v6812_v46 = vld [vmem:[#allocation25_spill] sm:$0xff] }
 0x169   : > { %2431 = vmatprep.mubr.bf16.mxu1 %v5263_v53  ;;  %3939 = vmatpush3.bf16.msra.mxu0 %v4475_v17  ;;  %v6813_v53 = vld [vmem:[#allocation26_spill] sm:$0xff] }
 0x16a   : > { %3940 = vmatprep.subr.bf16.mxu0 %v4477_v22  ;;  %4051 = vmatpush3.bf16.msra.mxu1 %v4486_v7  ;;  %v6832_v7 = vld [vmem:[#allocation45_spill] sm:$0xff] }
 0x16d   : > { %3941 = vmatpush3.bf16.msra.mxu0 %v4478_v18 }
 0x16e   : > { %3942 = vmatprep.subr.bf16.mxu0 %v4479_v24 }
 0x16f   : > { %2239 = vmatmul.mubr.bf16.gmra.mxu0 %v5288_v31  ;;  %v4487_v31 = vld [vmem:[#allocation11 + $0xd0] sm:$0xff]  }
 0x170   : > { %2432 = vmatmul.mubr.bf16.gmra.mxu1 %v5290_v32  ;;  %2248 = vmatprep.mubr.bf16.mxu0 %v5296_v36  ;;  %v6814_v32 = vld [vmem:[#allocation27_spill] sm:$0xff]  ;;  %v6815_v36 = vld [vmem:[#allocation28_spill] sm:$0xff] }
 0x171   : > { %2441 = vmatprep.mubr.bf16.mxu1 %v5306_v56  ;;  %3943 = vmatpush3.bf16.msra.mxu0 %v4480_v42  ;;  %v6816_v56 = vld [vmem:[#allocation29_spill] sm:$0xff] }
 0x172   : > { %3944 = vmatprep.subr.bf16.mxu0 %v4481_v4  ;;  %4052 = vmatprep.subr.bf16.mxu1 %v4487_v31  ;;  %v6833_v4 = vld [vmem:[#allocation46_spill] sm:$0xff] }
 0x173   : > { %4053 = vmatpush3.bf16.msra.mxu1 %v4488_v59 }
 0x174   : > { %4054 = vmatprep.subr.bf16.mxu1 %v4489_v50 }
 0x175   : > { %3945 = vmatpush3.bf16.msra.mxu0 %v4482_v44  ;;  %v6834_v44 = vld [vmem:[#allocation47_spill] sm:$0xff] }
 0x177   : > { %2249 = vmatmul.mubr.bf16.gmra.mxu0 %v5342_v6  ;;  %v6818_v6 = vld [vmem:[#allocation31_spill] sm:$0xff]  ;;  %4055 = vmatpush3.bf16.msra.mxu1 %v4490_v39 }
 0x178   : > { %2442 = vmatmul.mubr.bf16.gmra.mxu1 %v6811_v45  ;;  %2258 = vmatprep.mubr.bf16.mxu0 %v6812_v46 }
 0x179   : > { %2451 = vmatprep.mubr.bf16.mxu1 %v6813_v53  ;;  %4056 = vmatprep.subr.bf16.mxu1 %v4491_v60 }
 0x17b   : > { %4057 = vmatpush3.bf16.msra.mxu1 %v4492_v37 }
 0x17f   : > { %2259 = vmatmul.mubr.bf16.gmra.mxu0 %v6814_v32 }
 0x180   : > { %2452 = vmatmul.mubr.bf16.gmra.mxu1 %v6815_v36  ;;  %2268 = vmatprep.mubr.bf16.mxu0 %v6816_v56  ;;  %v6835_v56 = vld [vmem:[#allocation48_spill] sm:$0xff] }
 0x181   : > { %2461 = vmatprep.mubr.bf16.mxu1 %v6817_v61  ;;  %v6836_v61 = vld [vmem:[#allocation49_spill] sm:$0xff] }
 0x187   : > { %2269 = vmatmul.mubr.bf16.gmra.mxu0 %v5423_v33 }
 0x188   : > { %2462 = vmatmul.mubr.bf16.gmra.mxu1 %v5429_v27  ;;  %2278 = vmatprep.mubr.bf16.mxu0 %v6818_v6  ;;  %v6824_v27 = vld [vmem:[#allocation37_spill] sm:$0xff]  ;;  %v6837_v6 = vld [vmem:[#allocation50_spill] sm:$0xff] }
 0x189   : > { %2471 = vmatprep.mubr.bf16.mxu1 %v6819_v2 }
 0x18f   : > { %2279 = vmatmul.mubr.bf16.gmra.mxu0 %v6820_v5 }
 0x190   : > { %2472 = vmatmul.mubr.bf16.gmra.mxu1 %v6821_v34  ;;  %2288 = vmatprep.mubr.bf16.mxu0 %v6822_v3 }
 0x191   : > { %2481 = vmatprep.mubr.bf16.mxu1 %v6823_v15 }
 0x197   : > { %v5758_v12 = vpop.f32.mrf.mxu0  ;;  %2289 = vmatmul.mubr.bf16.gmra.mxu0 %v6824_v27 }
 0x198   : > { %v5760_v33 = vpop.f32.mrf.mxu1  ;;  %2482 = vmatmul.mubr.bf16.gmra.mxu1 %v6825_v25  ;;  %2298 = vmatprep.mubr.bf16.mxu0 %v6826_v0 }
 0x199   : > { %2491 = vmatprep.mubr.bf16.mxu1 %v6827_v28  ;;  %v5766_v55 = vpop.f32.mrf.mxu0 }
 0x19a   : > { %v5768_v23 = vpop.f32.mrf.mxu1 }
 0x19b   : > { %v5770_v9 = vpop.f32.mrf.mxu0 }
 0x19c   : > { %v5772_v51 = vpop.f32.mrf.mxu1 }
 0x19d   : > { %v5774_v13 = vpop.f32.mrf.mxu0 }
 0x19e   : > { %v5776_v16 = vpop.f32.mrf.mxu1 }
 0x19f   : > { %v5778_v43 = vpop.f32.mrf.mxu0  ;;  %2299 = vmatmul.mubr.bf16.gmra.mxu0 %v6828_v20  ;;  %v5858_v20 = vld [vmem:[#allocation10] sm:$0xf] }
 0x1a0   : > { %v5780_v35 = vpop.f32.mrf.mxu1  ;;  %2492 = vmatmul.mubr.bf16.gmra.mxu1 %v6829_v40  ;;  %2308 = vmatprep.mubr.bf16.mxu0 %v6830_v41  ;;  %6838 = vst [vmem:[#allocation24_spill] sm:$0xff] %v5858_v20 }
 0x1a1   : > { %2501 = vmatprep.mubr.bf16.mxu1 %v6831_v49  ;;  %v5786_v1 = vpop.f32.mrf.mxu0 }
 0x1a2   : > { %v5788_v63 = vpop.f32.mrf.mxu1 }
 0x1a3   : > { %v5790_v17 = vpop.f32.mrf.mxu0 }
 0x1a4   : > { %v5792_v22 = vpop.f32.mrf.mxu1 }
 0x1a5   : > { %v5794_v18 = vpop.f32.mrf.mxu0 }
 0x1a6   : > { %v5796_v24 = vpop.f32.mrf.mxu1 }
 0x1a7   : > { %v5798_v29 = vpop.f32.mrf.mxu0  ;;  %2309 = vmatmul.mubr.bf16.gmra.mxu0 %v5576_v8 }
 0x1a8   : > { %v5800_v42 = vpop.f32.mrf.mxu1  ;;  %2502 = vmatmul.mubr.bf16.gmra.mxu1 %v6832_v7  ;;  %2318 = vmatprep.mubr.bf16.mxu0 %v6833_v4 }
 0x1a9   : > { %2511 = vmatprep.mubr.bf16.mxu1 %v6834_v44  ;;  %v5806_v45 = vpop.f32.mrf.mxu0 }
 0x1aa   : > { %v5808_v46 = vpop.f32.mrf.mxu1 }
 0x1ab   : > { %v5810_v53 = vpop.f32.mrf.mxu0 }
 0x1ac   : > { %v5812_v31 = vpop.f32.mrf.mxu1 }
 0x1ad   : > { %v5814_v59 = vpop.f32.mrf.mxu0 }
 0x1ae   : > { %v5816_v32 = vpop.f32.mrf.mxu1 }
 0x1af   : > { %v5818_v36 = vpop.f32.mrf.mxu0  ;;  %2319 = vmatmul.mubr.bf16.gmra.mxu0 %v5608_v52 }
 0x1b0   : > { %v5820_v8 = vpop.f32.mrf.mxu1  ;;  %2512 = vmatmul.mubr.bf16.gmra.mxu1 %v6835_v56  ;;  %2328 = vmatprep.mubr.bf16.mxu0 %v6836_v61 }
 0x1b1   : > { %2521 = vmatprep.mubr.bf16.mxu1 %v6837_v6  ;;  %v5826_v2 = vpop.f32.mrf.mxu0 }
 0x1b2   : > { %v5828_v50 = vpop.f32.mrf.mxu1 }
 0x1b3   : > { %v5830_v39 = vpop.f32.mrf.mxu0 }
 0x1b4   : > { %v5832_v5 = vpop.f32.mrf.mxu1 }
 0x1b5   : > { %v5834_v34 = vpop.f32.mrf.mxu0 }
 0x1b6   : > { %v5836_v3 = vpop.f32.mrf.mxu1 }
 0x1b7   : > { %v5838_v15 = vpop.f32.mrf.mxu0  ;;  %2329 = vmatmul.mubr.bf16.gmra.mxu0 %v5646_v48 }
 0x1b8   : > { %v5840_v52 = vpop.f32.mrf.mxu1  ;;  %2522 = vmatmul.mubr.bf16.gmra.mxu1 %v5648_v26  ;;  %2338 = vmatprep.mubr.bf16.mxu0 %v5658_v57  ;;  %v6839_v57 = vld [vmem:[#allocation20_spill] sm:$0xff] }
 0x1b9   : > { %2531 = vmatprep.mubr.bf16.mxu1 %v5660_v14  ;;  %v5846_v27 = vpop.f32.mrf.mxu0  ;;  %v5868_v14 = vrot.slane %v5858_v20, %v6839_v57 }
 0x1ba   : > { %v5848_v25 = vpop.f32.mrf.mxu1 }
 0x1bb   : > { %v5850_v0 = vpop.f32.mrf.mxu0  ;;  %v1831_v49 = vadd.f32 %v5774_v13, %v5868_v14 }
 0x1bc   : > { %v5852_v28 = vpop.f32.mrf.mxu1 }
 0x1bd   : > { %v5854_v60 = vpop.f32.mrf.mxu0 }
 0x1be   : > { %v5856_v37 = vpop.f32.mrf.mxu1 }
 0x1bf   : > { %v5860_v48 = vpop.f32.mrf.mxu0  ;;  %2339 = vmatmul.mubr.bf16.gmra.mxu0 %v5678_v11 }
 0x1c0   : > { %v5862_v26 = vpop.f32.mrf.mxu1  ;;  %2532 = vmatmul.mubr.bf16.gmra.mxu1 %v5680_v38  ;;  %2348 = vmatprep.mubr.bf16.mxu0 %v5682_v58  ;;  %v1827_v38 = vadd.f32 %v5766_v55, %v5868_v14  ;;  %v2024_v58 = vadd.f32 %v5776_v16, %v1831_v49 }
 0x1c1   : > { %2541 = vmatprep.mubr.bf16.mxu1 %v5684_v54  ;;  %v5872_v40 = vpop.f32.mrf.mxu0  ;;  %v6840_v54 = vld [vmem:[#allocation22_spill] sm:$0xff] }
 0x1c2   : > { %v5874_v41 = vpop.f32.mrf.mxu1  ;;  %v5891_v56 = vrot.slane %v5858_v20, %v6840_v54  ;;  %v2020_v55 = vadd.f32 %v5768_v23, %v1827_v38  ;;  %v2567_v49 = vmax.f32 %v2024_v58, 0.0  ;;  %v1841_v54 = vadd.f32 %v5794_v18, %v5868_v14 }
 0x1c3   : > { %v5878_v7 = vpop.f32.mrf.mxu0 }
 0x1c4   : > { %v5880_v11 = vpop.f32.mrf.mxu1  ;;  %v1829_v16 = vadd.f32 %v5770_v9, %v5891_v56  ;;  %v2034_v58 = vadd.f32 %v5796_v24, %v1841_v54 }
 0x1c5   : > { %v5884_v4 = vpop.f32.mrf.mxu0 }
 0x1c6   : > { %v5886_v44 = vpop.f32.mrf.mxu1  ;;  %v2022_v9 = vadd.f32 %v5772_v51, %v1829_v16 }
 0x1c7   : > { %v5893_v61 = vpop.f32.mrf.mxu0  ;;  %2349 = vmatmul.mubr.bf16.gmra.mxu0 %v5702_v21  ;;  %v1825_v21 = vadd.f32 %v5758_v12, %v5891_v56 }
 0x1c8   : > { %6841 = vst [vmem:[#allocation25_spill] sm:$0xff] %v5893_v61  ;;  %v5895_v13 = vpop.f32.mrf.mxu1  ;;  %2542 = vmatmul.mubr.bf16.gmra.mxu1 %v5704_v19  ;;  %2358 = vmatprep.mubr.bf16.mxu0 %v5710_v47  ;;  %v2563_v47 = vmax.f32 %v2020_v55, 0.0  ;;  %v2566_v51 = vmax.f32 %v2022_v9, 0.0  ;;  %v1839_v55 = vadd.f32 %v5790_v17, %v5891_v56  ;;  %v1847_v17 = vadd.f32 %v5806_v45, %v5868_v14 }
 0x1c9   : > { %6842 = vst [vmem:[#allocation26_spill] sm:$0xff] %v5895_v13  ;;  %2551 = vmatprep.mubr.bf16.mxu1 %v5712_v30  ;;  %v5904_v6 = vpop.f32.mrf.mxu0  ;;  %v1837_v30 = vadd.f32 %v5786_v1, %v5868_v14  ;;  %v2018_v13 = vadd.f32 %v5760_v33, %v1825_v21  ;;  %v2575_v33 = vmax.f32 %v2034_v58, 0.0 }
 0x1ca   : > { %v5906_v57 = vpop.f32.mrf.mxu1  ;;  %v2691_v18 = vpack.c.bf16 %v2567_v49, %v2563_v47  ;;  %v1851_v49 = vadd.f32 %v5814_v59, %v5868_v14 }
 0x1cb   : > { %v5912_v19 = vpop.f32.mrf.mxu0  ;;  %v2030_v1 = vadd.f32 %v5788_v63, %v1837_v30  ;;  %v2562_v54 = vmax.f32 %v2018_v13, 0.0  ;;  %v2032_v30 = vadd.f32 %v5792_v22, %v1839_v55  ;;  %v1849_v22 = vadd.f32 %v5810_v53, %v5891_v56 }
 0x1cc   : > { %v5914_v23 = vpop.f32.mrf.mxu1  ;;  %v2044_v59 = vadd.f32 %v5816_v32, %v1851_v49  ;;  %v1845_v49 = vadd.f32 %v5798_v29, %v5891_v56  ;;  %v1857_v53 = vadd.f32 %v5826_v2, %v5868_v14 }
 0x1cd   : > { %v5919_v38 = vpop.f32.mrf.mxu0  ;;  %v2571_v21 = vmax.f32 %v2030_v1, 0.0  ;;  %v2690_v47 = vpack.c.bf16 %v2566_v51, %v2562_v54  ;;  %v2040_v1 = vadd.f32 %v5808_v46, %v1847_v17  ;;  %v2574_v45 = vmax.f32 %v2032_v30, 0.0 }
 0x1ce   : > { %v5921_v20 = vpop.f32.mrf.mxu1  ;;  %v2583_v32 = vmax.f32 %v2044_v59, 0.0  ;;  %v2042_v17 = vadd.f32 %v5812_v31, %v1849_v22  ;;  %v2038_v29 = vadd.f32 %v5800_v42, %v1845_v49  ;;  %v1859_v31 = vadd.f32 %v5830_v39, %v5891_v56 }
 0x1cf   : > { %v5925_v12 = vpop.f32.mrf.mxu0  ;;  %2359 = vmatmul.mubr.bf16.gmra.mxu0 %v5718_v10  ;;  %v1835_v10 = vadd.f32 %v5778_v43, %v5891_v56  ;;  %v2695_v13 = vpack.c.bf16 %v2575_v33, %v2571_v21  ;;  %v1871_v42 = vadd.f32 %v5854_v60, %v5868_v14  ;;  %v1867_v39 = vadd.f32 %v5846_v27, %v5868_v14 }
 0x1d0   : > { %v5927_v61 = vpop.f32.mrf.mxu1  ;;  %2552 = vmatmul.mubr.bf16.gmra.mxu1 %v5720_v62  ;;  %3049 = vmatprep.mubr.bf16.mxu0 %v2691_v18  ;;  %v2582_v2 = vmax.f32 %v2042_v17, 0.0 }
 0x1d1   : > { %6843 = vst [vmem:[#allocation27_spill] sm:$0xff] %v5927_v61  ;;  %v5934_v16 = vpop.f32.mrf.mxu0  ;;  %v2028_v43 = vadd.f32 %v5780_v35, %v1835_v10  ;;  %v1861_v35 = vadd.f32 %v5834_v34, %v5868_v14  ;;  %v2579_v10 = vmax.f32 %v2040_v1, 0.0  ;;  %v2050_v1 = vadd.f32 %v5828_v50, %v1857_v53 }
 0x1d2   : > { %v5936_v24 = vpop.f32.mrf.mxu1  ;;  %v2052_v53 = vadd.f32 %v5832_v5, %v1859_v31  ;;  %v2064_v60 = vadd.f32 %v5856_v37, %v1871_v42  ;;  %v1869_v5 = vadd.f32 %v5850_v0, %v5891_v56  ;;  %v1865_v42 = vadd.f32 %v5838_v15, %v5891_v56 }
 0x1d3   : > { %v5942_v62 = vpop.f32.mrf.mxu0  ;;  %v2570_v33 = vmax.f32 %v2028_v43, 0.0  ;;  %v2054_v34 = vadd.f32 %v5836_v3, %v1861_v35  ;;  %v2699_v59 = vpack.c.bf16 %v2583_v32, %v2579_v10  ;;  %v2578_v32 = vmax.f32 %v2038_v29, 0.0 }
 0x1d4   : > { %v5944_v63 = vpop.f32.mrf.mxu1  ;;  %v1855_v35 = vadd.f32 %v5818_v36, %v5891_v56  ;;  %v2587_v49 = vmax.f32 %v2050_v1, 0.0  ;;  %v2060_v1 = vadd.f32 %v5848_v25, %v1867_v39  ;;  %v2590_v27 = vmax.f32 %v2052_v53, 0.0 }
 0x1d5   : > { %v5949_v9 = vpop.f32.mrf.mxu0  ;;  %v2694_v21 = vpack.c.bf16 %v2574_v45, %v2570_v33  ;;  %v2591_v3 = vmax.f32 %v2054_v34, 0.0  ;;  %v2698_v10 = vpack.c.bf16 %v2582_v2, %v2578_v32  ;;  %v2599_v37 = vmax.f32 %v2064_v60, 0.0 }
 0x1d6   : > { %v5951_v58 = vpop.f32.mrf.mxu1  ;;  %v2048_v36 = vadd.f32 %v5820_v8, %v1855_v35  ;;  %v1881_v8 = vadd.f32 %v5884_v4, %v5868_v14  ;;  %v2595_v35 = vmax.f32 %v2060_v1, 0.0  ;;  %v1877_v0 = vadd.f32 %v5872_v40, %v5868_v14 }
 0x1d7   : > { %v5955_v18 = vpop.f32.mrf.mxu0  ;;  %3050 = vmatmul.mubr.bf16.vlgmr.msra.gmra.mxu0 %v2690_v47  ;;  %v2703_v34 = vpack.c.bf16 %v2591_v3, %v2587_v49  ;;  %v2062_v39 = vadd.f32 %v5852_v28, %v1869_v5  ;;  %v2058_v15 = vadd.f32 %v5840_v52, %v1865_v42  ;;  %v1879_v28 = vadd.f32 %v5878_v7, %v5891_v56 }
 0x1d8   : > { %v5957_v61 = vpop.f32.mrf.mxu1  ;;  %3057 = vmatprep.mubr.bf16.mxu0 %v2695_v13  ;;  %v2586_v3 = vmax.f32 %v2048_v36, 0.0  ;;  %v2074_v4 = vadd.f32 %v5886_v44, %v1881_v8  ;;  %v2707_v60 = vpack.c.bf16 %v2599_v37, %v2595_v35  ;;  %v2070_v1 = vadd.f32 %v5874_v41, %v1877_v0 }
 0x1d9   : > { %v5962_v51 = vpop.f32.mrf.mxu0  ;;  %v2598_v40 = vmax.f32 %v2062_v39, 0.0  ;;  %v1891_v52 = vadd.f32 %v5919_v38, %v5868_v14  ;;  %v2594_v37 = vmax.f32 %v2058_v15, 0.0  ;;  %v1875_v8 = vadd.f32 %v5860_v48, %v5891_v56 }
 0x1da   : > { %v5964_v55 = vpop.f32.mrf.mxu1  ;;  %v2702_v49 = vpack.c.bf16 %v2590_v27, %v2586_v3  ;;  %v2607_v44 = vmax.f32 %v2074_v4, 0.0  ;;  %v2603_v42 = vmax.f32 %v2070_v1, 0.0  ;;  %v1887_v7 = vadd.f32 %v5904_v6, %v5868_v14 }
 0x1db   : > { %v5970_v54 = vpop.f32.mrf.mxu0  ;;  %v2706_v35 = vpack.c.bf16 %v2598_v40, %v2594_v37  ;;  %v2072_v0 = vadd.f32 %v5880_v11, %v1879_v28  ;;  %v2084_v38 = vadd.f32 %v5921_v20, %v1891_v52  ;;  %v2068_v48 = vadd.f32 %v5862_v26, %v1875_v8  ;;  %v6846_v52 = vld [vmem:[#allocation25_spill] sm:$0xff] }
 0x1dc   : > { %v5972_v46 = vpop.f32.mrf.mxu1  ;;  %v2711_v4 = vpack.c.bf16 %v2607_v44, %v2603_v42  ;;  %v2080_v1 = vadd.f32 %v5906_v57, %v1887_v7  ;;  %v1889_v11 = vadd.f32 %v5912_v19, %v5891_v56  ;;  %v1901_v26 = vadd.f32 %v5949_v9, %v5868_v14 }
 0x1dd   : > { %v5977_v47 = vpop.f32.mrf.mxu0  ;;  %v2606_v6 = vmax.f32 %v2072_v0, 0.0  ;;  %v2615_v20 = vmax.f32 %v2084_v38, 0.0  ;;  %v2602_v44 = vmax.f32 %v2068_v48, 0.0  ;;  %v1885_v37 = vadd.f32 %v6846_v52, %v5891_v56  ;;  %v6847_v48 = vld [vmem:[#allocation26_spill] sm:$0xff] }
 0x1de   : > { %v5979_v30 = vpop.f32.mrf.mxu1  ;;  %v2611_v42 = vmax.f32 %v2080_v1, 0.0  ;;  %v1897_v19 = vadd.f32 %v5934_v16, %v5868_v14  ;;  %v2094_v9 = vadd.f32 %v5951_v58, %v1901_v26 }
 0x1df   : > { %v5983_v13 = vpop.f32.mrf.mxu0  ;;  %3058 = vmatmul.mubr.bf16.gmra.mxu0 %v2694_v21  ;;  %v2710_v7 = vpack.c.bf16 %v2606_v6, %v2602_v44  ;;  %v2078_v52 = vadd.f32 %v6847_v48, %v1885_v37  ;;  %v1895_v44 = vadd.f32 %v5925_v12, %v5891_v56  ;;  %v6849_v48 = vld [vmem:[#allocation27_spill] sm:$0xff] }
 0x1e0   : > { %v5985_v43 = vpop.f32.mrf.mxu1  ;;  %3065 = vmatprep.mubr.bf16.mxu0 %v2699_v59  ;;  %v2090_v1 = vadd.f32 %v5936_v24, %v1897_v19  ;;  %v2623_v58 = vmax.f32 %v2094_v9, 0.0 }
 0x1e1   : > { %v5990_v45 = vpop.f32.mrf.mxu0  ;;  %v2610_v26 = vmax.f32 %v2078_v52, 0.0  ;;  %v2088_v12 = vadd.f32 %v6849_v48, %v1895_v44 }
 0x1e2   : > { %v5992_v22 = vpop.f32.mrf.mxu1 }
 0x1e3   : > { %v5998_v33 = vpop.f32.mrf.mxu0 }
 0x1e4   : > { %v6000_v50 = vpop.f32.mrf.mxu1 }
 0x1e5   : > { %v6005_v21 = vpop.f32.mrf.mxu0 }
 0x1e6   : > { %v6007_v17 = vpop.f32.mrf.mxu1 }
 0x1e7   : > { %v6011_v59 = vpop.f32.mrf.mxu0  ;;  %3066 = vmatmul.mubr.bf16.gmra.mxu0 %v2698_v10 }
 0x1e8   : > { %v6013_v29 = vpop.f32.mrf.mxu1  ;;  %3073 = vmatprep.mubr.bf16.mxu0 %v2703_v34 }
 0x1e9   : > { %v6018_v2 = vpop.f32.mrf.mxu0 }
 0x1ea   : > { %v6020_v31 = vpop.f32.mrf.mxu1 }
 0x1eb   : > { %v6026_v32 = vpop.f32.mrf.mxu0 }
 0x1ec   : > { %v6028_v25 = vpop.f32.mrf.mxu1 }
 0x1ed   : > { %v6033_v10 = vpop.f32.mrf.mxu0 }
 0x1ee   : > { %v6035_v53 = vpop.f32.mrf.mxu1 }
 0x1ef   : > { %v6039_v34 = vpop.f32.mrf.mxu0  ;;  %3074 = vmatmul.mubr.bf16.gmra.mxu0 %v2702_v49 }
 0x1f0   : > { %v6041_v36 = vpop.f32.mrf.mxu1  ;;  %3081 = vmatprep.mubr.bf16.mxu0 %v2707_v60 }
 0x1f1   : > { %v6046_v27 = vpop.f32.mrf.mxu0 }
 0x1f2   : > { %v6048_v5 = vpop.f32.mrf.mxu1 }
 0x1f3   : > { %v6054_v3 = vpop.f32.mrf.mxu0 }
 0x1f4   : > { %v6056_v41 = vpop.f32.mrf.mxu1 }
 0x1f5   : > { %v6061_v49 = vpop.f32.mrf.mxu0 }
 0x1f6   : > { %v6063_v39 = vpop.f32.mrf.mxu1 }
 0x1f7   : > { %v6067_v60 = vpop.f32.mrf.mxu0  ;;  %3082 = vmatmul.mubr.bf16.gmra.mxu0 %v2706_v35  ;;  %v2082_v35 = vadd.f32 %v5914_v23, %v1889_v11  ;;  %v1899_v23 = vadd.f32 %v5942_v62, %v5891_v56  ;;  %v1907_v62 = vadd.f32 %v5962_v51, %v5868_v14 }
 0x1f8   : > { %6844 = vst [vmem:[#allocation28_spill] sm:$0xff] %v6067_v60  ;;  %v6069_v15 = vpop.f32.mrf.mxu1  ;;  %3089 = vmatprep.mubr.bf16.mxu0 %v2711_v4  ;;  %v2715_v4 = vpack.c.bf16 %v2615_v20, %v2611_v42  ;;  %v1911_v20 = vadd.f32 %v5977_v47, %v5868_v14  ;;  %v2619_v42 = vmax.f32 %v2090_v1, 0.0 }
 0x1f9   : > { %6845 = vst [vmem:[#allocation29_spill] sm:$0xff] %v6069_v15  ;;  %v6074_v40 = vpop.f32.mrf.mxu0  ;;  %v2614_v16 = vmax.f32 %v2082_v35, 0.0  ;;  %v2100_v1 = vadd.f32 %v5964_v55, %v1907_v62 }
 0x1fa   : > { %v6076_v28 = vpop.f32.mrf.mxu1  ;;  %v2104_v47 = vadd.f32 %v5979_v30, %v1911_v20  ;;  %v2618_v20 = vmax.f32 %v2088_v12, 0.0 }
 0x1fb   : > { %v6082_v8 = vpop.f32.mrf.mxu0  ;;  %v2714_v19 = vpack.c.bf16 %v2614_v16, %v2610_v26  ;;  %v1905_v26 = vadd.f32 %v5955_v18, %v5891_v56 }
 0x1fc   : > { %v6084_v57 = vpop.f32.mrf.mxu1  ;;  %v2631_v30 = vmax.f32 %v2104_v47, 0.0 }
 0x1fd   : > { %v6089_v0 = vpop.f32.mrf.mxu0  ;;  %v2098_v18 = vadd.f32 %v5957_v61, %v1905_v26 }
 0x1fe   : > { %v6091_v38 = vpop.f32.mrf.mxu1 }
 0x1ff   : > { %v6095_v15 = vpop.f32.mrf.mxu0  ;;  %3090 = vmatmul.mubr.bf16.gmra.mxu0 %v2710_v7  ;;  %v2092_v7 = vadd.f32 %v5944_v63, %v1899_v23  ;;  %v1909_v63 = vadd.f32 %v5970_v54, %v5891_v56  ;;  %v1917_v54 = vadd.f32 %v5990_v45, %v5868_v14 }
 0x200   : > { %v6097_v60 = vpop.f32.mrf.mxu1  ;;  %3097 = vmatprep.mubr.bf16.mxu0 %v2715_v4  ;;  %v2719_v4 = vpack.c.bf16 %v2623_v58, %v2619_v42  ;;  %v1921_v58 = vadd.f32 %v6005_v21, %v5868_v14  ;;  %v2627_v42 = vmax.f32 %v2100_v1, 0.0 }
 0x201   : > { %6848 = vst [vmem:[#allocation30_spill] sm:$0xff] %v6097_v60  ;;  %v6102_v6 = vpop.f32.mrf.mxu0  ;;  %v2622_v51 = vmax.f32 %v2092_v7, 0.0  ;;  %v2110_v1 = vadd.f32 %v5992_v22, %v1917_v54  ;;  %v1927_v22 = vadd.f32 %v6018_v2, %v5868_v14 }
 0x202   : > { %v6104_v11 = vpop.f32.mrf.mxu1  ;;  %v2114_v21 = vadd.f32 %v6007_v17, %v1921_v58  ;;  %v1915_v58 = vadd.f32 %v5983_v13, %v5891_v56  ;;  %v6857_v13 = vld [vmem:[#allocation24_spill] sm:$0xff] }
 0x203   : > { %v6110_v37 = vpop.f32.mrf.mxu0  ;;  %v2718_v62 = vpack.c.bf16 %v2622_v51, %v2618_v20  ;;  %v1931_v51 = vadd.f32 %v6033_v10, %v5868_v14 }
 0x204   : > { %v6112_v24 = vpop.f32.mrf.mxu1  ;;  %v2639_v61 = vmax.f32 %v2114_v21, 0.0  ;;  %v2108_v2 = vadd.f32 %v5985_v43, %v1915_v58  ;;  %v1941_v43 = vadd.f32 %v6061_v49, %v5868_v14 }
 0x205   : > { %v6117_v35 = vpop.f32.mrf.mxu0  ;;  %v2124_v54 = vadd.f32 %v6035_v53, %v1931_v51 }
 0x206   : > { %v6119_v9 = vpop.f32.mrf.mxu1  ;;  %v2634_v58 = vmax.f32 %v2108_v2, 0.0  ;;  %v2134_v2 = vadd.f32 %v6063_v39, %v1941_v43  ;;  %v1939_v39 = vadd.f32 %v6054_v3, %v5891_v56 }
 0x207   : > { %v6123_v52 = vpop.f32.mrf.mxu0  ;;  %3098 = vmatmul.mubr.bf16.gmra.mxu0 %v2714_v19  ;;  %v2102_v19 = vadd.f32 %v5972_v46, %v1909_v63  ;;  %v1919_v46 = vadd.f32 %v5998_v33, %v5891_v56  ;;  %v2635_v33 = vmax.f32 %v2110_v1, 0.0  ;;  %v2647_v51 = vmax.f32 %v2124_v54, 0.0 }
 0x208   : > { %v6125_v60 = vpop.f32.mrf.mxu1  ;;  %3105 = vmatprep.mubr.bf16.mxu0 %v2719_v4  ;;  %v2723_v4 = vpack.c.bf16 %v2631_v30, %v2627_v42  ;;  %v2626_v30 = vmax.f32 %v2098_v18, 0.0  ;;  %v2655_v43 = vmax.f32 %v2134_v2, 0.0 }
 0x209   : > { %6850 = vst [vmem:[#allocation31_spill] sm:$0xff] %v6125_v60  ;;  %v6130_v16 = vpop.f32.mrf.mxu0  ;;  %v2630_v45 = vmax.f32 %v2102_v19, 0.0  ;;  %v2112_v10 = vadd.f32 %v6000_v50, %v1919_v46  ;;  %v2727_v21 = vpack.c.bf16 %v2639_v61, %v2635_v33  ;;  %v1929_v46 = vadd.f32 %v6026_v32, %v5891_v56 }
 0x20a   : > { %v6132_v23 = vpop.f32.mrf.mxu1  ;;  %v1937_v32 = vadd.f32 %v6046_v27, %v5868_v14  ;;  %v1935_v27 = vadd.f32 %v6039_v34, %v5891_v56 }
 0x20b   : > { %v6138_v44 = vpop.f32.mrf.mxu0  ;;  %v2722_v42 = vpack.c.bf16 %v2630_v45, %v2626_v30  ;;  %v2638_v53 = vmax.f32 %v2112_v10, 0.0 }
 0x20c   : > { %v6140_v55 = vpop.f32.mrf.mxu1 }
 0x20d   : > { %v6145_v7 = vpop.f32.mrf.mxu0 }
 0x20e   : > { %v6147_v47 = vpop.f32.mrf.mxu1 }
 0x20f   : > { %v6151_v48 = vpop.f32.mrf.mxu0  ;;  %3106 = vmatmul.mubr.bf16.gmra.mxu0 %v2718_v62 }
 0x210   : > { %6851 = vst [vmem:[#allocation32_spill] sm:$0xff] %v6151_v48  ;;  %v6153_v12 = vpop.f32.mrf.mxu1  ;;  %3113 = vmatprep.mubr.bf16.mxu0 %v2723_v4  ;;  %v6856_v4 = vld [vmem:[#allocation21_spill] sm:$0xff] }
 0x211   : > { %6852 = vst [vmem:[#allocation33_spill] sm:$0xff] %v6153_v12  ;;  %v6160_v63 = vpop.f32.mrf.mxu0  ;;  %v6180_v18 = vrot.slane %v6857_v13, %v6856_v4  ;;  %v2120_v12 = vadd.f32 %v6020_v31, %v1927_v22  ;;  %v1925_v22 = vadd.f32 %v6011_v59, %v5891_v56  ;;  %v2122_v4 = vadd.f32 %v6028_v25, %v1929_v46 }
 0x212   : > { %v6162_v17 = vpop.f32.mrf.mxu1  ;;  %v2130_v25 = vadd.f32 %v6048_v5, %v1937_v32  ;;  %v1947_v5 = vadd.f32 %v6074_v40, %v5868_v14 }
 0x213   : > { %6853 = vst [vmem:[#allocation34_spill] sm:$0xff] %v6162_v17  ;;  %v6168_v20 = vpop.f32.mrf.mxu0  ;;  %v2646_v46 = vmax.f32 %v2122_v4, 0.0 }
 0x214   : > { %6854 = vst [vmem:[#allocation35_spill] sm:$0xff] %v6168_v20  ;;  %v6170_v26 = vpop.f32.mrf.mxu1 }
 0x215   : > { %6855 = vst [vmem:[#allocation36_spill] sm:$0xff] %v6170_v26  ;;  %v6174_v62 = vpop.f32.mrf.mxu0  ;;  %v6858_v26 = vld [vmem:[#allocation23_spill] sm:$0xff] }
 0x216   : > { %v6176_v19 = vpop.f32.mrf.mxu1  ;;  %v6186_v1 = vrot.slane %v6857_v13, %v6858_v26  ;;  %v2643_v26 = vmax.f32 %v2120_v12, 0.0 }
 0x217   : > { %v2210_v50 = vpop.f32.mrf.mxu0  ;;  %3114 = vmatmul.mubr.bf16.gmra.mxu0 %v2722_v42 }
 0x218   : > { %v2403_v45 = vpop.f32.mrf.mxu1  ;;  %3121 = vmatprep.mubr.bf16.mxu0 %v2727_v21  ;;  %v2211_v33 = vadd.f32 %v2210_v50, %v6186_v1  ;;  %v2726_v21 = vpack.c.bf16 %v2638_v53, %v2634_v58  ;;  %v2118_v50 = vadd.f32 %v6013_v29, %v1925_v22 }
 0x219   : > { %v2212_v61 = vpop.f32.mrf.mxu0 }
 0x21a   : > { %v2405_v30 = vpop.f32.mrf.mxu1  ;;  %v2213_v31 = vadd.f32 %v2212_v61, %v6180_v18  ;;  %v2731_v61 = vpack.c.bf16 %v2647_v51, %v2643_v26  ;;  %v2404_v20 = vadd.f32 %v2403_v45, %v2211_v33  ;;  %v1951_v51 = vadd.f32 %v6089_v0, %v5868_v14 }
 0x21b   : > { %v2214_v42 = vpop.f32.mrf.mxu0  ;;  %v2642_v34 = vmax.f32 %v2118_v50, 0.0  ;;  %v2651_v0 = vmax.f32 %v2130_v25, 0.0  ;;  %v1949_v25 = vadd.f32 %v6082_v8, %v5891_v56 }
 0x21c   : > { %v2407_v10 = vpop.f32.mrf.mxu1  ;;  %v2215_v54 = vadd.f32 %v2214_v42, %v6186_v1  ;;  %v2406_v48 = vadd.f32 %v2405_v30, %v2213_v31  ;;  %v2564_v26 = vmax.f32 %v2404_v20, 0.0  ;;  %v2144_v4 = vadd.f32 %v6091_v38, %v1951_v51 }
 0x21d   : > { %v2216_v49 = vpop.f32.mrf.mxu0  ;;  %v2735_v2 = vpack.c.bf16 %v2655_v43, %v2651_v0 }
 0x21e   : > { %v2409_v13 = vpop.f32.mrf.mxu1  ;;  %v2408_v59 = vadd.f32 %v2407_v10, %v2215_v54  ;;  %v2217_v12 = vadd.f32 %v2216_v49, %v6180_v18  ;;  %v2565_v31 = vmax.f32 %v2406_v48, 0.0  ;;  %v2128_v10 = vadd.f32 %v6041_v36, %v1935_v27 }
 0x21f   : > { %v2220_v17 = vpop.f32.mrf.mxu0  ;;  %3122 = vmatmul.mubr.bf16.gmra.mxu0 %v2726_v21  ;;  %v2730_v21 = vpack.c.bf16 %v2646_v46, %v2642_v34  ;;  %v2132_v48 = vadd.f32 %v6056_v41, %v1939_v39  ;;  %v2140_v36 = vadd.f32 %v6076_v28, %v1947_v5  ;;  %v1957_v5 = vadd.f32 %v6102_v6, %v5868_v14 }
 0x220   : > { %v2413_v60 = vpop.f32.mrf.mxu1  ;;  %v2410_v53 = vadd.f32 %v2409_v13, %v2217_v12  ;;  %3129 = vmatprep.mubr.bf16.mxu0 %v2731_v61  ;;  %v2568_v30 = vmax.f32 %v2408_v59, 0.0  ;;  %v2221_v33 = vadd.f32 %v2220_v17, %v6186_v1  ;;  %v2650_v27 = vmax.f32 %v2128_v10, 0.0 }
 0x221   : > { %v2222_v29 = vpop.f32.mrf.mxu0  ;;  %v2654_v38 = vmax.f32 %v2132_v48, 0.0 }
 0x222   : > { %v2415_v45 = vpop.f32.mrf.mxu1  ;;  %v2569_v58 = vmax.f32 %v2410_v53, 0.0  ;;  %v2223_v22 = vadd.f32 %v2222_v29, %v6180_v18  ;;  %v2692_v49 = vpack.c.bf16 %v2568_v30, %v2564_v26  ;;  %v2414_v59 = vadd.f32 %v2413_v60, %v2221_v33 }
 0x223   : > { %v2224_v42 = vpop.f32.mrf.mxu0  ;;  %v2663_v53 = vmax.f32 %v2144_v4, 0.0  ;;  %v1961_v30 = vadd.f32 %v6117_v35, %v5868_v14  ;;  %v2734_v35 = vpack.c.bf16 %v2654_v38, %v2650_v27 }
 0x224   : > { %v2417_v3 = vpop.f32.mrf.mxu1  ;;  %v2225_v32 = vadd.f32 %v2224_v42, %v6186_v1  ;;  %v2693_v54 = vpack.c.bf16 %v2569_v58, %v2565_v31  ;;  %v2416_v40 = vadd.f32 %v2415_v45, %v2223_v22  ;;  %v6859_v45 = vld [vmem:[#allocation28_spill] sm:$0xff]  ;;  %v2659_v31 = vmax.f32 %v2140_v36, 0.0 }
 0x225   : > { %v2226_v13 = vpop.f32.mrf.mxu0  ;;  %v1945_v43 = vadd.f32 %v6859_v45, %v5891_v56  ;;  %v2572_v58 = vmax.f32 %v2414_v59, 0.0  ;;  %v2142_v42 = vadd.f32 %v6084_v57, %v1949_v25  ;;  %v1955_v57 = vadd.f32 %v6095_v15, %v5891_v56 }
 0x226   : > { %v2419_v61 = vpop.f32.mrf.mxu1  ;;  %v2418_v20 = vadd.f32 %v2417_v3, %v2225_v32  ;;  %v2227_v17 = vadd.f32 %v2226_v13, %v6180_v18  ;;  %3210 = vmatprep.mubr.bf16.mxu1 %v2693_v54  ;;  %v2573_v28 = vmax.f32 %v2416_v40, 0.0  ;;  %v2739_v32 = vpack.c.bf16 %v2663_v53, %v2659_v31 }
 0x227   : > { %v2230_v12 = vpop.f32.mrf.mxu0  ;;  %3130 = vmatmul.mubr.bf16.gmra.mxu0 %v2730_v21  ;;  %3211 = vmatmul.mubr.bf16.vlgmr.msra.gmra.mxu1 %v2692_v49  ;;  %v2154_v54 = vadd.f32 %v6119_v9, %v1961_v30  ;;  %v6860_v49 = vld [vmem:[#allocation29_spill] sm:$0xff]  ;;  %v2662_v9 = vmax.f32 %v2142_v42, 0.0  ;;  %v1971_v36 = vadd.f32 %v6145_v7, %v5868_v14 }
 0x228   : > { %v2423_v50 = vpop.f32.mrf.mxu1  ;;  %v2420_v41 = vadd.f32 %v2419_v61, %v2227_v17  ;;  %3137 = vmatprep.mubr.bf16.mxu0 %v2735_v2  ;;  %v2576_v46 = vmax.f32 %v2418_v20, 0.0  ;;  %v2231_v22 = vadd.f32 %v2230_v12, %v6186_v1  ;;  %v2138_v13 = vadd.f32 %v6860_v49, %v1945_v43 }
 0x229   : > { %v2232_v39 = vpop.f32.mrf.mxu0  ;;  %v2150_v20 = vadd.f32 %v6104_v11, %v1957_v5  ;;  %v1959_v2 = vadd.f32 %v6110_v37, %v5891_v56  ;;  %v2671_v27 = vmax.f32 %v2154_v54, 0.0  ;;  %v1967_v11 = vadd.f32 %v6130_v16, %v5868_v14 }
 0x22a   : > { %v2425_v51 = vpop.f32.mrf.mxu1  ;;  %v2577_v60 = vmax.f32 %v2420_v41, 0.0  ;;  %v2233_v29 = vadd.f32 %v2232_v39, %v6180_v18  ;;  %v2696_v3 = vpack.c.bf16 %v2576_v46, %v2572_v58  ;;  %v2424_v6 = vadd.f32 %v2423_v50, %v2231_v22 }
 0x22b   : > { %v2234_v34 = vpop.f32.mrf.mxu0  ;;  %v2658_v15 = vmax.f32 %v2138_v13, 0.0  ;;  %v2667_v7 = vmax.f32 %v2150_v20, 0.0  ;;  %v2152_v45 = vadd.f32 %v6112_v24, %v1959_v2  ;;  %v2164_v43 = vadd.f32 %v6147_v47, %v1971_v36 }
 0x22c   : > { %v2427_v8 = vpop.f32.mrf.mxu1  ;;  %v2235_v26 = vadd.f32 %v2234_v34, %v6186_v1  ;;  %v2697_v33 = vpack.c.bf16 %v2577_v60, %v2573_v28  ;;  %v2426_v21 = vadd.f32 %v2425_v51, %v2233_v29  ;;  %v2580_v53 = vmax.f32 %v2424_v6, 0.0  ;;  %v6861_v51 = vld [vmem:[#allocation30_spill] sm:$0xff] }
 0x22d   : > { %v2236_v10 = vpop.f32.mrf.mxu0  ;;  %v2148_v30 = vadd.f32 %v6861_v51, %v1955_v57  ;;  %v2738_v29 = vpack.c.bf16 %v2662_v9, %v2658_v15  ;;  %v2743_v5 = vpack.c.bf16 %v2671_v27, %v2667_v7  ;;  %v2670_v47 = vmax.f32 %v2152_v45, 0.0 }
 0x22e   : > { %v2429_v0 = vpop.f32.mrf.mxu1  ;;  %v2428_v48 = vadd.f32 %v2427_v8, %v2235_v26  ;;  %v2237_v4 = vadd.f32 %v2236_v10, %v6180_v18  ;;  %3218 = vmatprep.mubr.bf16.mxu1 %v2697_v33  ;;  %v2581_v41 = vmax.f32 %v2426_v21, 0.0  ;;  %v2160_v26 = vadd.f32 %v6132_v23, %v1967_v11 }
 0x22f   : > { %v2240_v61 = vpop.f32.mrf.mxu0  ;;  %3138 = vmatmul.mubr.bf16.gmra.mxu0 %v2734_v35  ;;  %3219 = vmatmul.mubr.bf16.gmra.mxu1 %v2696_v3  ;;  %v2666_v3 = vmax.f32 %v2148_v30, 0.0  ;;  %v1969_v10 = vadd.f32 %v6138_v44, %v5891_v56  ;;  %v1965_v13 = vadd.f32 %v6123_v52, %v5891_v56  ;;  %v1977_v20 = vadd.f32 %v6160_v63, %v5868_v14 }
 0x230   : > { %v2433_v40 = vpop.f32.mrf.mxu1  ;;  %v2430_v17 = vadd.f32 %v2429_v0, %v2237_v4  ;;  %3145 = vmatprep.mubr.bf16.mxu0 %v2739_v32  ;;  %v2584_v59 = vmax.f32 %v2428_v48, 0.0  ;;  %v2241_v46 = vadd.f32 %v2240_v61, %v6186_v1  ;;  %v2679_v0 = vmax.f32 %v2164_v43, 0.0 }
 0x231   : > { %v2242_v12 = vpop.f32.mrf.mxu0  ;;  %v1981_v48 = vadd.f32 %v6174_v62, %v5868_v14  ;;  %v2675_v6 = vmax.f32 %v2160_v26, 0.0  ;;  %v2742_v62 = vpack.c.bf16 %v2670_v47, %v2666_v3  ;;  %v2162_v2 = vadd.f32 %v6140_v55, %v1969_v10 }
 0x232   : > { %v2435_v50 = vpop.f32.mrf.mxu1  ;;  %v2585_v38 = vmax.f32 %v2430_v17, 0.0  ;;  %v2243_v25 = vadd.f32 %v2242_v12, %v6180_v18  ;;  %v2700_v31 = vpack.c.bf16 %v2584_v59, %v2580_v53  ;;  %v2434_v33 = vadd.f32 %v2433_v40, %v2241_v46  ;;  %v6863_v53 = vld [vmem:[#allocation34_spill] sm:$0xff] }
 0x233   : > { %v2244_v39 = vpop.f32.mrf.mxu0  ;;  %v2174_v52 = vadd.f32 %v6176_v19, %v1981_v48  ;;  %v2170_v55 = vadd.f32 %v6863_v53, %v1977_v20 }
 0x234   : > { %v2437_v37 = vpop.f32.mrf.mxu1  ;;  %v2245_v28 = vadd.f32 %v2244_v39, %v6186_v1  ;;  %v2701_v60 = vpack.c.bf16 %v2585_v38, %v2581_v41  ;;  %v2436_v16 = vadd.f32 %v2435_v50, %v2243_v25  ;;  %v2588_v61 = vmax.f32 %v2434_v33, 0.0  ;;  %v6862_v25 = vld [vmem:[#allocation31_spill] sm:$0xff] }
 0x235   : > { %v2246_v58 = vpop.f32.mrf.mxu0  ;;  %v2747_v50 = vpack.c.bf16 %v2679_v0, %v2675_v6  ;;  %v2158_v15 = vadd.f32 %v6862_v25, %v1965_v13  ;;  %v2678_v39 = vmax.f32 %v2162_v2, 0.0 }
 0x236   : > { %v2439_v22 = vpop.f32.mrf.mxu1  ;;  %v2438_v34 = vadd.f32 %v2437_v37, %v2245_v28  ;;  %v2247_v8 = vadd.f32 %v2246_v58, %v6180_v18  ;;  %3226 = vmatprep.mubr.bf16.mxu1 %v2701_v60  ;;  %v2589_v23 = vmax.f32 %v2436_v16, 0.0  ;;  %v6864_v37 = vld [vmem:[#allocation35_spill] sm:$0xff]  ;;  %v2687_v28 = vmax.f32 %v2174_v52, 0.0 }
 0x237   : > { %v2250_v35 = vpop.f32.mrf.mxu0  ;;  %3146 = vmatmul.mubr.bf16.gmra.mxu0 %v2738_v29  ;;  %3227 = vmatmul.mubr.bf16.gmra.mxu1 %v2700_v31  ;;  %v1979_v19 = vadd.f32 %v6864_v37, %v5891_v56  ;;  %v2674_v43 = vmax.f32 %v2158_v15, 0.0  ;;  %v6865_v31 = vld [vmem:[#allocation32_spill] sm:$0xff] }
 0x238   : > { %v2443_v42 = vpop.f32.mrf.mxu1  ;;  %v2440_v24 = vadd.f32 %v2439_v22, %v2247_v8  ;;  %3153 = vmatprep.mubr.bf16.mxu0 %v2743_v5  ;;  %v2592_v32 = vmax.f32 %v2438_v34, 0.0  ;;  %v2251_v40 = vadd.f32 %v2250_v35, %v6186_v1  ;;  %v1975_v58 = vadd.f32 %v6865_v31, %v5891_v56 }
 0x239   : > { %v2252_v54 = vpop.f32.mrf.mxu0  ;;  %v2683_v5 = vmax.f32 %v2170_v55, 0.0  ;;  %v2746_v35 = vpack.c.bf16 %v2678_v39, %v2674_v43 }
 0x23a   : > { %v2445_v21 = vpop.f32.mrf.mxu1  ;;  %v2593_v4 = vmax.f32 %v2440_v24, 0.0  ;;  %v2253_v49 = vadd.f32 %v2252_v54, %v6180_v18  ;;  %v2704_v36 = vpack.c.bf16 %v2592_v32, %v2588_v61  ;;  %v2444_v14 = vadd.f32 %v2443_v42, %v2251_v40  ;;  %v6866_v42 = vld [vmem:[#allocation36_spill] sm:$0xff] }
 0x23b   : > { %v2254_v57 = vpop.f32.mrf.mxu0  ;;  %v2172_v3 = vadd.f32 %v6866_v42, %v1979_v19  ;;  %v2751_v56 = vpack.c.bf16 %v2687_v28, %v2683_v5 }
 0x23c   : > { %v2447_v44 = vpop.f32.mrf.mxu1  ;;  %v2255_v17 = vadd.f32 %v2254_v57, %v6186_v1  ;;  %v2705_v9 = vpack.c.bf16 %v2593_v4, %v2589_v23  ;;  %v2446_v27 = vadd.f32 %v2445_v21, %v2253_v49  ;;  %v2596_v22 = vmax.f32 %v2444_v14, 0.0  ;;  %v6867_v21 = vld [vmem:[#allocation33_spill] sm:$0xff] }
 0x23d   : > { %v2256_v59 = vpop.f32.mrf.mxu0  ;;  %v2168_v48 = vadd.f32 %v6867_v21, %v1975_v58  ;;  %v2686_v6 = vmax.f32 %v2172_v3, 0.0 }
 0x23e   : > { %v2449_v12 = vpop.f32.mrf.mxu1  ;;  %v2448_v41 = vadd.f32 %v2447_v44, %v2255_v17  ;;  %v2257_v38 = vadd.f32 %v2256_v59, %v6180_v18  ;;  %3234 = vmatprep.mubr.bf16.mxu1 %v2705_v9  ;;  %v2597_v60 = vmax.f32 %v2446_v27, 0.0 }
 0x23f   : > { %v2260_v63 = vpop.f32.mrf.mxu0  ;;  %3154 = vmatmul.mubr.bf16.gmra.mxu0 %v2742_v62  ;;  %3235 = vmatmul.mubr.bf16.gmra.mxu1 %v2704_v36  ;;  %v2682_v9 = vmax.f32 %v2168_v48, 0.0 }
 0x240   : > { %v2453_v11 = vpop.f32.mrf.mxu1  ;;  %v2450_v46 = vadd.f32 %v2449_v12, %v2257_v38  ;;  %3161 = vmatprep.mubr.bf16.mxu0 %v2747_v50  ;;  %v2600_v51 = vmax.f32 %v2448_v41, 0.0  ;;  %v2261_v16 = vadd.f32 %v2260_v63, %v6186_v1 }
 0x241   : > { %v2262_v30 = vpop.f32.mrf.mxu0  ;;  %v2750_v52 = vpack.c.bf16 %v2686_v6, %v2682_v9 }
 0x242   : > { %v2455_v7 = vpop.f32.mrf.mxu1  ;;  %v2601_v29 = vmax.f32 %v2450_v46, 0.0  ;;  %v2263_v45 = vadd.f32 %v2262_v30, %v6180_v18  ;;  %v2708_v24 = vpack.c.bf16 %v2600_v51, %v2596_v22  ;;  %v2454_v23 = vadd.f32 %v2453_v11, %v2261_v16 }
 0x243   : > { %v2264_v34 = vpop.f32.mrf.mxu0 }
 0x244   : > { %v2457_v8 = vpop.f32.mrf.mxu1  ;;  %v2709_v26 = vpack.c.bf16 %v2601_v29, %v2597_v60  ;;  %v2265_v33 = vadd.f32 %v2264_v34, %v6186_v1  ;;  %v2456_v0 = vadd.f32 %v2455_v7, %v2263_v45  ;;  %v2604_v62 = vmax.f32 %v2454_v23, 0.0 }
 0x245   : > { %v2266_v47 = vpop.f32.mrf.mxu0 }
 0x246   : > { %v2459_v10 = vpop.f32.mrf.mxu1  ;;  %v2458_v32 = vadd.f32 %v2457_v8, %v2265_v33  ;;  %v2267_v54 = vadd.f32 %v2266_v47, %v6180_v18  ;;  %3242 = vmatprep.mubr.bf16.mxu1 %v2709_v26  ;;  %v2605_v44 = vmax.f32 %v2456_v0, 0.0 }
 0x247   : > { %v2270_v4 = vpop.f32.mrf.mxu0  ;;  %3162 = vmatmul.mubr.bf16.gmra.mxu0 %v2746_v35  ;;  %3243 = vmatmul.mubr.bf16.gmra.mxu1 %v2708_v24 }
 0x248   : > { %v2463_v49 = vpop.f32.mrf.mxu1  ;;  %v2460_v13 = vadd.f32 %v2459_v10, %v2267_v54  ;;  %3169 = vmatprep.mubr.bf16.mxu0 %v2751_v56  ;;  %v2608_v61 = vmax.f32 %v2458_v32, 0.0  ;;  %v2271_v2 = vadd.f32 %v2270_v4, %v6186_v1 }
 0x249   : > { %v2272_v40 = vpop.f32.mrf.mxu0 }
 0x24a   : > { %v2465_v57 = vpop.f32.mrf.mxu1  ;;  %v2609_v20 = vmax.f32 %v2460_v13, 0.0  ;;  %v2273_v17 = vadd.f32 %v2272_v40, %v6180_v18  ;;  %v2712_v27 = vpack.c.bf16 %v2608_v61, %v2604_v62  ;;  %v2464_v63 = vadd.f32 %v2463_v49, %v2271_v2 }
 0x24b   : > { %v2274_v36 = vpop.f32.mrf.mxu0 }
 0x24c   : > { %v2467_v59 = vpop.f32.mrf.mxu1  ;;  %v2713_v12 = vpack.c.bf16 %v2609_v20, %v2605_v44  ;;  %v2275_v50 = vadd.f32 %v2274_v36, %v6186_v1  ;;  %v2466_v25 = vadd.f32 %v2465_v57, %v2273_v17  ;;  %v2612_v7 = vmax.f32 %v2464_v63, 0.0 }
 0x24d   : > { %v2276_v41 = vpop.f32.mrf.mxu0 }
 0x24e   : > { %v2469_v38 = vpop.f32.mrf.mxu1  ;;  %v2468_v15 = vadd.f32 %v2467_v59, %v2275_v50  ;;  %v2277_v14 = vadd.f32 %v2276_v41, %v6180_v18  ;;  %3250 = vmatprep.mubr.bf16.mxu1 %v2713_v12  ;;  %v2613_v19 = vmax.f32 %v2466_v25, 0.0 }
 0x24f   : > { %v2280_v11 = vpop.f32.mrf.mxu0  ;;  %3170 = vmatmul.mubr.bf16.gmra.mxu0 %v2750_v52  ;;  %3251 = vmatmul.mubr.bf16.gmra.mxu1 %v2712_v27 }
 0x250   : > { %v2473_v53 = vpop.f32.mrf.mxu1  ;;  %v2470_v55 = vadd.f32 %v2469_v38, %v2277_v14  ;;  %v2616_v46 = vmax.f32 %v2468_v15, 0.0  ;;  %v2281_v28 = vadd.f32 %v2280_v11, %v6186_v1 }
 0x251   : > { %v2282_v39 = vpop.f32.mrf.mxu0 }
 0x252   : > { %v2475_v37 = vpop.f32.mrf.mxu1  ;;  %v2617_v51 = vmax.f32 %v2470_v55, 0.0  ;;  %v2283_v30 = vadd.f32 %v2282_v39, %v6180_v18  ;;  %v2716_v31 = vpack.c.bf16 %v2616_v46, %v2612_v7  ;;  %v2474_v5 = vadd.f32 %v2473_v53, %v2281_v28 }
 0x253   : > { %v2284_v60 = vpop.f32.mrf.mxu0 }
 0x254   : > { %v2477_v29 = vpop.f32.mrf.mxu1  ;;  %v2717_v45 = vpack.c.bf16 %v2617_v51, %v2613_v19  ;;  %v2285_v43 = vadd.f32 %v2284_v60, %v6186_v1  ;;  %v2476_v16 = vadd.f32 %v2475_v37, %v2283_v30  ;;  %v2620_v32 = vmax.f32 %v2474_v5, 0.0 }
 0x255   : > { %v2286_v58 = vpop.f32.mrf.mxu0 }
 0x256   : > { %v2479_v22 = vpop.f32.mrf.mxu1  ;;  %v2478_v34 = vadd.f32 %v2477_v29, %v2285_v43  ;;  %v2287_v8 = vadd.f32 %v2286_v58, %v6180_v18  ;;  %3258 = vmatprep.mubr.bf16.mxu1 %v2717_v45  ;;  %v2621_v47 = vmax.f32 %v2476_v16, 0.0 }
 0x257   : > { %v2290_v26 = vpop.f32.mrf.mxu0  ;;  %3259 = vmatmul.mubr.bf16.gmra.mxu1 %v2716_v31 }
 0x258   : > { %v2483_v33 = vpop.f32.mrf.mxu1  ;;  %v2480_v35 = vadd.f32 %v2479_v22, %v2287_v8  ;;  %v2624_v42 = vmax.f32 %v2478_v34, 0.0  ;;  %v2291_v54 = vadd.f32 %v2290_v26, %v6186_v1 }
 0x259   : > { %v2292_v3 = vpop.f32.mrf.mxu0 }
 0x25a   : > { %v2485_v24 = vpop.f32.mrf.mxu1  ;;  %v2625_v10 = vmax.f32 %v2480_v35, 0.0  ;;  %v2293_v0 = vadd.f32 %v2292_v3, %v6180_v18  ;;  %v2720_v4 = vpack.c.bf16 %v2624_v42, %v2620_v32  ;;  %v2484_v57 = vadd.f32 %v2483_v33, %v2291_v54 }
 0x25b   : > { %v2294_v56 = vpop.f32.mrf.mxu0 }
 0x25c   : > { %v2487_v21 = vpop.f32.mrf.mxu1  ;;  %v2721_v48 = vpack.c.bf16 %v2625_v10, %v2621_v47  ;;  %v2295_v23 = vadd.f32 %v2294_v56, %v6186_v1  ;;  %v2486_v6 = vadd.f32 %v2485_v24, %v2293_v0  ;;  %v2628_v50 = vmax.f32 %v2484_v57, 0.0 }
 0x25d   : > { %v2296_v49 = vpop.f32.mrf.mxu0 }
 0x25e   : > { %v2489_v13 = vpop.f32.mrf.mxu1  ;;  %v2488_v61 = vadd.f32 %v2487_v21, %v2295_v23  ;;  %v2297_v40 = vadd.f32 %v2296_v49, %v6180_v18  ;;  %3266 = vmatprep.mubr.bf16.mxu1 %v2721_v48  ;;  %v2629_v36 = vmax.f32 %v2486_v6, 0.0 }
 0x25f   : > { %v2300_v44 = vpop.f32.mrf.mxu0  ;;  %3267 = vmatmul.mubr.bf16.gmra.mxu1 %v2720_v4 }
 0x260   : > { %v2493_v20 = vpop.f32.mrf.mxu1  ;;  %v2490_v17 = vadd.f32 %v2489_v13, %v2297_v40  ;;  %v2632_v9 = vmax.f32 %v2488_v61, 0.0  ;;  %v2301_v52 = vadd.f32 %v2300_v44, %v6186_v1 }
 0x261   : > { %v2302_v62 = vpop.f32.mrf.mxu0 }
 0x262   : > { %v2495_v2 = vpop.f32.mrf.mxu1  ;;  %v2633_v59 = vmax.f32 %v2490_v17, 0.0  ;;  %v2303_v12 = vadd.f32 %v2302_v62, %v6180_v18  ;;  %v2724_v15 = vpack.c.bf16 %v2632_v9, %v2628_v50  ;;  %v2494_v46 = vadd.f32 %v2493_v20, %v2301_v52 }
 0x263   : > { %v2304_v27 = vpop.f32.mrf.mxu0 }
 0x264   : > { %v2497_v41 = vpop.f32.mrf.mxu1  ;;  %v2725_v38 = vpack.c.bf16 %v2633_v59, %v2629_v36  ;;  %v2305_v25 = vadd.f32 %v2304_v27, %v6186_v1  ;;  %v2496_v11 = vadd.f32 %v2495_v2, %v2303_v12  ;;  %v2636_v45 = vmax.f32 %v2494_v46, 0.0 }
 0x265   : > { %v2306_v14 = vpop.f32.mrf.mxu0 }
 0x266   : > { %v2499_v63 = vpop.f32.mrf.mxu1  ;;  %v2498_v53 = vadd.f32 %v2497_v41, %v2305_v25  ;;  %v2307_v55 = vadd.f32 %v2306_v14, %v6180_v18  ;;  %3274 = vmatprep.mubr.bf16.mxu1 %v2725_v38  ;;  %v2637_v28 = vmax.f32 %v2496_v11, 0.0 }
 0x267   : > { %v2310_v39 = vpop.f32.mrf.mxu0  ;;  %3275 = vmatmul.mubr.bf16.gmra.mxu1 %v2724_v15 }
 0x268   : > { %v2503_v37 = vpop.f32.mrf.mxu1  ;;  %v2500_v19 = vadd.f32 %v2499_v63, %v2307_v55  ;;  %v2640_v51 = vmax.f32 %v2498_v53, 0.0  ;;  %v2311_v43 = vadd.f32 %v2310_v39, %v6186_v1 }
 0x269   : > { %v2312_v30 = vpop.f32.mrf.mxu0 }
 0x26a   : > { %v2505_v7 = vpop.f32.mrf.mxu1  ;;  %v2641_v60 = vmax.f32 %v2500_v19, 0.0  ;;  %v2313_v29 = vadd.f32 %v2312_v30, %v6180_v18  ;;  %v2728_v34 = vpack.c.bf16 %v2640_v51, %v2636_v45  ;;  %v2504_v42 = vadd.f32 %v2503_v37, %v2311_v43 }
 0x26b   : > { %v2314_v31 = vpop.f32.mrf.mxu0 }
 0x26c   : > { %v2507_v58 = vpop.f32.mrf.mxu1  ;;  %v2729_v22 = vpack.c.bf16 %v2641_v60, %v2637_v28  ;;  %v2315_v16 = vadd.f32 %v2314_v31, %v6186_v1  ;;  %v2506_v26 = vadd.f32 %v2505_v7, %v2313_v29  ;;  %v2644_v48 = vmax.f32 %v2504_v42, 0.0 }
 0x26d   : > { %v2316_v8 = vpop.f32.mrf.mxu0 }
 0x26e   : > { %v2509_v5 = vpop.f32.mrf.mxu1  ;;  %v2508_v33 = vadd.f32 %v2507_v58, %v2315_v16  ;;  %v2317_v35 = vadd.f32 %v2316_v8, %v6180_v18  ;;  %3282 = vmatprep.mubr.bf16.mxu1 %v2729_v22  ;;  %v2645_v54 = vmax.f32 %v2506_v26, 0.0 }
 0x26f   : > { %v2320_v3 = vpop.f32.mrf.mxu0  ;;  %3283 = vmatmul.mubr.bf16.gmra.mxu1 %v2728_v34 }
 0x270   : > { %v2513_v24 = vpop.f32.mrf.mxu1  ;;  %v2510_v47 = vadd.f32 %v2509_v5, %v2317_v35  ;;  %v2648_v10 = vmax.f32 %v2508_v33, 0.0  ;;  %v2321_v23 = vadd.f32 %v2320_v3, %v6186_v1 }
 0x271   : > { %v2322_v0 = vpop.f32.mrf.mxu0 }
 0x272   : > { %v2515_v32 = vpop.f32.mrf.mxu1  ;;  %v2649_v56 = vmax.f32 %v2510_v47, 0.0  ;;  %v2323_v21 = vadd.f32 %v2322_v0, %v6180_v18  ;;  %v2732_v61 = vpack.c.bf16 %v2648_v10, %v2644_v48  ;;  %v2514_v9 = vadd.f32 %v2513_v24, %v2321_v23 }
 0x273   : > { %v2324_v4 = vpop.f32.mrf.mxu0 }
 0x274   : > { %v2517_v49 = vpop.f32.mrf.mxu1  ;;  %v2733_v13 = vpack.c.bf16 %v2649_v56, %v2645_v54  ;;  %v2325_v6 = vadd.f32 %v2324_v4, %v6186_v1  ;;  %v2516_v44 = vadd.f32 %v2515_v32, %v2323_v21  ;;  %v2652_v38 = vmax.f32 %v2514_v9, 0.0 }
 0x275   : > { %v2326_v40 = vpop.f32.mrf.mxu0 }
 0x276   : > { %v2519_v57 = vpop.f32.mrf.mxu1  ;;  %v2518_v20 = vadd.f32 %v2517_v49, %v2325_v6  ;;  %v2327_v17 = vadd.f32 %v2326_v40, %v6180_v18  ;;  %3290 = vmatprep.mubr.bf16.mxu1 %v2733_v13  ;;  %v2653_v52 = vmax.f32 %v2516_v44, 0.0 }
 0x277   : > { %v2330_v62 = vpop.f32.mrf.mxu0  ;;  %3291 = vmatmul.mubr.bf16.gmra.mxu1 %v2732_v61 }
 0x278   : > { %v2523_v2 = vpop.f32.mrf.mxu1  ;;  %v2520_v36 = vadd.f32 %v2519_v57, %v2327_v17  ;;  %v2656_v59 = vmax.f32 %v2518_v20, 0.0  ;;  %v2331_v25 = vadd.f32 %v2330_v62, %v6186_v1 }
 0x279   : > { %v2332_v12 = vpop.f32.mrf.mxu0 }
 0x27a   : > { %v2525_v50 = vpop.f32.mrf.mxu1  ;;  %v2657_v27 = vmax.f32 %v2520_v36, 0.0  ;;  %v2333_v41 = vadd.f32 %v2332_v12, %v6180_v18  ;;  %v2736_v53 = vpack.c.bf16 %v2656_v59, %v2652_v38  ;;  %v2524_v51 = vadd.f32 %v2523_v2, %v2331_v25 }
 0x27b   : > { %v2334_v15 = vpop.f32.mrf.mxu0 }
 0x27c   : > { %v2527_v14 = vpop.f32.mrf.mxu1  ;;  %v2737_v63 = vpack.c.bf16 %v2657_v27, %v2653_v52  ;;  %v2335_v11 = vadd.f32 %v2334_v15, %v6186_v1  ;;  %v2526_v39 = vadd.f32 %v2525_v50, %v2333_v41  ;;  %v2660_v22 = vmax.f32 %v2524_v51, 0.0 }
 0x27d   : > { %v2336_v55 = vpop.f32.mrf.mxu0 }
 0x27e   : > { %v2529_v46 = vpop.f32.mrf.mxu1  ;;  %v2528_v37 = vadd.f32 %v2527_v14, %v2335_v11  ;;  %v2337_v19 = vadd.f32 %v2336_v55, %v6180_v18  ;;  %3298 = vmatprep.mubr.bf16.mxu1 %v2737_v63  ;;  %v2661_v43 = vmax.f32 %v2526_v39, 0.0 }
 0x27f   : > { %v2340_v30 = vpop.f32.mrf.mxu0  ;;  %3299 = vmatmul.mubr.bf16.gmra.mxu1 %v2736_v53 }
 0x280   : > { %v2533_v7 = vpop.f32.mrf.mxu1  ;;  %v2530_v28 = vadd.f32 %v2529_v46, %v2337_v19  ;;  %v2664_v60 = vmax.f32 %v2528_v37, 0.0  ;;  %v2341_v16 = vadd.f32 %v2340_v30, %v6186_v1 }
 0x281   : > { %v2342_v29 = vpop.f32.mrf.mxu0 }
 0x282   : > { %v2535_v45 = vpop.f32.mrf.mxu1  ;;  %v2665_v31 = vmax.f32 %v2530_v28, 0.0  ;;  %v2343_v58 = vadd.f32 %v2342_v29, %v6180_v18  ;;  %v2740_v33 = vpack.c.bf16 %v2664_v60, %v2660_v22  ;;  %v2534_v10 = vadd.f32 %v2533_v7, %v2341_v16 }
 0x283   : > { %v2344_v34 = vpop.f32.mrf.mxu0 }
 0x284   : > { %v2537_v8 = vpop.f32.mrf.mxu1  ;;  %v2741_v5 = vpack.c.bf16 %v2665_v31, %v2661_v43  ;;  %v2345_v26 = vadd.f32 %v2344_v34, %v6186_v1  ;;  %v2536_v3 = vadd.f32 %v2535_v45, %v2343_v58  ;;  %v2668_v13 = vmax.f32 %v2534_v10, 0.0 }
 0x285   : > { %v2346_v35 = vpop.f32.mrf.mxu0 }
 0x286   : > { %v2539_v42 = vpop.f32.mrf.mxu1  ;;  %v2538_v24 = vadd.f32 %v2537_v8, %v2345_v26  ;;  %v2347_v47 = vadd.f32 %v2346_v35, %v6180_v18  ;;  %3306 = vmatprep.mubr.bf16.mxu1 %v2741_v5  ;;  %v2669_v23 = vmax.f32 %v2536_v3, 0.0 }
 0x287   : > { %v2350_v0 = vpop.f32.mrf.mxu0  ;;  %3307 = vmatmul.mubr.bf16.gmra.mxu1 %v2740_v33 }
 0x288   : > { %v2543_v32 = vpop.f32.mrf.mxu1  ;;  %v2540_v54 = vadd.f32 %v2539_v42, %v2347_v47  ;;  %v2672_v56 = vmax.f32 %v2538_v24, 0.0  ;;  %v2351_v6 = vadd.f32 %v2350_v0, %v6186_v1 }
 0x289   : > { %v2352_v21 = vpop.f32.mrf.mxu0 }
 0x28a   : > { %v2545_v48 = vpop.f32.mrf.mxu1  ;;  %v2673_v4 = vmax.f32 %v2540_v54, 0.0  ;;  %v2353_v49 = vadd.f32 %v2352_v21, %v6180_v18  ;;  %v2744_v20 = vpack.c.bf16 %v2672_v56, %v2668_v13  ;;  %v2544_v59 = vadd.f32 %v2543_v32, %v2351_v6 }
 0x28b   : > { %v2354_v61 = vpop.f32.mrf.mxu0 }
 0x28c   : > { %v2547_v40 = vpop.f32.mrf.mxu1  ;;  %v2745_v57 = vpack.c.bf16 %v2673_v4, %v2669_v23  ;;  %v2355_v44 = vadd.f32 %v2354_v61, %v6186_v1  ;;  %v2546_v62 = vadd.f32 %v2545_v48, %v2353_v49  ;;  %v2676_v63 = vmax.f32 %v2544_v59, 0.0  ;;  %v6362_v59 = vld [vmem:[#allocation13] ss:$0 sm:$0xff] }
 0x28d   : > { %v2356_v17 = vpop.f32.mrf.mxu0 }
 0x28e   : > { %v2549_v9 = vpop.f32.mrf.mxu1  ;;  %v2548_v2 = vadd.f32 %v2547_v40, %v2355_v44  ;;  %v2357_v36 = vadd.f32 %v2356_v17, %v6180_v18  ;;  %3314 = vmatprep.mubr.bf16.mxu1 %v2745_v57  ;;  %v2677_v25 = vmax.f32 %v2546_v62, 0.0 }
 0x28f   : > { %v2360_v12 = vpop.f32.mrf.mxu0  ;;  %3315 = vmatmul.mubr.bf16.gmra.mxu1 %v2744_v20 }
 0x290   : > { %v2553_v50 = vpop.f32.mrf.mxu1  ;;  %v2550_v52 = vadd.f32 %v2549_v9, %v2357_v36  ;;  %v2680_v27 = vmax.f32 %v2548_v2, 0.0  ;;  %v2361_v11 = vadd.f32 %v2360_v12, %v6186_v1 }
 0x291   : > { %v2362_v41 = vpop.f32.mrf.mxu0 }
 0x292   : > { %v2555_v38 = vpop.f32.mrf.mxu1  ;;  %v2681_v15 = vmax.f32 %v2550_v52, 0.0  ;;  %v2363_v14 = vadd.f32 %v2362_v41, %v6180_v18  ;;  %v2748_v37 = vpack.c.bf16 %v2680_v27, %v2676_v63  ;;  %v2554_v28 = vadd.f32 %v2553_v50, %v2361_v11 }
 0x293   : > { %v2364_v53 = vpop.f32.mrf.mxu0 }
 0x294   : > { %v2557_v55 = vpop.f32.mrf.mxu1  ;;  %v2749_v46 = vpack.c.bf16 %v2681_v15, %v2677_v25  ;;  %v2365_v39 = vadd.f32 %v2364_v53, %v6186_v1  ;;  %v2556_v51 = vadd.f32 %v2555_v38, %v2363_v14  ;;  %v2684_v16 = vmax.f32 %v2554_v28, 0.0 }
 0x295   : > { %v2366_v19 = vpop.f32.mrf.mxu0 }
 0x296   : > { %v2558_v30 = vadd.f32 %v2557_v55, %v2365_v39  ;;  %v2367_v7 = vadd.f32 %v2366_v19, %v6180_v18  ;;  %3322 = vmatprep.mubr.bf16.mxu1 %v2749_v46  ;;  %v2559_v60 = vpop.f32.mrf.mxu1  ;;  %v2685_v58 = vmax.f32 %v2556_v51, 0.0 }
 0x297   : > { %v3946_v29 = vpop.f32.mrf.mxu0  ;;  %3323 = vmatmul.mubr.bf16.gmra.mxu1 %v2748_v37 }
 0x298   : > { %v2560_v45 = vadd.f32 %v2559_v60, %v2367_v7  ;;  %v2688_v43 = vmax.f32 %v2558_v30, 0.0 }
 0x299   : > { %v3947_v31 = vpop.f32.mrf.mxu0 }
 0x29a   : > { %v2689_v22 = vmax.f32 %v2560_v45, 0.0  ;;  %v2752_v1 = vpack.c.bf16 %v2688_v43, %v2684_v16  ;;  %v3948_v36 = vadd.f32 %v3947_v31, %v3946_v29 }
 0x29b   : > { %v3949_v34 = vpop.f32.mrf.mxu0 }
 0x29c   : > { %v2753_v8 = vpack.c.bf16 %v2689_v22, %v2685_v58  ;;  %v3052_v27 = vadd.f32 %v3948_v36, %v6362_v59 }
 0x29d   : > { %v3950_v5 = vpop.f32.mrf.mxu0 }
 0x29e   : > { %3330 = vmatprep.mubr.bf16.mxu1 %v2753_v8  ;;  %v3951_v41 = vadd.f32 %v3950_v5, %v3949_v34 }
 0x29f   : > { %v3952_v26 = vpop.f32.mrf.mxu0  ;;  %3331 = vmatmul.mubr.bf16.gmra.mxu1 %v2752_v1 }
 0x2a0   : > { %v3055_v11 = vadd.f32 %v3951_v41, %v6362_v59 }
 0x2a1   : > { %v3953_v33 = vpop.f32.mrf.mxu0 }
 0x2a2   : > { %v3954_v53 = vadd.f32 %v3953_v33, %v3952_v26 }
 0x2a3   : > { %v3955_v18 = vpop.f32.mrf.mxu0 }
 0x2a4   : > { %v3060_v30 = vadd.f32 %v3954_v53, %v6362_v59 }
 0x2a5   : > { %v3956_v35 = vpop.f32.mrf.mxu0 }
 0x2a6   : > { %v3957_v7 = vadd.f32 %v3956_v35, %v3955_v18 }
 0x2a7   : > { %v3958_v42 = vpop.f32.mrf.mxu0 }
 0x2a8   : > { %v3063_v58 = vadd.f32 %v3957_v7, %v6362_v59 }
 0x2a9   : > { %v3959_v3 = vpop.f32.mrf.mxu0 }
 0x2aa   : > { %v3960_v22 = vadd.f32 %v3959_v3, %v3958_v42 }
 0x2ab   : > { %v6318_v24 = vpop.f32.mrf.mxu0 }
 0x2ac   : > { %v3068_v33 = vadd.f32 %v3960_v22, %v6362_v59 }
 0x2ad   : > { %v3962_v47 = vpop.f32.mrf.mxu0 }
 0x2ae   : > { %v3963_v18 = vadd.f32 %v3962_v47, %v6318_v24 }
 0x2af   : > { %v6320_v10 = vpop.f32.mrf.mxu0 }
 0x2b1   : > { %v6322_v0 = vpop.f32.mrf.mxu0 }
 0x2b2   : > { %v3966_v41 = vadd.f32 %v6322_v0, %v6320_v10 }
 0x2b3   : > { %v6324_v32 = vpop.f32.mrf.mxu0 }
 0x2b4   : > { %v3076_v53 = vadd.f32 %v3966_v41, %v6362_v59 }
 0x2b5   : > { %v6326_v54 = vpop.f32.mrf.mxu0 }
 0x2b7   : > { %v6328_v56 = vpop.f32.mrf.mxu0 }
 0x2b9   : > { %v6330_v21 = vpop.f32.mrf.mxu0 }
 0x2bb   : > { %v6332_v48 = vpop.f32.mrf.mxu0 }
 0x2bd   : > { %v6334_v23 = vpop.f32.mrf.mxu0 }
 0x2bf   : > { %v6336_v4 = vpop.f32.mrf.mxu0 }
 0x2c1   : > { %v6338_v49 = vpop.f32.mrf.mxu0 }
 0x2c3   : > { %v6340_v13 = vpop.f32.mrf.mxu0 }
 0x2c5   : > { %v6342_v6 = vpop.f32.mrf.mxu0 }
 0x2c7   : > { %v6344_v61 = vpop.f32.mrf.mxu0 }
 0x2c9   : > { %v6346_v40 = vpop.f32.mrf.mxu0 }
 0x2cb   : > { %v6348_v57 = vpop.f32.mrf.mxu0 }
 0x2cd   : > { %v6350_v44 = vpop.f32.mrf.mxu0 }
 0x2cf   : > { %v6352_v20 = vpop.f32.mrf.mxu0 }
 0x2d1   : > { %v6354_v17 = vpop.f32.mrf.mxu0 }
 0x2d3   : > { %v6356_v9 = vpop.f32.mrf.mxu0 }
 0x2d5   : > { %v6358_v62 = vpop.f32.mrf.mxu0 }
 0x2d7   : > { %v6360_v2 = vpop.f32.mrf.mxu0 }
 0x2d9   : > { %v6364_v12 = vpop.f32.mrf.mxu0 }
 0x2db   : > { %v6367_v25 = vpop.f32.mrf.mxu0 }
 0x2dd   : > { %v6374_v39 = vpop.f32.mrf.mxu0 }
 0x2df   : > { %v6381_v29 = vpop.f32.mrf.mxu0 }
 0x2e1   : > { %v6388_v8 = vpop.f32.mrf.mxu0 }
 0x2e3   : > { %v6396_v42 = vpop.f32.mrf.mxu0 }
 0x2e5   : > { %v6405_v47 = vpop.f32.mrf.mxu0 }
 0x2e7   : > { %v4058_v50 = vpop.f32.mrf.mxu1  ;;  %v6414_v0 = vpop.f32.mrf.mxu0 }
 0x2e9   : > { %v4059_v52 = vpop.f32.mrf.mxu1 }
 0x2ea   : > { %v4060_v38 = vadd.f32 %v4059_v52, %v4058_v50 }
 0x2eb   : > { %v4061_v15 = vpop.f32.mrf.mxu1 }
 0x2ec   : > { %v6369_v14 = vadd.f32 %v4060_v38, %v3052_v27  ;;  %v3071_v27 = vadd.f32 %v3963_v18, %v6362_v59 }
 0x2ed   : > { %v4062_v63 = vpop.f32.mrf.mxu1 }
 0x2ee   : > { %v4063_v55 = vadd.f32 %v4062_v63, %v4061_v15  ;;  %v3339_v46 = vmul.f32 %v6369_v14, %v6369_v14 }
 0x2ef   : > { %v4064_v37 = vpop.f32.mrf.mxu1 }
 0x2f0   : > { %v6376_v19 = vadd.f32 %v4063_v55, %v3055_v11  ;;  %3371 = vadd.xlane.f32.xlu0 %v3339_v46  ;;  %v3969_v55 = vadd.f32 %v6326_v54, %v6324_v32  ;;  %v6423_v54 = vpop.f32.mrf.mxu0 }
 0x2f1   : > { %v4065_v51 = vpop.f32.mrf.mxu1 }
 0x2f2   : > { %v4066_v28 = vadd.f32 %v4065_v51, %v4064_v37  ;;  %v3340_v60 = vmul.f32 %v6376_v19, %v6376_v19  ;;  %v3079_v7 = vadd.f32 %v3969_v55, %v6362_v59 }
 0x2f3   : > { %v4067_v45 = vpop.f32.mrf.mxu1 }
 0x2f4   : > { %3373 = vadd.xlane.f32.xlu0 %v3340_v60  ;;  %v6383_v43 = vadd.f32 %v4066_v28, %v3060_v30  ;;  %v3972_v28 = vadd.f32 %v6330_v21, %v6328_v56  ;;  %v6432_v21 = vpop.f32.mrf.mxu0 }
 0x2f5   : > { %v4068_v31 = vpop.f32.mrf.mxu1 }
 0x2f6   : > { %v4069_v16 = vadd.f32 %v4068_v31, %v4067_v45  ;;  %v3341_v34 = vmul.f32 %v6383_v43, %v6383_v43  ;;  %v3084_v22 = vadd.f32 %v3972_v28, %v6362_v59 }
 0x2f7   : > { %v4070_v1 = vpop.f32.mrf.mxu1 }
 0x2f8   : > { %v6390_v5 = vadd.f32 %v4069_v16, %v3063_v58  ;;  %3375 = vadd.xlane.f32.xlu1 %v3341_v34  ;;  %v3975_v16 = vadd.f32 %v6334_v23, %v6332_v48  ;;  %v6441_v23 = vpop.f32.mrf.mxu0 }
 0x2f9   : > { %v4071_v26 = vpop.f32.mrf.mxu1 }
 0x2fa   : > { %v4072_v35 = vadd.f32 %v4071_v26, %v4070_v1  ;;  %v3342_v36 = vmul.f32 %v6390_v5, %v6390_v5  ;;  %v3087_v18 = vadd.f32 %v3975_v16, %v6362_v59 }
 0x2fb   : > { %v4073_v3 = vpop.f32.mrf.mxu1 }
 0x2fc   : > { %v6398_v50 = vadd.f32 %v4072_v35, %v3068_v33  ;;  %3377 = vadd.xlane.f32.xlu1 %v3342_v36  ;;  %v3978_v35 = vadd.f32 %v6338_v49, %v6336_v4  ;;  %v6450_v49 = vpop.f32.mrf.mxu0 }
 0x2fd   : > { %v4074_v52 = vpop.f32.mrf.mxu1 }
 0x2fe   : > { %v4075_v38 = vadd.f32 %v4074_v52, %v4073_v3  ;;  %v3343_v24 = vmul.f32 %v6398_v50, %v6398_v50  ;;  %v3092_v41 = vadd.f32 %v3978_v35, %v6362_v59 }
 0x2ff   : > { %v4076_v15 = vpop.f32.mrf.mxu1 }
 0x300   : > { %v6407_v63 = vadd.f32 %v4075_v38, %v3071_v27  ;;  %3379 = vadd.xlane.f32.xlu0 %v3343_v24  ;;  %v3981_v38 = vadd.f32 %v6342_v6, %v6340_v13  ;;  %v6459_v6 = vpop.f32.mrf.mxu0 }
 0x301   : > { %v4077_v11 = vpop.f32.mrf.mxu1 }
 0x302   : > { %v4078_v46 = vadd.f32 %v4077_v11, %v4076_v15  ;;  %v3344_v10 = vmul.f32 %v6407_v63, %v6407_v63  ;;  %v3095_v55 = vadd.f32 %v3981_v38, %v6362_v59 }
 0x303   : > { %v4079_v37 = vpop.f32.mrf.mxu1 }
 0x304   : > { %v6416_v51 = vadd.f32 %v4078_v46, %v3076_v53  ;;  %3381 = vadd.xlane.f32.xlu1 %v3344_v10  ;;  %v3984_v46 = vadd.f32 %v6346_v40, %v6344_v61  ;;  %v6468_v40 = vpop.f32.mrf.mxu0 }
 0x305   : > { %v4080_v30 = vpop.f32.mrf.mxu1 }
 0x306   : > { %v4081_v60 = vadd.f32 %v4080_v30, %v4079_v37  ;;  %v3345_v32 = vmul.f32 %v6416_v51, %v6416_v51  ;;  %v3100_v28 = vadd.f32 %v3984_v46, %v6362_v59 }
 0x307   : > { %v4082_v45 = vpop.f32.mrf.mxu1 }
 0x308   : > { %v6425_v31 = vadd.f32 %v4081_v60, %v3079_v7  ;;  %3383 = vadd.xlane.f32.xlu0 %v3345_v32  ;;  %v3987_v60 = vadd.f32 %v6350_v44, %v6348_v57  ;;  %v6477_v44 = vpop.f32.mrf.mxu0 }
 0x309   : > { %v4083_v58 = vpop.f32.mrf.mxu1 }
 0x30a   : > { %v4084_v34 = vadd.f32 %v4083_v58, %v4082_v45  ;;  %v3346_v56 = vmul.f32 %v6425_v31, %v6425_v31  ;;  %v3103_v16 = vadd.f32 %v3987_v60, %v6362_v59 }
 0x30b   : > { %v4085_v1 = vpop.f32.mrf.mxu1 }
 0x30c   : > { %v6434_v26 = vadd.f32 %v4084_v34, %v3084_v22  ;;  %3385 = vadd.xlane.f32.xlu1 %v3346_v56  ;;  %v3990_v34 = vadd.f32 %v6354_v17, %v6352_v20  ;;  %v6486_v17 = vpop.f32.mrf.mxu0 }
 0x30d   : > { %v4086_v33 = vpop.f32.mrf.mxu1 }
 0x30e   : > { %v4087_v36 = vadd.f32 %v4086_v33, %v4085_v1  ;;  %v3347_v48 = vmul.f32 %v6434_v26, %v6434_v26  ;;  %v3108_v35 = vadd.f32 %v3990_v34, %v6362_v59 }
 0x30f   : > { %v4088_v3 = vpop.f32.mrf.mxu1 }
 0x310   : > { %v6443_v52 = vadd.f32 %v4087_v36, %v3087_v18  ;;  %3387 = vadd.xlane.f32.xlu0 %v3347_v48  ;;  %v3993_v36 = vadd.f32 %v6358_v62, %v6356_v9  ;;  %v6495_v62 = vpop.f32.mrf.mxu0 }
 0x311   : > { %v4089_v27 = vpop.f32.mrf.mxu1 }
 0x312   : > { %v4090_v24 = vadd.f32 %v4089_v27, %v4088_v3  ;;  %v3348_v4 = vmul.f32 %v6443_v52, %v6443_v52  ;;  %v3111_v38 = vadd.f32 %v3993_v36, %v6362_v59 }
 0x313   : > { %v4091_v15 = vpop.f32.mrf.mxu1 }
 0x314   : > { %v6452_v11 = vadd.f32 %v4090_v24, %v3092_v41  ;;  %3389 = vadd.xlane.f32.xlu1 %v3348_v4  ;;  %v3996_v24 = vadd.f32 %v6364_v12, %v6360_v2  ;;  %v6504_v12 = vpop.f32.mrf.mxu0 }
 0x315   : > { %v4092_v53 = vpop.f32.mrf.mxu1 }
 0x316   : > { %v4093_v10 = vadd.f32 %v4092_v53, %v4091_v15  ;;  %v3349_v13 = vmul.f32 %v6452_v11, %v6452_v11  ;;  %v3116_v46 = vadd.f32 %v3996_v24, %v6362_v59 }
 0x317   : > { %v4094_v37 = vpop.f32.mrf.mxu1 }
 0x318   : > { %v6461_v30 = vadd.f32 %v4093_v10, %v3095_v55  ;;  %3391 = vadd.xlane.f32.xlu0 %v3349_v13  ;;  %v3999_v10 = vadd.f32 %v6374_v39, %v6367_v25  ;;  %v4022_v39 = vpop.f32.mrf.mxu0 }
 0x319   : > { %v4095_v7 = vpop.f32.mrf.mxu1 }
 0x31a   : > { %v4096_v32 = vadd.f32 %v4095_v7, %v4094_v37  ;;  %v3350_v61 = vmul.f32 %v6461_v30, %v6461_v30  ;;  %v3119_v60 = vadd.f32 %v3999_v10, %v6362_v59 }
 0x31b   : > { %v4097_v45 = vpop.f32.mrf.mxu1 }
 0x31c   : > { %v6470_v58 = vadd.f32 %v4096_v32, %v3100_v28  ;;  %3393 = vadd.xlane.f32.xlu1 %v3350_v61  ;;  %v4002_v32 = vadd.f32 %v6388_v8, %v6381_v29  ;;  %v4024_v29 = vpop.f32.mrf.mxu0 }
 0x31d   : > { %v4098_v22 = vpop.f32.mrf.mxu1 }
 0x31e   : > { %v4099_v56 = vadd.f32 %v4098_v22, %v4097_v45  ;;  %v3351_v57 = vmul.f32 %v6470_v58, %v6470_v58  ;;  %v3124_v34 = vadd.f32 %v4002_v32, %v6362_v59 }
 0x31f   : > { %v4100_v1 = vpop.f32.mrf.mxu1 }
 0x320   : > { %v6479_v33 = vadd.f32 %v4099_v56, %v3103_v16  ;;  %3395 = vadd.xlane.f32.xlu0 %v3351_v57  ;;  %v4005_v56 = vadd.f32 %v6405_v47, %v6396_v42  ;;  %v4025_v42 = vpop.f32.mrf.mxu0 }
 0x321   : > { %v4101_v18 = vpop.f32.mrf.mxu1 }
 0x322   : > { %v4102_v48 = vadd.f32 %v4101_v18, %v4100_v1  ;;  %v3352_v20 = vmul.f32 %v6479_v33, %v6479_v33  ;;  %v3127_v36 = vadd.f32 %v4005_v56, %v6362_v59 }
 0x323   : > { %v4103_v3 = vpop.f32.mrf.mxu1 }
 0x324   : > { %v6488_v27 = vadd.f32 %v4102_v48, %v3108_v35  ;;  %3397 = vadd.xlane.f32.xlu1 %v3352_v20  ;;  %v4008_v48 = vadd.f32 %v6423_v54, %v6414_v0  ;;  %v4027_v0 = vpop.f32.mrf.mxu0 }
 0x325   : > { %v4104_v41 = vpop.f32.mrf.mxu1 }
 0x326   : > { %v4105_v4 = vadd.f32 %v4104_v41, %v4103_v3  ;;  %v3353_v9 = vmul.f32 %v6488_v27, %v6488_v27  ;;  %v3132_v24 = vadd.f32 %v4008_v48, %v6362_v59 }
 0x327   : > { %v4106_v15 = vpop.f32.mrf.mxu1 }
 0x328   : > { %v6497_v53 = vadd.f32 %v4105_v4, %v3111_v38  ;;  %3399 = vadd.xlane.f32.xlu0 %v3353_v9  ;;  %v4011_v4 = vadd.f32 %v6441_v23, %v6432_v21  ;;  %v4028_v21 = vpop.f32.mrf.mxu0 }
 0x329   : > { %v4107_v55 = vpop.f32.mrf.mxu1 }
 0x32a   : > { %v4108_v13 = vadd.f32 %v4107_v55, %v4106_v15  ;;  %v3354_v2 = vmul.f32 %v6497_v53, %v6497_v53  ;;  %v3135_v10 = vadd.f32 %v4011_v4, %v6362_v59 }
 0x32b   : > { %v4109_v37 = vpop.f32.mrf.mxu1 }
 0x32c   : > { %v6506_v7 = vadd.f32 %v4108_v13, %v3116_v46  ;;  %3401 = vadd.xlane.f32.xlu1 %v3354_v2  ;;  %v4014_v13 = vadd.f32 %v6459_v6, %v6450_v49  ;;  %v4030_v49 = vpop.f32.mrf.mxu0 }
 0x32d   : > { %v4110_v28 = vpop.f32.mrf.mxu1 }
 0x32e   : > { %v4111_v61 = vadd.f32 %v4110_v28, %v4109_v37  ;;  %v3355_v25 = vmul.f32 %v6506_v7, %v6506_v7  ;;  %v3140_v32 = vadd.f32 %v4014_v13, %v6362_v59 }
 0x32f   : > { %v4112_v45 = vpop.f32.mrf.mxu1 }
 0x330   : > { %v6513_v22 = vadd.f32 %v4111_v61, %v3119_v60  ;;  %3403 = vadd.xlane.f32.xlu0 %v3355_v25  ;;  %v4017_v61 = vadd.f32 %v6477_v44, %v6468_v40  ;;  %v4031_v40 = vpop.f32.mrf.mxu0 }
 0x331   : > { %v4113_v16 = vpop.f32.mrf.mxu1 }
 0x332   : > { %v4114_v57 = vadd.f32 %v4113_v16, %v4112_v45  ;;  %v3356_v1 = vmul.f32 %v6513_v22, %v6513_v22  ;;  %v3143_v56 = vadd.f32 %v4017_v61, %v6362_v59 }
 0x333   : > { %v4115_v8 = vpop.f32.mrf.mxu1 }
 0x334   : > { %v6520_v18 = vadd.f32 %v4114_v57, %v3124_v34  ;;  %3405 = vadd.xlane.f32.xlu1 %v3356_v1  ;;  %v4020_v57 = vadd.f32 %v6495_v62, %v6486_v17 }
 0x335   : > { %v4116_v35 = vpop.f32.mrf.mxu1 }
 0x336   : > { %v4117_v20 = vadd.f32 %v4116_v35, %v4115_v8  ;;  %v3357_v3 = vmul.f32 %v6520_v18, %v6520_v18  ;;  %v3148_v48 = vadd.f32 %v4020_v57, %v6362_v59 }
 0x337   : > { %v4118_v47 = vpop.f32.mrf.mxu1 }
 0x338   : > { %v6527_v41 = vadd.f32 %v4117_v20, %v3127_v36  ;;  %3407 = vadd.xlane.f32.xlu0 %v3357_v3  ;;  %v4023_v20 = vadd.f32 %v4022_v39, %v6504_v12 }
 0x339   : > { %v4119_v38 = vpop.f32.mrf.mxu1 }
 0x33a   : > { %v4120_v9 = vadd.f32 %v4119_v38, %v4118_v47  ;;  %v3358_v15 = vmul.f32 %v6527_v41, %v6527_v41  ;;  %v4033_v38 = vpop.f32.mrf.mxu0  ;;  %v3151_v4 = vadd.f32 %v4023_v20, %v6362_v59 }
 0x33b   : > { %v4121_v54 = vpop.f32.mrf.mxu1 }
 0x33c   : > { %v6534_v55 = vadd.f32 %v4120_v9, %v3132_v24  ;;  %3409 = vadd.xlane.f32.xlu1 %v3358_v15  ;;  %v4026_v9 = vadd.f32 %v4025_v42, %v4024_v29 }
 0x33d   : > { %v4122_v46 = vpop.f32.mrf.mxu1 }
 0x33e   : > { %v4123_v2 = vadd.f32 %v4122_v46, %v4121_v54  ;;  %v3359_v37 = vmul.f32 %v6534_v55, %v6534_v55  ;;  %v4034_v46 = vpop.f32.mrf.mxu0  ;;  %v3156_v13 = vadd.f32 %v4026_v9, %v6362_v59 }
 0x33f   : > { %v4124_v23 = vpop.f32.mrf.mxu1 }
 0x340   : > { %v6541_v28 = vadd.f32 %v4123_v2, %v3135_v10  ;;  %3411 = vadd.xlane.f32.xlu0 %v3359_v37  ;;  %v4029_v2 = vadd.f32 %v4028_v21, %v4027_v0 }
 0x341   : > { %v4125_v60 = vpop.f32.mrf.mxu1 }
 0x342   : > { %v4126_v25 = vadd.f32 %v4125_v60, %v4124_v23  ;;  %v3360_v45 = vmul.f32 %v6541_v28, %v6541_v28  ;;  %v4036_v60 = vpop.f32.mrf.mxu0  ;;  %v3159_v61 = vadd.f32 %v4029_v2, %v6362_v59 }
 0x343   : > { %v4127_v6 = vpop.f32.mrf.mxu1 }
 0x344   : > { %v6548_v16 = vadd.f32 %v4126_v25, %v3140_v32  ;;  %3413 = vadd.xlane.f32.xlu1 %v3360_v45  ;;  %v4032_v25 = vadd.f32 %v4031_v40, %v4030_v49 }
 0x345   : > { %v4128_v34 = vpop.f32.mrf.mxu1 }
 0x346   : > { %v4129_v1 = vadd.f32 %v4128_v34, %v4127_v6  ;;  %v3361_v8 = vmul.f32 %v6548_v16, %v6548_v16  ;;  %v4037_v34 = vpop.f32.mrf.mxu0  ;;  %v3164_v57 = vadd.f32 %v4032_v25, %v6362_v59 }
 0x347   : > { %v4130_v44 = vpop.f32.mrf.mxu1 }
 0x348   : > { %v6555_v35 = vadd.f32 %v4129_v1, %v3143_v56  ;;  %3415 = vadd.xlane.f32.xlu0 %v3361_v8  ;;  %v4035_v1 = vadd.f32 %v4034_v46, %v4033_v38 }
 0x349   : > { %v4131_v36 = vpop.f32.mrf.mxu1 }
 0x34a   : > { %v4132_v3 = vadd.f32 %v4131_v36, %v4130_v44  ;;  %v3362_v47 = vmul.f32 %v6555_v35, %v6555_v35  ;;  %v4039_v36 = vpop.f32.mrf.mxu0  ;;  %v3167_v20 = vadd.f32 %v4035_v1, %v6362_v59 }
 0x34b   : > { %v4133_v17 = vpop.f32.mrf.mxu1 }
 0x34c   : > { %v6561_v62 = vadd.f32 %v4132_v3, %v3148_v48  ;;  %3417 = vadd.xlane.f32.xlu1 %v3362_v47  ;;  %v4038_v3 = vadd.f32 %v4037_v34, %v4036_v60 }
 0x34d   : > { %v4134_v24 = vpop.f32.mrf.mxu1 }
 0x34e   : > { %v4135_v15 = vadd.f32 %v4134_v24, %v4133_v17  ;;  %v3363_v54 = vmul.f32 %v6561_v62, %v6561_v62  ;;  %v4040_v24 = vpop.f32.mrf.mxu0 }
 0x34f   : > { %v4136_v10 = vpop.f32.mrf.mxu1 }
 0x350   : > { %v6566_v12 = vadd.f32 %v4135_v15, %v3151_v4  ;;  %3419 = vadd.xlane.f32.xlu0 %v3363_v54  ;;  %v3172_v15 = vadd.f32 %v4038_v3, %v6362_v59  ;;  %v4041_v54 = vadd.f32 %v4040_v24, %v4039_v36 }
 0x351   : > { %v4137_v39 = vpop.f32.mrf.mxu1 }
 0x352   : > { %v4138_v37 = vadd.f32 %v4137_v39, %v4136_v10  ;;  %v3364_v23 = vmul.f32 %v6566_v12, %v6566_v12 }
 0x353   : > { %v4139_v32 = vpop.f32.mrf.mxu1 }
 0x354   : > { %v6571_v29 = vadd.f32 %v4138_v37, %v3156_v13  ;;  %3421 = vadd.xlane.f32.xlu1 %v3364_v23  ;;  %v3175_v37 = vadd.f32 %v4041_v54, %v6362_v59 }
 0x355   : > { %v4140_v42 = vpop.f32.mrf.mxu1 }
 0x356   : > { %v4141_v45 = vadd.f32 %v4140_v42, %v4139_v32  ;;  %v3365_v6 = vmul.f32 %v6571_v29, %v6571_v29 }
 0x357   : > { %v4142_v56 = vpop.f32.mrf.mxu1 }
 0x358   : > { %v6576_v0 = vadd.f32 %v4141_v45, %v3159_v61  ;;  %3423 = vadd.xlane.f32.xlu0 %v3365_v6 }
 0x359   : > { %v4143_v21 = vpop.f32.mrf.mxu1 }
 0x35a   : > { %v4144_v8 = vadd.f32 %v4143_v21, %v4142_v56  ;;  %v3366_v44 = vmul.f32 %v6576_v0, %v6576_v0 }
 0x35b   : > { %v4145_v48 = vpop.f32.mrf.mxu1 }
 0x35c   : > { %v6581_v49 = vadd.f32 %v4144_v8, %v3164_v57  ;;  %3425 = vadd.xlane.f32.xlu1 %v3366_v44 }
 0x35d   : > { %v4146_v40 = vpop.f32.mrf.mxu1 }
 0x35e   : > { %v4147_v47 = vadd.f32 %v4146_v40, %v4145_v48  ;;  %v3367_v17 = vmul.f32 %v6581_v49, %v6581_v49 }
 0x35f   : > { %v4148_v4 = vpop.f32.mrf.mxu1 }
 0x360   : > { %v6586_v38 = vadd.f32 %v4147_v47, %v3167_v20  ;;  %3427 = vadd.xlane.f32.xlu0 %v3367_v17 }
 0x361   : > { %v4149_v9 = vpop.f32.mrf.mxu1 }
 0x362   : > { %v4150_v46 = vadd.f32 %v4149_v9, %v4148_v4  ;;  %v3368_v10 = vmul.f32 %v6586_v38, %v6586_v38 }
 0x363   : > { %v4151_v39 = vpop.f32.mrf.mxu1 }
 0x364   : > { %v6591_v13 = vadd.f32 %v4150_v46, %v3172_v15  ;;  %3429 = vadd.xlane.f32.xlu1 %v3368_v10 }
 0x365   : > { %v4152_v2 = vpop.f32.mrf.mxu1 }
 0x366   : > { %v4153_v23 = vadd.f32 %v4152_v2, %v4151_v39  ;;  %v3369_v60 = vmul.f32 %v6591_v13, %v6591_v13 }
 0x368   : > { %v6596_v32 = vadd.f32 %v4153_v23, %v3175_v37  ;;  %3431 = vadd.xlane.f32.xlu0 %v3369_v60 }
 0x36a   : > { %v3370_v42 = vmul.f32 %v6596_v32, %v6596_v32 }
 0x36c   : > { %3433 = vadd.xlane.f32.xlu1 %v3370_v42 }
 0x379   : > { %v3372_v61 = vpop.xlane.xlu0 %3371 }
 0x37a   : > { %4493 = vrsqrt.f32 %v3372_v61 }
 0x37d   : > { %v3374_v25 = vpop.xlane.xlu0 %3373 }
 0x37e   : > { %4495 = vrsqrt.f32 %v3374_v25 }
 0x381   : > { %v3376_v45 = vpop.xlane.xlu1 %3375 }
 0x382   : > { %4497 = vrsqrt.f32 %v3376_v45 }
 0x385   : > { %v3378_v6 = vpop.xlane.xlu1 %3377 }
 0x386   : > { %4499 = vrsqrt.f32 %v3378_v6 }
 0x387   : > { %v4494_v59 = vpop.eup %4493 }
 0x388   : > { %v3499_v34 = vmul.f32 3.0, %v4494_v59 }
 0x389   : > { %v3380_v56 = vpop.xlane.xlu0 %3379 }
 0x38a   : > { %v3531_v21 = vmul.f32 %v3499_v34, %v6369_v14  ;;  %4501 = vrsqrt.f32 %v3380_v56 }
 0x38b   : > { %v4496_v57 = vpop.eup %4495 }
 0x38c   : > { %3563 = vst [vmem:[%s6602_s19] sm:$0xff] %v3531_v21  ;;  %v3500_v1 = vmul.f32 3.0, %v4496_v57 }
 0x38d   : > { %v3382_v8 = vpop.xlane.xlu1 %3381 }
 0x38e   : > { %v3532_v44 = vmul.f32 %v3500_v1, %v6376_v19  ;;  %4503 = vrsqrt.f32 %v3382_v8 }
 0x38f   : > { %v4498_v36 = vpop.eup %4497 }
 0x390   : > { %3564 = vst [vmem:[%s6602_s19 + $0x8] sm:$0xff] %v3532_v44  ;;  %v3501_v48 = vmul.f32 3.0, %v4498_v36 }
 0x391   : > { %v3384_v40 = vpop.xlane.xlu0 %3383 }
 0x392   : > { %v3533_v14 = vmul.f32 %v3501_v48, %v6383_v43  ;;  %4505 = vrsqrt.f32 %v3384_v40 }
 0x393   : > { %v4500_v20 = vpop.eup %4499 }
 0x394   : > { %3565 = vst [vmem:[%s6602_s19 + $0x10] sm:$0xff] %v3533_v14  ;;  %v3502_v3 = vmul.f32 3.0, %v4500_v20 }
 0x395   : > { %v3386_v47 = vpop.xlane.xlu1 %3385 }
 0x396   : > { %v3534_v17 = vmul.f32 %v3502_v3, %v6390_v5  ;;  %4507 = vrsqrt.f32 %v3386_v47 }
 0x397   : > { %v4502_v24 = vpop.eup %4501 }
 0x398   : > { %3566 = vst [vmem:[%s6602_s19 + $0x18] sm:$0xff] %v3534_v17  ;;  %v3503_v19 = vmul.f32 3.0, %v4502_v24 }
 0x399   : > { %v3388_v4 = vpop.xlane.xlu0 %3387 }
 0x39a   : > { %v3535_v9 = vmul.f32 %v3503_v19, %v6398_v50  ;;  %4509 = vrsqrt.f32 %v3388_v4 }
 0x39b   : > { %v4504_v15 = vpop.eup %4503 }
 0x39c   : > { %3567 = vst [vmem:[%s6602_s19 + $0x20] sm:$0xff] %v3535_v9  ;;  %v3504_v43 = vmul.f32 3.0, %v4504_v15 }
 0x39d   : > { %v3390_v54 = vpop.xlane.xlu1 %3389 }
 0x39e   : > { %v3536_v46 = vmul.f32 %v3504_v43, %v6407_v63  ;;  %4511 = vrsqrt.f32 %v3390_v54 }
 0x39f   : > { %v4506_v10 = vpop.eup %4505 }
 0x3a0   : > { %3568 = vst [vmem:[%s6602_s19 + $0x28] sm:$0xff] %v3536_v46  ;;  %v3505_v5 = vmul.f32 3.0, %v4506_v10 }
 0x3a1   : > { %v3392_v39 = vpop.xlane.xlu0 %3391 }
 0x3a2   : > { %v3537_v2 = vmul.f32 %v3505_v5, %v6416_v51  ;;  %4513 = vrsqrt.f32 %v3392_v39 }
 0x3a3   : > { %v4508_v37 = vpop.eup %4507 }
 0x3a4   : > { %3569 = vst [vmem:[%s6602_s19 + $0x30] sm:$0xff] %v3537_v2  ;;  %v3506_v50 = vmul.f32 3.0, %v4508_v37 }
 0x3a5   : > { %v3394_v23 = vpop.xlane.xlu1 %3393 }
 0x3a6   : > { %v3538_v60 = vmul.f32 %v3506_v50, %v6425_v31  ;;  %4515 = vrsqrt.f32 %v3394_v23 }
 0x3a7   : > { %v4510_v42 = vpop.eup %4509 }
 0x3a8   : > { %3570 = vst [vmem:[%s6602_s19 + $0x38] sm:$0xff] %v3538_v60  ;;  %v3507_v63 = vmul.f32 3.0, %v4510_v42 }
 0x3a9   : > { %v3396_v61 = vpop.xlane.xlu0 %3395 }
 0x3aa   : > { %v3539_v25 = vmul.f32 %v3507_v63, %v6434_v26  ;;  %4517 = vrsqrt.f32 %v3396_v61 }
 0x3ab   : > { %v4512_v45 = vpop.eup %4511 }
 0x3ac   : > { %3571 = vst [vmem:[%s6602_s19 + $0x40] sm:$0xff] %v3539_v25  ;;  %v3508_v51 = vmul.f32 3.0, %v4512_v45 }
 0x3ad   : > { %v3398_v6 = vpop.xlane.xlu1 %3397 }
 0x3ae   : > { %v3540_v59 = vmul.f32 %v3508_v51, %v6443_v52  ;;  %4519 = vrsqrt.f32 %v3398_v6 }
 0x3af   : > { %v4514_v34 = vpop.eup %4513 }
 0x3b0   : > { %3572 = vst [vmem:[%s6602_s19 + $0x48] sm:$0xff] %v3540_v59  ;;  %v3509_v31 = vmul.f32 3.0, %v4514_v34 }
 0x3b1   : > { %v3400_v56 = vpop.xlane.xlu0 %3399 }
 0x3b2   : > { %v3541_v21 = vmul.f32 %v3509_v31, %v6452_v11  ;;  %4521 = vrsqrt.f32 %v3400_v56 }
 0x3b3   : > { %v4516_v57 = vpop.eup %4515 }
 0x3b4   : > { %3573 = vst [vmem:[%s6602_s19 + $0x50] sm:$0xff] %v3541_v21  ;;  %v3510_v26 = vmul.f32 3.0, %v4516_v57 }
 0x3b5   : > { %v3402_v1 = vpop.xlane.xlu1 %3401 }
 0x3b6   : > { %v3542_v8 = vmul.f32 %v3510_v26, %v6461_v30  ;;  %4523 = vrsqrt.f32 %v3402_v1 }
 0x3b7   : > { %v4518_v44 = vpop.eup %4517 }
 0x3b8   : > { %3574 = vst [vmem:[%s6602_s19 + $0x58] sm:$0xff] %v3542_v8  ;;  %v3511_v52 = vmul.f32 3.0, %v4518_v44 }
 0x3b9   : > { %v3404_v36 = vpop.xlane.xlu0 %3403 }
 0x3ba   : > { %v3543_v48 = vmul.f32 %v3511_v52, %v6470_v58  ;;  %4525 = vrsqrt.f32 %v3404_v36 }
 0x3bb   : > { %v4520_v40 = vpop.eup %4519 }
 0x3bc   : > { %3575 = vst [vmem:[%s6602_s19 + $0x60] sm:$0xff] %v3543_v48  ;;  %v3512_v11 = vmul.f32 3.0, %v4520_v40 }
 0x3bd   : > { %v3406_v14 = vpop.xlane.xlu1 %3405 }
 0x3be   : > { %v3544_v20 = vmul.f32 %v3512_v11, %v6479_v33  ;;  %4527 = vrsqrt.f32 %v3406_v14 }
 0x3bf   : > { %v4522_v3 = vpop.eup %4521 }
 0x3c0   : > { %3576 = vst [vmem:[%s6602_s19 + $0x68] sm:$0xff] %v3544_v20  ;;  %v3513_v30 = vmul.f32 3.0, %v4522_v3 }
 0x3c1   : > { %v3408_v47 = vpop.xlane.xlu0 %3407 }
 0x3c2   : > { %v3545_v17 = vmul.f32 %v3513_v30, %v6488_v27  ;;  %4529 = vrsqrt.f32 %v3408_v47 }
 0x3c3   : > { %v4524_v24 = vpop.eup %4523 }
 0x3c4   : > { %3577 = vst [vmem:[%s6602_s19 + $0x70] sm:$0xff] %v3545_v17  ;;  %v3514_v58 = vmul.f32 3.0, %v4524_v24 }
 0x3c5   : > { %v3410_v19 = vpop.xlane.xlu1 %3409 }
 0x3c6   : > { %v3546_v4 = vmul.f32 %v3514_v58, %v6497_v53  ;;  %4531 = vrsqrt.f32 %v3410_v19 }
 0x3c7   : > { %v4526_v9 = vpop.eup %4525 }
 0x3c8   : > { %3578 = vst [vmem:[%s6602_s19 + $0x78] sm:$0xff] %v3546_v4  ;;  %v3515_v33 = vmul.f32 3.0, %v4526_v9 }
 0x3c9   : > { %v3412_v15 = vpop.xlane.xlu0 %3411 }
 0x3ca   : > { %v3547_v43 = vmul.f32 %v3515_v33, %v6506_v7  ;;  %4533 = vrsqrt.f32 %v3412_v15 }
 0x3cb   : > { %v4528_v54 = vpop.eup %4527 }
 0x3cc   : > { %3579 = vst [vmem:[%s6602_s19 + $0x80] sm:$0xff] %v3547_v43  ;;  %v3516_v27 = vmul.f32 3.0, %v4528_v54 }
 0x3cd   : > { %v3414_v46 = vpop.xlane.xlu1 %3413 }
 0x3ce   : > { %v3548_v10 = vmul.f32 %v3516_v27, %v6513_v22  ;;  %4535 = vrsqrt.f32 %v3414_v46 }
 0x3cf   : > { %v4530_v5 = vpop.eup %4529 }
 0x3d0   : > { %3580 = vst [vmem:[%s6602_s19 + $0x88] sm:$0xff] %v3548_v10  ;;  %v3517_v53 = vmul.f32 3.0, %v4530_v5 }
 0x3d1   : > { %v3416_v39 = vpop.xlane.xlu0 %3415 }
 0x3d2   : > { %v3549_v2 = vmul.f32 %v3517_v53, %v6520_v18  ;;  %4537 = vrsqrt.f32 %v3416_v39 }
 0x3d3   : > { %v4532_v37 = vpop.eup %4531 }
 0x3d4   : > { %3581 = vst [vmem:[%s6602_s19 + $0x90] sm:$0xff] %v3549_v2  ;;  %v3518_v7 = vmul.f32 3.0, %v4532_v37 }
 0x3d5   : > { %v3418_v50 = vpop.xlane.xlu1 %3417 }
 0x3d6   : > { %v3550_v23 = vmul.f32 %v3518_v7, %v6527_v41  ;;  %4539 = vrsqrt.f32 %v3418_v50 }
 0x3d7   : > { %v4534_v60 = vpop.eup %4533 }
 0x3d8   : > { %3582 = vst [vmem:[%s6602_s19 + $0x98] sm:$0xff] %v3550_v23  ;;  %v3519_v22 = vmul.f32 3.0, %v4534_v60 }
 0x3d9   : > { %v3420_v42 = vpop.xlane.xlu0 %3419 }
 0x3da   : > { %v3551_v63 = vmul.f32 %v3519_v22, %v6534_v55  ;;  %4541 = vrsqrt.f32 %v3420_v42 }
 0x3db   : > { %v4536_v61 = vpop.eup %4535 }
 0x3dc   : > { %3583 = vst [vmem:[%s6602_s19 + $0xa0] sm:$0xff] %v3551_v63  ;;  %v3520_v18 = vmul.f32 3.0, %v4536_v61 }
 0x3dd   : > { %v3422_v25 = vpop.xlane.xlu1 %3421 }
 0x3de   : > { %v3552_v45 = vmul.f32 %v3520_v18, %v6541_v28  ;;  %4543 = vrsqrt.f32 %v3422_v25 }
 0x3df   : > { %v4538_v51 = vpop.eup %4537 }
 0x3e0   : > { %3584 = vst [vmem:[%s6602_s19 + $0xa8] sm:$0xff] %v3552_v45  ;;  %v3521_v41 = vmul.f32 3.0, %v4538_v51 }
 0x3e1   : > { %v3424_v6 = vpop.xlane.xlu0 %3423 }
 0x3e2   : > { %v3553_v59 = vmul.f32 %v3521_v41, %v6548_v16  ;;  %4545 = vrsqrt.f32 %v3424_v6 }
 0x3e3   : > { %v4540_v34 = vpop.eup %4539 }
 0x3e4   : > { %3585 = vst [vmem:[%s6602_s19 + $0xb0] sm:$0xff] %v3553_v59  ;;  %v3522_v55 = vmul.f32 3.0, %v4540_v34 }
 0x3e5   : > { %v3426_v31 = vpop.xlane.xlu1 %3425 }
 0x3e6   : > { %v3554_v56 = vmul.f32 %v3522_v55, %v6555_v35  ;;  %4547 = vrsqrt.f32 %v3426_v31 }
 0x3e7   : > { %v4542_v21 = vpop.eup %4541 }
 0x3e8   : > { %3586 = vst [vmem:[%s6602_s19 + $0xb8] sm:$0xff] %v3554_v56  ;;  %v3523_v28 = vmul.f32 3.0, %v4542_v21 }
 0x3e9   : > { %v3428_v57 = vpop.xlane.xlu0 %3427 }
 0x3ea   : > { %v3555_v26 = vmul.f32 %v3523_v28, %v6561_v62  ;;  %4549 = vrsqrt.f32 %v3428_v57 }
 0x3eb   : > { %v4544_v1 = vpop.eup %4543 }
 0x3ec   : > { %3587 = vst [vmem:[%s6602_s19 + $0xc0] sm:$0xff] %v3555_v26  ;;  %v3524_v16 = vmul.f32 3.0, %v4544_v1 }
 0x3ed   : > { %v3430_v8 = vpop.xlane.xlu1 %3429 }
 0x3ee   : > { %v3556_v44 = vmul.f32 %v3524_v16, %v6566_v12  ;;  %4551 = vrsqrt.f32 %v3430_v8 }
 0x3ef   : > { %v4546_v52 = vpop.eup %4545 }
 0x3f0   : > { %3588 = vst [vmem:[%s6602_s19 + $0xc8] sm:$0xff] %v3556_v44  ;;  %v3525_v35 = vmul.f32 3.0, %v4546_v52 }
 0x3f1   : > { %v3432_v36 = vpop.xlane.xlu0 %3431 }
 0x3f2   : > { %v3557_v48 = vmul.f32 %v3525_v35, %v6571_v29  ;;  %4553 = vrsqrt.f32 %v3432_v36 }
 0x3f3   : > { %v4548_v40 = vpop.eup %4547 }
 0x3f4   : > { %3589 = vst [vmem:[%s6602_s19 + $0xd0] sm:$0xff] %v3557_v48  ;;  %v3526_v62 = vmul.f32 3.0, %v4548_v40 }
 0x3f5   : > { %v3434_v11 = vpop.xlane.xlu1 %3433 }
 0x3f6   : > { %v3558_v14 = vmul.f32 %v3526_v62, %v6576_v0  ;;  %4555 = vrsqrt.f32 %v3434_v11 }
 0x3f7   : > { %v4550_v12 = vpop.eup %4549 }
 0x3f8   : > { %3590 = vst [vmem:[%s6602_s19 + $0xd8] sm:$0xff] %v3558_v14  ;;  %v3527_v20 = vmul.f32 3.0, %v4550_v12 }
 0x3fa   : > { %v3559_v3 = vmul.f32 %v3527_v20, %v6581_v49 }
 0x3fb   : > { %v4552_v30 = vpop.eup %4551 }
 0x3fc   : > { %3591 = vst [vmem:[%s6602_s19 + $0xe0] sm:$0xff] %v3559_v3  ;;  %v3528_v29 = vmul.f32 3.0, %v4552_v30 }
 0x3fe   : > { %v3560_v47 = vmul.f32 %v3528_v29, %v6586_v38 }
 0x3ff   : > { %v4554_v17 = vpop.eup %4553 }
 0x400   : > { %3592 = vst [vmem:[%s6602_s19 + $0xe8] sm:$0xff] %v3560_v47  ;;  %v3529_v24 = vmul.f32 3.0, %v4554_v17 }
 0x402   : > { %v3561_v0 = vmul.f32 %v3529_v24, %v6591_v13 }
 0x403   : > { %v4556_v58 = vpop.eup %4555 }
 0x404   : > { %3593 = vst [vmem:[%s6602_s19 + $0xf0] sm:$0xff] %v3561_v0  ;;  %v3530_v19 = vmul.f32 3.0, %v4556_v58 }
 0x406   : > { %v3562_v49 = vmul.f32 %v3530_v19, %v6596_v32 }
 0x408   : > { %3594 = vst [vmem:[%s6602_s19 + $0xf8] sm:$0xff] %v3562_v49 }
 0x409   : > { %4754 = shalt.err (!%p4751_p5)
}
 0x40a   : > { %s4755_s1 = scalar_lea.hbm %s6670_s18, 4096  ;;  %s4759_s8 = scalar_lea.hbm %s6723_s7, 16384 }
 0x40b   : > { %p4756_p13 = scmp.ne.s32.totalorder %s6670_s18, %s4755_s1  ;;  %p4760_p4 = scmp.lt.s32.totalorder %s6670_s18, %s6723_s7 }
 0x40c   : > { %p4761_p7 = scmp.lt.s32.totalorder %s4759_s8, %s4755_s1 }
 0x40d   : > { %p4757_p0 = pnand %p4756_p13, %p6868_p10 }
 0x40e   : > { %p4762_p8 = por %p4761_p7, %p4760_p4 }
 0x40f   : > { %p4758_p1 = pneg %p4757_p0 }
 0x411   : > { %p4763_p9 = pnand %p4762_p8, %p4758_p1 }
 0x413   : > { %4766 = shalt.err (!%p4763_p9)
}
 0x414   : > { %s4833_s14 = smov 128   ;;  %s4834_s15 = smov 8  }
 0x415   : > { %4180 = dma.vmem_to_hbm [thread:$0]  (%p6868_p10), %s6672_s10, 4096, %s6670_s18, %s3596_s20, %s4833_s14, %s4833_s14, %s4834_s15  }
 0x416 PF: > { %p4222_p11 = scmp.ge.s32.totalorder %s4817_s27, 2  ;;  %s3624_s23 = sand.u32 1, %s4805_s24  }
 0x417   : > { %p6869_p12 = scmp.ne.s32.totalorder %s6770_s21, 0  ;;  %s3625_s30 = scalar_lea.sflag [#allocation4], %s3624_s23 }
 0x419   : > { %p4206_p3 = pnand %p4222_p11, %p6869_p12 }
 0x41b   : > { %p4207_p2 = pneg %p4206_p3 }
 0x41d   : > { %4800 = dma.done.wait (%p4207_p2), %s3625_s30, 4096  }
 0x41e   : > { %4802 = vsyncadd (%p4207_p2), %s3625_s30, 4294963200  ;;  %p23_p6 = scmp.ge.s32.totalorder %s4977_s11, 6   ;;  %s6870_s24 = smov %s4809_s25 }
 0x41f   : > { %s6871_s25 = smov %s4813_s26  ;;  %s6872_s26 = smov %s4988_s17 }
 0x420   : > { %s6873_s27 = smov %s4977_s11  ;;  %25 = sbr.rel (!%p23_p6) target bundleno = 10 (0xa), region = 117 }
 0x425   :  { %3630 = vsyncpa [#allocation3], 1 }
 0x426   :  { %3632 = vsyncpa [#allocation3 + $0x1], 1 }
 0x427   :  { %3633 = vsyncpa [#allocation6], 1 }
 0x428   :  { %3634 = vsyncpa [#allocation9], 1 }
 0x429   :  { %3635 = vsyncpa [#allocation12], 1 }
 0x42a   :  { %3636 = vsyncpa [#allocation4], 1 }
 0x42b   :  { %3638 = vsyncpa [#allocation4 + $0x1], 1 }

</bundles_post_ra>
